<compile_context>
chip_gen: v7x
topology: tpu7x:2x2x1
jax: 0.10.0
libtpu: 0.0.40
codegen_flags: <defaults>
</compile_context>

<pallas_src>
import functools

import jax
import jax.numpy as jnp
import numpy as np
from jax.experimental import pallas as pl
from jax.experimental.pallas import tpu as pltpu

EPS = 1e-6


# ------------------------------ helpers ------------------------------------

def _full_spec(shape):
    """Whole-array block for a grid=(1,) kernel."""
    nd = len(shape)
    return pl.BlockSpec(shape, lambda i, _nd=nd: (0,) * _nd)


_COMPILER_PARAMS = pltpu.CompilerParams(
    dimension_semantics=("arbitrary",),
    vmem_limit_bytes=32 * 1024 * 1024,
)


def _pad_hw(x):
    return jnp.pad(x, ((0, 0), (1, 1), (1, 1), (0, 0)))


def _phase_split(xp):
    """Split a spatially padded NHWC tensor into 4 (row,col) parity phases."""
    return (xp[:, 0::2, 0::2, :], xp[:, 0::2, 1::2, :],
            xp[:, 1::2, 0::2, :], xp[:, 1::2, 1::2, :])


def _batchnorm(x, g, be):
    """Training-mode BatchNorm over rows of a flattened (M, C) f32 tensor."""
    mean = jnp.mean(x, axis=0, keepdims=True)
    var = jnp.mean(jnp.square(x - mean), axis=0, keepdims=True)   # biased var
    return (x - mean) * jax.lax.rsqrt(var + EPS) * g + be


# ----------------------------- Pallas kernels ------------------------------

def _down_block_kernel(ph00, ph01, ph10, ph11, w_ref, b_ref, g_ref, be_ref,
                       o_ref, *, N, Ho, Wo, Cin, Cout):
    """Fused Conv2d(4x4, stride=2, pad=1) + bias + BatchNorm + ReLU.

    Inputs are the 4 parity phases of the spatially padded NHWC activation; the
    conv is a tap-wise bf16 MXU accumulation (f32 acc).  Output is written back
    spatially re-padded by 1 (zero border) so the next conv needs no extra pad op.
    """
    M = N * Ho * Wo
    phases = ((ph00, ph01), (ph10, ph11))
    acc = jnp.zeros((M, Cout), jnp.float32)
    for kh in range(4):
        for kw in range(4):
            ph = phases[kh % 2][kw % 2]
            sl = ph[:, kh // 2:kh // 2 + Ho, kw // 2:kw // 2 + Wo, :]
            a = sl.reshape(M, Cin).astype(jnp.bfloat16)
            acc = acc + jnp.dot(a, w_ref[kh * 4 + kw],
                                preferred_element_type=jnp.float32)
    acc = acc + b_ref[...]
    y = jnp.maximum(_batchnorm(acc, g_ref[...], be_ref[...]), 0.0)
    o_ref[...] = jnp.zeros(o_ref.shape, o_ref.dtype)
    o_ref[:, 1:Ho + 1, 1:Wo + 1, :] = y.reshape(N, Ho, Wo, Cout)


def _tail_kernel(*refs, N, Hf, Wf, Cin, Z, n_res):
    """Fused final Conv2d(3x3, s=1, p=1) + all ResBlocks.

    ResBlock: x + BN(Conv1x1(ReLU(BN(Conv3x3(ReLU(x)))))).
    All intermediates stay in VMEM; the padded activation for the in-ResBlock
    3x3 conv lives in a VMEM scratch (zero border written once).
    """
    xpad_ref = refs[0]
    wf_ref = refs[1]
    bf_ref = refs[2]
    res_refs = refs[3:3 + 8 * n_res]
    o_ref = refs[3 + 8 * n_res]
    pad_scr = refs[3 + 8 * n_res + 1]

    M = N * Hf * Wf

    def conv3x3(src_ref, w_ref, cin):
        cout = w_ref.shape[-1]
        acc = jnp.zeros((M, cout), jnp.float32)
        for kh in range(3):
            for kw in range(3):
                sl = src_ref[:, kh:kh + Hf, kw:kw + Wf, :]
                a = sl.reshape(M, cin).astype(jnp.bfloat16)
                acc = acc + jnp.dot(a, w_ref[kh * 3 + kw],
                                    preferred_element_type=jnp.float32)
        return acc

    # final down conv (no norm / activation)
    h = conv3x3(xpad_ref, wf_ref, Cin) + bf_ref[...]

    # zero the scratch once: its border stays zero, only the interior is rewritten
    pad_scr[...] = jnp.zeros(pad_scr.shape, pad_scr.dtype)

    for r in range(n_res):
        w1, b1, g1, be1, w2, b2, g2, be2 = res_refs[8 * r:8 * r + 8]
        t = jnp.maximum(h, 0.0)                       # leading ReLU on the activation itself
        pad_scr[:, 1:Hf + 1, 1:Wf + 1, :] = t.reshape(N, Hf, Wf, Z)
        t = conv3x3(pad_scr, w1, Z) + b1[...]
        t = jnp.maximum(_batchnorm(t, g1[...], be1[...]), 0.0)
        t = jnp.dot(t.astype(jnp.bfloat16), w2[...],
                    preferred_element_type=jnp.float32) + b2[...]
        h = h + _batchnorm(t, g2[...], be2[...])

    o_ref[...] = h.reshape(N, Hf, Wf, Z)


# ------------------------------ wrappers ------------------------------------

def pallas_down_block(xpad, w, b, g, be):
    """xpad: (N, H+2, W+2, Cin) zero-padded NHWC.  Returns (N, H/2+2, W/2+2, Cout) padded."""
    N, Hp, Wp, Cin = xpad.shape
    Ho, Wo = (Hp - 2) // 2, (Wp - 2) // 2
    Cout = w.shape[-1]
    phases = _phase_split(xpad)
    wq = w.reshape(16, Cin, Cout).astype(jnp.bfloat16)
    args = list(phases) + [wq, b.reshape(1, Cout), g.reshape(1, Cout), be.reshape(1, Cout)]
    out_shape = jax.ShapeDtypeStruct((N, Ho + 2, Wo + 2, Cout), jnp.float32)
    kernel = functools.partial(_down_block_kernel, N=N, Ho=Ho, Wo=Wo, Cin=Cin, Cout=Cout)
    return pl.pallas_call(
        kernel,
        out_shape=out_shape,
        grid=(1,),
        in_specs=[_full_spec(a.shape) for a in args],
        out_specs=_full_spec(out_shape.shape),
        compiler_params=_COMPILER_PARAMS,
    )(*args)


def pallas_tail(xpad, fd, res_params, z_dim):
    """xpad: (N, Hf+2, Wf+2, Cin) padded NHWC.  Returns (N, Hf, Wf, z_dim)."""
    N, Hp, Wp, Cin = xpad.shape
    Hf, Wf = Hp - 2, Wp - 2
    Z = z_dim
    n_res = len(res_params)

    args = [xpad,
            fd["w"].reshape(9, Cin, Z).astype(jnp.bfloat16),
            fd["b"].reshape(1, Z)]
    for rb in res_params:
        args += [rb["w1"].reshape(9, Z, Z).astype(jnp.bfloat16), rb["b1"].reshape(1, Z),
                 rb["g1"].reshape(1, Z), rb["be1"].reshape(1, Z),
                 rb["w2"].reshape(Z, Z).astype(jnp.bfloat16), rb["b2"].reshape(1, Z),
                 rb["g2"].reshape(1, Z), rb["be2"].reshape(1, Z)]

    out_shape = jax.ShapeDtypeStruct((N, Hf, Wf, Z), jnp.float32)
    kernel = functools.partial(_tail_kernel, N=N, Hf=Hf, Wf=Wf, Cin=Cin, Z=Z, n_res=n_res)
    return pl.pallas_call(
        kernel,
        out_shape=out_shape,
        grid=(1,),
        in_specs=[_full_spec(a.shape) for a in args],
        out_specs=_full_spec(out_shape.shape),
        scratch_shapes=[pltpu.VMEM((N, Hf + 2, Wf + 2, Z), jnp.float32)],
        compiler_params=_COMPILER_PARAMS,
    )(*args)


# --------------------------- parameter init ----------------------------------

def init_params(key, in_dim=4, z_dim=32, resolution_depth=2, residual_depth=2):
    keys = iter(jax.random.split(key, 128))

    def conv_w(k, kh, kw, cin, cout):
        return jax.random.normal(k, (kh, kw, cin, cout), jnp.float32) * (
            2.0 / (kh * kw * cin)) ** 0.5

    params = {"down": [], "res": []}
    cin = in_dim
    out_dim = cin
    for i in range(resolution_depth - 1, 0, -1):
        out_dim = z_dim // (2 ** i)
        params["down"].append(dict(
            w=conv_w(next(keys), 4, 4, cin, out_dim),
            b=0.01 * jax.random.normal(next(keys), (out_dim,), jnp.float32),
            g=1.0 + 0.1 * jax.random.normal(next(keys), (out_dim,), jnp.float32),
            be=0.1 * jax.random.normal(next(keys), (out_dim,), jnp.float32),
        ))
        cin = out_dim
    params["final_down"] = dict(
        w=conv_w(next(keys), 3, 3, out_dim, z_dim),
        b=0.01 * jax.random.normal(next(keys), (z_dim,), jnp.float32),
    )
    for _ in range(residual_depth):
        params["res"].append(dict(
            w1=conv_w(next(keys), 3, 3, z_dim, z_dim),
            b1=0.01 * jax.random.normal(next(keys), (z_dim,), jnp.float32),
            g1=1.0 + 0.1 * jax.random.normal(next(keys), (z_dim,), jnp.float32),
            be1=0.1 * jax.random.normal(next(keys), (z_dim,), jnp.float32),
            w2=conv_w(next(keys), 1, 1, z_dim, z_dim),
            b2=0.01 * jax.random.normal(next(keys), (z_dim,), jnp.float32),
            g2=1.0 + 0.1 * jax.random.normal(next(keys), (z_dim,), jnp.float32),
            be2=0.1 * jax.random.normal(next(keys), (z_dim,), jnp.float32),
        ))
    return params


# ------------------------------ forward pass ---------------------------------

def vae_encoder_pallas(x_nchw, params):
    # NCHW at the boundary (PyTorch convention); padded NHWC between fused kernels.
    x = jnp.transpose(x_nchw, (0, 2, 3, 1)).astype(jnp.float32)
    xpad = _pad_hw(x)
    for d in params["down"]:
        # fused conv4x4/s2 + bias + BN + ReLU; output comes back already zero-padded
        xpad = pallas_down_block(xpad, d["w"], d["b"], d["g"], d["be"])
    z_dim = params["final_down"]["w"].shape[-1]
    out = pallas_tail(xpad, params["final_down"], params["res"], z_dim)
    return jnp.transpose(out, (0, 3, 1, 2))  # back to NCHW


# ----------------------- plain-JAX reference (check) -------------------------

def _conv_ref(x, w, b, stride, pad):
    y = jax.lax.conv_general_dilated(
        x, w, window_strides=(stride, stride), padding=[(pad, pad), (pad, pad)],
        dimension_numbers=("NHWC", "HWIO", "NHWC"),
        precision=jax.lax.Precision.HIGHEST)
    return y + b


def _bn_ref(x, g, be, relu=False):
    mean = jnp.mean(x, axis=(0, 1, 2), keepdims=True)
    var = jnp.mean(jnp.square(x - mean), axis=(0, 1, 2), keepdims=True)
    y = (x - mean) * jax.lax.rsqrt(var + EPS) * g + be
    return jnp.maximum(y, 0.0) if relu else y


def vae_encoder_ref(x_nchw, params):
    x = jnp.transpose(x_nchw, (0, 2, 3, 1)).astype(jnp.float32)
    for d in params["down"]:
        x = _bn_ref(_conv_ref(x, d["w"], d["b"], 2, 1), d["g"], d["be"], relu=True)
    fd = params["final_down"]
    x = _conv_ref(x, fd["w"], fd["b"], 1, 1)
    for rb in params["res"]:
        h = jnp.maximum(x, 0.0)
        h = _conv_ref(h, rb["w1"], rb["b1"], 1, 1)
        h = _bn_ref(h, rb["g1"], rb["be1"], relu=True)
        h = _conv_ref(h, rb["w2"], rb["b2"], 1, 0)
        h = _bn_ref(h, rb["g2"], rb["be2"], relu=False)
        x = x + h
    return jnp.transpose(x, (0, 3, 1, 2))


# --------------------------------- main --------------------------------------

if __name__ == "__main__":
    key = jax.random.PRNGKey(0)
    kp, kx = jax.random.split(key)

    # Small shapes consistent with the module: batch=2, in_dim=4, 16x16 input,
    # z_dim=32, resolution_depth=2, residual_depth=2.
    N, Cin, H, W = 2, 4, 16, 16
    Z = 32
    x = jax.random.normal(kx, (N, Cin, H, W), jnp.float32)
    params = init_params(kp, in_dim=Cin, z_dim=Z,
                         resolution_depth=2, residual_depth=2)

    out = jax.jit(vae_encoder_pallas)(x, params)
    out = jax.block_until_ready(out)
    assert out.shape == (N, Z, H // 2, W // 2), out.shape

    ref = vae_encoder_ref(x, params)
    err = float(jnp.max(jnp.abs(out - ref)))
    # bf16 MXU operands (f32 accumulation / BN stats) -> slightly relaxed tolerance
    if not np.allclose(np.asarray(out), np.asarray(ref), atol=5e-2, rtol=5e-2):
        raise RuntimeError(f"mismatch vs reference, max abs err = {err}")

    print("KERNEL_OK")
</pallas_src>

<mosaic_0001>
module attributes {stable_mosaic.version = 11 : i64} {
  func.func @_down_block_kernel(%arg0: i32, %arg1: memref<2x9x9x4xf32, #tpu.memory_space<vmem>>, %arg2: memref<2x9x9x4xf32, #tpu.memory_space<vmem>>, %arg3: memref<2x9x9x4xf32, #tpu.memory_space<vmem>>, %arg4: memref<2x9x9x4xf32, #tpu.memory_space<vmem>>, %arg5: memref<16x4x16xbf16, #tpu.memory_space<vmem>>, %arg6: memref<1x16xf32, #tpu.memory_space<vmem>>, %arg7: memref<1x16xf32, #tpu.memory_space<vmem>>, %arg8: memref<1x16xf32, #tpu.memory_space<vmem>>, %arg9: memref<2x10x10x16xf32, #tpu.memory_space<vmem>>) attributes {dimension_semantics = [#tpu.dimension_semantics<arbitrary>], iteration_bounds = array<i64: 1>, scalar_prefetch = 0 : i64, scratch_operands = 0 : i64, tpu.core_type = #tpu.core_type<tc>, window_params = [{pipeline_mode = #tpu.pipeline_mode<synchronous>, transform_indices = @transform_0, window_bounds = array<i64: 2, 9, 9, 4>}, {pipeline_mode = #tpu.pipeline_mode<synchronous>, transform_indices = @transform_1, window_bounds = array<i64: 2, 9, 9, 4>}, {pipeline_mode = #tpu.pipeline_mode<synchronous>, transform_indices = @transform_2, window_bounds = array<i64: 2, 9, 9, 4>}, {pipeline_mode = #tpu.pipeline_mode<synchronous>, transform_indices = @transform_3, window_bounds = array<i64: 2, 9, 9, 4>}, {pipeline_mode = #tpu.pipeline_mode<synchronous>, transform_indices = @transform_4, window_bounds = array<i64: 16, 4, 16>}, {pipeline_mode = #tpu.pipeline_mode<synchronous>, transform_indices = @transform_5, window_bounds = array<i64: 1, 16>}, {pipeline_mode = #tpu.pipeline_mode<synchronous>, transform_indices = @transform_6, window_bounds = array<i64: 1, 16>}, {pipeline_mode = #tpu.pipeline_mode<synchronous>, transform_indices = @transform_7, window_bounds = array<i64: 1, 16>}, {pipeline_mode = #tpu.pipeline_mode<synchronous>, transform_indices = @transform_8, window_bounds = array<i64: 2, 10, 10, 16>}]} {
    %cst = arith.constant 0.000000e+00 : f32
    %0 = vector.broadcast %cst : f32 to vector<128x16xf32>
    %c0 = arith.constant 0 : index
    %c0_0 = arith.constant 0 : index
    %c0_1 = arith.constant 0 : index
    %c0_2 = arith.constant 0 : index
    %1 = vector.load %arg1[%c0, %c0_0, %c0_1, %c0_2] : memref<2x9x9x4xf32, #tpu.memory_space<vmem>>, vector<2x8x8x4xf32>
    %2 = vector.shape_cast %1 : vector<2x8x8x4xf32> to vector<128x4xf32>
    %3 = arith.truncf %2 : vector<128x4xf32> to vector<128x4xbf16>
    %c0_3 = arith.constant 0 : index
    %c0_4 = arith.constant 0 : index
    %c0_5 = arith.constant 0 : index
    %4 = vector.load %arg5[%c0_3, %c0_4, %c0_5] : memref<16x4x16xbf16, #tpu.memory_space<vmem>>, vector<1x4x16xbf16>
    %5 = vector.shape_cast %4 : vector<1x4x16xbf16> to vector<4x16xbf16>
    %cst_6 = arith.constant dense<0.000000e+00> : vector<128x16xf32>
    %6 = tpu.matmul %3, %5, %cst_6 {dimension_numbers = #tpu.dot_dimension_numbers<[1], [0], [0], [1], [0, 0, 1, 1], [], []>} : vector<128x4xbf16>, vector<4x16xbf16>, vector<128x16xf32> -> vector<128x16xf32>
    %7 = arith.addf %0, %6 : vector<128x16xf32>
    %c0_7 = arith.constant 0 : index
    %c0_8 = arith.constant 0 : index
    %c0_9 = arith.constant 0 : index
    %c0_10 = arith.constant 0 : index
    %8 = vector.load %arg2[%c0_7, %c0_8, %c0_9, %c0_10] : memref<2x9x9x4xf32, #tpu.memory_space<vmem>>, vector<2x8x8x4xf32>
    %9 = vector.shape_cast %8 : vector<2x8x8x4xf32> to vector<128x4xf32>
    %10 = arith.truncf %9 : vector<128x4xf32> to vector<128x4xbf16>
    %c1 = arith.constant 1 : index
    %c0_11 = arith.constant 0 : index
    %c0_12 = arith.constant 0 : index
    %11 = vector.load %arg5[%c1, %c0_11, %c0_12] : memref<16x4x16xbf16, #tpu.memory_space<vmem>>, vector<1x4x16xbf16>
    %12 = vector.shape_cast %11 : vector<1x4x16xbf16> to vector<4x16xbf16>
    %cst_13 = arith.constant dense<0.000000e+00> : vector<128x16xf32>
    %13 = tpu.matmul %10, %12, %cst_13 {dimension_numbers = #tpu.dot_dimension_numbers<[1], [0], [0], [1], [0, 0, 1, 1], [], []>} : vector<128x4xbf16>, vector<4x16xbf16>, vector<128x16xf32> -> vector<128x16xf32>
    %14 = arith.addf %7, %13 : vector<128x16xf32>
    %c0_14 = arith.constant 0 : index
    %c0_15 = arith.constant 0 : index
    %c1_16 = arith.constant 1 : index
    %c0_17 = arith.constant 0 : index
    %15 = vector.load %arg1[%c0_14, %c0_15, %c1_16, %c0_17] : memref<2x9x9x4xf32, #tpu.memory_space<vmem>>, vector<2x8x8x4xf32>
    %16 = vector.shape_cast %15 : vector<2x8x8x4xf32> to vector<128x4xf32>
    %17 = arith.truncf %16 : vector<128x4xf32> to vector<128x4xbf16>
    %c2 = arith.constant 2 : index
    %c0_18 = arith.constant 0 : index
    %c0_19 = arith.constant 0 : index
    %18 = vector.load %arg5[%c2, %c0_18, %c0_19] : memref<16x4x16xbf16, #tpu.memory_space<vmem>>, vector<1x4x16xbf16>
    %19 = vector.shape_cast %18 : vector<1x4x16xbf16> to vector<4x16xbf16>
    %cst_20 = arith.constant dense<0.000000e+00> : vector<128x16xf32>
    %20 = tpu.matmul %17, %19, %cst_20 {dimension_numbers = #tpu.dot_dimension_numbers<[1], [0], [0], [1], [0, 0, 1, 1], [], []>} : vector<128x4xbf16>, vector<4x16xbf16>, vector<128x16xf32> -> vector<128x16xf32>
    %21 = arith.addf %14, %20 : vector<128x16xf32>
    %c0_21 = arith.constant 0 : index
    %c0_22 = arith.constant 0 : index
    %c1_23 = arith.constant 1 : index
    %c0_24 = arith.constant 0 : index
    %22 = vector.load %arg2[%c0_21, %c0_22, %c1_23, %c0_24] : memref<2x9x9x4xf32, #tpu.memory_space<vmem>>, vector<2x8x8x4xf32>
    %23 = vector.shape_cast %22 : vector<2x8x8x4xf32> to vector<128x4xf32>
    %24 = arith.truncf %23 : vector<128x4xf32> to vector<128x4xbf16>
    %c3 = arith.constant 3 : index
    %c0_25 = arith.constant 0 : index
    %c0_26 = arith.constant 0 : index
    %25 = vector.load %arg5[%c3, %c0_25, %c0_26] : memref<16x4x16xbf16, #tpu.memory_space<vmem>>, vector<1x4x16xbf16>
    %26 = vector.shape_cast %25 : vector<1x4x16xbf16> to vector<4x16xbf16>
    %cst_27 = arith.constant dense<0.000000e+00> : vector<128x16xf32>
    %27 = tpu.matmul %24, %26, %cst_27 {dimension_numbers = #tpu.dot_dimension_numbers<[1], [0], [0], [1], [0, 0, 1, 1], [], []>} : vector<128x4xbf16>, vector<4x16xbf16>, vector<128x16xf32> -> vector<128x16xf32>
    %28 = arith.addf %21, %27 : vector<128x16xf32>
    %c0_28 = arith.constant 0 : index
    %c0_29 = arith.constant 0 : index
    %c0_30 = arith.constant 0 : index
    %c0_31 = arith.constant 0 : index
    %29 = vector.load %arg3[%c0_28, %c0_29, %c0_30, %c0_31] : memref<2x9x9x4xf32, #tpu.memory_space<vmem>>, vector<2x8x8x4xf32>
    %30 = vector.shape_cast %29 : vector<2x8x8x4xf32> to vector<128x4xf32>
    %31 = arith.truncf %30 : vector<128x4xf32> to vector<128x4xbf16>
    %c4 = arith.constant 4 : index
    %c0_32 = arith.constant 0 : index
    %c0_33 = arith.constant 0 : index
    %32 = vector.load %arg5[%c4, %c0_32, %c0_33] : memref<16x4x16xbf16, #tpu.memory_space<vmem>>, vector<1x4x16xbf16>
    %33 = vector.shape_cast %32 : vector<1x4x16xbf16> to vector<4x16xbf16>
    %cst_34 = arith.constant dense<0.000000e+00> : vector<128x16xf32>
    %34 = tpu.matmul %31, %33, %cst_34 {dimension_numbers = #tpu.dot_dimension_numbers<[1], [0], [0], [1], [0, 0, 1, 1], [], []>} : vector<128x4xbf16>, vector<4x16xbf16>, vector<128x16xf32> -> vector<128x16xf32>
    %35 = arith.addf %28, %34 : vector<128x16xf32>
    %c0_35 = arith.constant 0 : index
    %c0_36 = arith.constant 0 : index
    %c0_37 = arith.constant 0 : index
    %c0_38 = arith.constant 0 : index
    %36 = vector.load %arg4[%c0_35, %c0_36, %c0_37, %c0_38] : memref<2x9x9x4xf32, #tpu.memory_space<vmem>>, vector<2x8x8x4xf32>
    %37 = vector.shape_cast %36 : vector<2x8x8x4xf32> to vector<128x4xf32>
    %38 = arith.truncf %37 : vector<128x4xf32> to vector<128x4xbf16>
    %c5 = arith.constant 5 : index
    %c0_39 = arith.constant 0 : index
    %c0_40 = arith.constant 0 : index
    %39 = vector.load %arg5[%c5, %c0_39, %c0_40] : memref<16x4x16xbf16, #tpu.memory_space<vmem>>, vector<1x4x16xbf16>
    %40 = vector.shape_cast %39 : vector<1x4x16xbf16> to vector<4x16xbf16>
    %cst_41 = arith.constant dense<0.000000e+00> : vector<128x16xf32>
    %41 = tpu.matmul %38, %40, %cst_41 {dimension_numbers = #tpu.dot_dimension_numbers<[1], [0], [0], [1], [0, 0, 1, 1], [], []>} : vector<128x4xbf16>, vector<4x16xbf16>, vector<128x16xf32> -> vector<128x16xf32>
    %42 = arith.addf %35, %41 : vector<128x16xf32>
    %c0_42 = arith.constant 0 : index
    %c0_43 = arith.constant 0 : index
    %c1_44 = arith.constant 1 : index
    %c0_45 = arith.constant 0 : index
    %43 = vector.load %arg3[%c0_42, %c0_43, %c1_44, %c0_45] : memref<2x9x9x4xf32, #tpu.memory_space<vmem>>, vector<2x8x8x4xf32>
    %44 = vector.shape_cast %43 : vector<2x8x8x4xf32> to vector<128x4xf32>
    %45 = arith.truncf %44 : vector<128x4xf32> to vector<128x4xbf16>
    %c6 = arith.constant 6 : index
    %c0_46 = arith.constant 0 : index
    %c0_47 = arith.constant 0 : index
    %46 = vector.load %arg5[%c6, %c0_46, %c0_47] : memref<16x4x16xbf16, #tpu.memory_space<vmem>>, vector<1x4x16xbf16>
    %47 = vector.shape_cast %46 : vector<1x4x16xbf16> to vector<4x16xbf16>
    %cst_48 = arith.constant dense<0.000000e+00> : vector<128x16xf32>
    %48 = tpu.matmul %45, %47, %cst_48 {dimension_numbers = #tpu.dot_dimension_numbers<[1], [0], [0], [1], [0, 0, 1, 1], [], []>} : vector<128x4xbf16>, vector<4x16xbf16>, vector<128x16xf32> -> vector<128x16xf32>
    %49 = arith.addf %42, %48 : vector<128x16xf32>
    %c0_49 = arith.constant 0 : index
    %c0_50 = arith.constant 0 : index
    %c1_51 = arith.constant 1 : index
    %c0_52 = arith.constant 0 : index
    %50 = vector.load %arg4[%c0_49, %c0_50, %c1_51, %c0_52] : memref<2x9x9x4xf32, #tpu.memory_space<vmem>>, vector<2x8x8x4xf32>
    %51 = vector.shape_cast %50 : vector<2x8x8x4xf32> to vector<128x4xf32>
    %52 = arith.truncf %51 : vector<128x4xf32> to vector<128x4xbf16>
    %c7 = arith.constant 7 : index
    %c0_53 = arith.constant 0 : index
    %c0_54 = arith.constant 0 : index
    %53 = vector.load %arg5[%c7, %c0_53, %c0_54] : memref<16x4x16xbf16, #tpu.memory_space<vmem>>, vector<1x4x16xbf16>
    %54 = vector.shape_cast %53 : vector<1x4x16xbf16> to vector<4x16xbf16>
    %cst_55 = arith.constant dense<0.000000e+00> : vector<128x16xf32>
    %55 = tpu.matmul %52, %54, %cst_55 {dimension_numbers = #tpu.dot_dimension_numbers<[1], [0], [0], [1], [0, 0, 1, 1], [], []>} : vector<128x4xbf16>, vector<4x16xbf16>, vector<128x16xf32> -> vector<128x16xf32>
    %56 = arith.addf %49, %55 : vector<128x16xf32>
    %c0_56 = arith.constant 0 : index
    %c1_57 = arith.constant 1 : index
    %c0_58 = arith.constant 0 : index
    %c0_59 = arith.constant 0 : index
    %57 = vector.load %arg1[%c0_56, %c1_57, %c0_58, %c0_59] : memref<2x9x9x4xf32, #tpu.memory_space<vmem>>, vector<2x8x8x4xf32>
    %58 = vector.shape_cast %57 : vector<2x8x8x4xf32> to vector<128x4xf32>
    %59 = arith.truncf %58 : vector<128x4xf32> to vector<128x4xbf16>
    %c8 = arith.constant 8 : index
    %c0_60 = arith.constant 0 : index
    %c0_61 = arith.constant 0 : index
    %60 = vector.load %arg5[%c8, %c0_60, %c0_61] : memref<16x4x16xbf16, #tpu.memory_space<vmem>>, vector<1x4x16xbf16>
    %61 = vector.shape_cast %60 : vector<1x4x16xbf16> to vector<4x16xbf16>
    %cst_62 = arith.constant dense<0.000000e+00> : vector<128x16xf32>
    %62 = tpu.matmul %59, %61, %cst_62 {dimension_numbers = #tpu.dot_dimension_numbers<[1], [0], [0], [1], [0, 0, 1, 1], [], []>} : vector<128x4xbf16>, vector<4x16xbf16>, vector<128x16xf32> -> vector<128x16xf32>
    %63 = arith.addf %56, %62 : vector<128x16xf32>
    %c0_63 = arith.constant 0 : index
    %c1_64 = arith.constant 1 : index
    %c0_65 = arith.constant 0 : index
    %c0_66 = arith.constant 0 : index
    %64 = vector.load %arg2[%c0_63, %c1_64, %c0_65, %c0_66] : memref<2x9x9x4xf32, #tpu.memory_space<vmem>>, vector<2x8x8x4xf32>
    %65 = vector.shape_cast %64 : vector<2x8x8x4xf32> to vector<128x4xf32>
    %66 = arith.truncf %65 : vector<128x4xf32> to vector<128x4xbf16>
    %c9 = arith.constant 9 : index
    %c0_67 = arith.constant 0 : index
    %c0_68 = arith.constant 0 : index
    %67 = vector.load %arg5[%c9, %c0_67, %c0_68] : memref<16x4x16xbf16, #tpu.memory_space<vmem>>, vector<1x4x16xbf16>
    %68 = vector.shape_cast %67 : vector<1x4x16xbf16> to vector<4x16xbf16>
    %cst_69 = arith.constant dense<0.000000e+00> : vector<128x16xf32>
    %69 = tpu.matmul %66, %68, %cst_69 {dimension_numbers = #tpu.dot_dimension_numbers<[1], [0], [0], [1], [0, 0, 1, 1], [], []>} : vector<128x4xbf16>, vector<4x16xbf16>, vector<128x16xf32> -> vector<128x16xf32>
    %70 = arith.addf %63, %69 : vector<128x16xf32>
    %c0_70 = arith.constant 0 : index
    %c1_71 = arith.constant 1 : index
    %c1_72 = arith.constant 1 : index
    %c0_73 = arith.constant 0 : index
    %71 = vector.load %arg1[%c0_70, %c1_71, %c1_72, %c0_73] : memref<2x9x9x4xf32, #tpu.memory_space<vmem>>, vector<2x8x8x4xf32>
    %72 = vector.shape_cast %71 : vector<2x8x8x4xf32> to vector<128x4xf32>
    %73 = arith.truncf %72 : vector<128x4xf32> to vector<128x4xbf16>
    %c10 = arith.constant 10 : index
    %c0_74 = arith.constant 0 : index
    %c0_75 = arith.constant 0 : index
    %74 = vector.load %arg5[%c10, %c0_74, %c0_75] : memref<16x4x16xbf16, #tpu.memory_space<vmem>>, vector<1x4x16xbf16>
    %75 = vector.shape_cast %74 : vector<1x4x16xbf16> to vector<4x16xbf16>
    %cst_76 = arith.constant dense<0.000000e+00> : vector<128x16xf32>
    %76 = tpu.matmul %73, %75, %cst_76 {dimension_numbers = #tpu.dot_dimension_numbers<[1], [0], [0], [1], [0, 0, 1, 1], [], []>} : vector<128x4xbf16>, vector<4x16xbf16>, vector<128x16xf32> -> vector<128x16xf32>
    %77 = arith.addf %70, %76 : vector<128x16xf32>
    %c0_77 = arith.constant 0 : index
    %c1_78 = arith.constant 1 : index
    %c1_79 = arith.constant 1 : index
    %c0_80 = arith.constant 0 : index
    %78 = vector.load %arg2[%c0_77, %c1_78, %c1_79, %c0_80] : memref<2x9x9x4xf32, #tpu.memory_space<vmem>>, vector<2x8x8x4xf32>
    %79 = vector.shape_cast %78 : vector<2x8x8x4xf32> to vector<128x4xf32>
    %80 = arith.truncf %79 : vector<128x4xf32> to vector<128x4xbf16>
    %c11 = arith.constant 11 : index
    %c0_81 = arith.constant 0 : index
    %c0_82 = arith.constant 0 : index
    %81 = vector.load %arg5[%c11, %c0_81, %c0_82] : memref<16x4x16xbf16, #tpu.memory_space<vmem>>, vector<1x4x16xbf16>
    %82 = vector.shape_cast %81 : vector<1x4x16xbf16> to vector<4x16xbf16>
    %cst_83 = arith.constant dense<0.000000e+00> : vector<128x16xf32>
    %83 = tpu.matmul %80, %82, %cst_83 {dimension_numbers = #tpu.dot_dimension_numbers<[1], [0], [0], [1], [0, 0, 1, 1], [], []>} : vector<128x4xbf16>, vector<4x16xbf16>, vector<128x16xf32> -> vector<128x16xf32>
    %84 = arith.addf %77, %83 : vector<128x16xf32>
    %c0_84 = arith.constant 0 : index
    %c1_85 = arith.constant 1 : index
    %c0_86 = arith.constant 0 : index
    %c0_87 = arith.constant 0 : index
    %85 = vector.load %arg3[%c0_84, %c1_85, %c0_86, %c0_87] : memref<2x9x9x4xf32, #tpu.memory_space<vmem>>, vector<2x8x8x4xf32>
    %86 = vector.shape_cast %85 : vector<2x8x8x4xf32> to vector<128x4xf32>
    %87 = arith.truncf %86 : vector<128x4xf32> to vector<128x4xbf16>
    %c12 = arith.constant 12 : index
    %c0_88 = arith.constant 0 : index
    %c0_89 = arith.constant 0 : index
    %88 = vector.load %arg5[%c12, %c0_88, %c0_89] : memref<16x4x16xbf16, #tpu.memory_space<vmem>>, vector<1x4x16xbf16>
    %89 = vector.shape_cast %88 : vector<1x4x16xbf16> to vector<4x16xbf16>
    %cst_90 = arith.constant dense<0.000000e+00> : vector<128x16xf32>
    %90 = tpu.matmul %87, %89, %cst_90 {dimension_numbers = #tpu.dot_dimension_numbers<[1], [0], [0], [1], [0, 0, 1, 1], [], []>} : vector<128x4xbf16>, vector<4x16xbf16>, vector<128x16xf32> -> vector<128x16xf32>
    %91 = arith.addf %84, %90 : vector<128x16xf32>
    %c0_91 = arith.constant 0 : index
    %c1_92 = arith.constant 1 : index
    %c0_93 = arith.constant 0 : index
    %c0_94 = arith.constant 0 : index
    %92 = vector.load %arg4[%c0_91, %c1_92, %c0_93, %c0_94] : memref<2x9x9x4xf32, #tpu.memory_space<vmem>>, vector<2x8x8x4xf32>
    %93 = vector.shape_cast %92 : vector<2x8x8x4xf32> to vector<128x4xf32>
    %94 = arith.truncf %93 : vector<128x4xf32> to vector<128x4xbf16>
    %c13 = arith.constant 13 : index
    %c0_95 = arith.constant 0 : index
    %c0_96 = arith.constant 0 : index
    %95 = vector.load %arg5[%c13, %c0_95, %c0_96] : memref<16x4x16xbf16, #tpu.memory_space<vmem>>, vector<1x4x16xbf16>
    %96 = vector.shape_cast %95 : vector<1x4x16xbf16> to vector<4x16xbf16>
    %cst_97 = arith.constant dense<0.000000e+00> : vector<128x16xf32>
    %97 = tpu.matmul %94, %96, %cst_97 {dimension_numbers = #tpu.dot_dimension_numbers<[1], [0], [0], [1], [0, 0, 1, 1], [], []>} : vector<128x4xbf16>, vector<4x16xbf16>, vector<128x16xf32> -> vector<128x16xf32>
    %98 = arith.addf %91, %97 : vector<128x16xf32>
    %c0_98 = arith.constant 0 : index
    %c1_99 = arith.constant 1 : index
    %c1_100 = arith.constant 1 : index
    %c0_101 = arith.constant 0 : index
    %99 = vector.load %arg3[%c0_98, %c1_99, %c1_100, %c0_101] : memref<2x9x9x4xf32, #tpu.memory_space<vmem>>, vector<2x8x8x4xf32>
    %100 = vector.shape_cast %99 : vector<2x8x8x4xf32> to vector<128x4xf32>
    %101 = arith.truncf %100 : vector<128x4xf32> to vector<128x4xbf16>
    %c14 = arith.constant 14 : index
    %c0_102 = arith.constant 0 : index
    %c0_103 = arith.constant 0 : index
    %102 = vector.load %arg5[%c14, %c0_102, %c0_103] : memref<16x4x16xbf16, #tpu.memory_space<vmem>>, vector<1x4x16xbf16>
    %103 = vector.shape_cast %102 : vector<1x4x16xbf16> to vector<4x16xbf16>
    %cst_104 = arith.constant dense<0.000000e+00> : vector<128x16xf32>
    %104 = tpu.matmul %101, %103, %cst_104 {dimension_numbers = #tpu.dot_dimension_numbers<[1], [0], [0], [1], [0, 0, 1, 1], [], []>} : vector<128x4xbf16>, vector<4x16xbf16>, vector<128x16xf32> -> vector<128x16xf32>
    %105 = arith.addf %98, %104 : vector<128x16xf32>
    %c0_105 = arith.constant 0 : index
    %c1_106 = arith.constant 1 : index
    %c1_107 = arith.constant 1 : index
    %c0_108 = arith.constant 0 : index
    %106 = vector.load %arg4[%c0_105, %c1_106, %c1_107, %c0_108] : memref<2x9x9x4xf32, #tpu.memory_space<vmem>>, vector<2x8x8x4xf32>
    %107 = vector.shape_cast %106 : vector<2x8x8x4xf32> to vector<128x4xf32>
    %108 = arith.truncf %107 : vector<128x4xf32> to vector<128x4xbf16>
    %c15 = arith.constant 15 : index
    %c0_109 = arith.constant 0 : index
    %c0_110 = arith.constant 0 : index
    %109 = vector.load %arg5[%c15, %c0_109, %c0_110] : memref<16x4x16xbf16, #tpu.memory_space<vmem>>, vector<1x4x16xbf16>
    %110 = vector.shape_cast %109 : vector<1x4x16xbf16> to vector<4x16xbf16>
    %cst_111 = arith.constant dense<0.000000e+00> : vector<128x16xf32>
    %111 = tpu.matmul %108, %110, %cst_111 {dimension_numbers = #tpu.dot_dimension_numbers<[1], [0], [0], [1], [0, 0, 1, 1], [], []>} : vector<128x4xbf16>, vector<4x16xbf16>, vector<128x16xf32> -> vector<128x16xf32>
    %112 = arith.addf %105, %111 : vector<128x16xf32>
    %c0_112 = arith.constant 0 : index
    %c0_113 = arith.constant 0 : index
    %113 = vector.load %arg6[%c0_112, %c0_113] : memref<1x16xf32, #tpu.memory_space<vmem>>, vector<1x16xf32>
    %114 = vector.broadcast %113 : vector<1x16xf32> to vector<128x16xf32>
    %115 = arith.addf %112, %114 : vector<128x16xf32>
    %c0_114 = arith.constant 0 : index
    %c0_115 = arith.constant 0 : index
    %116 = vector.load %arg7[%c0_114, %c0_115] : memref<1x16xf32, #tpu.memory_space<vmem>>, vector<1x16xf32>
    %c0_116 = arith.constant 0 : index
    %c0_117 = arith.constant 0 : index
    %117 = vector.load %arg8[%c0_116, %c0_117] : memref<1x16xf32, #tpu.memory_space<vmem>>, vector<1x16xf32>
    %cst_118 = arith.constant dense<0.000000e+00> : vector<16xf32>
    %118 = vector.multi_reduction <add>, %115, %cst_118 [0] : vector<128x16xf32> to vector<16xf32>
    %119 = vector.shape_cast %118 : vector<16xf32> to vector<1x16xf32>
    %cst_119 = arith.constant 1.280000e+02 : f32
    %120 = vector.broadcast %cst_119 : f32 to vector<1x16xf32>
    %121 = arith.divf %119, %120 : vector<1x16xf32>
    %122 = vector.broadcast %121 : vector<1x16xf32> to vector<128x16xf32>
    %123 = arith.subf %115, %122 : vector<128x16xf32>
    %124 = arith.mulf %123, %123 : vector<128x16xf32>
    %cst_120 = arith.constant dense<0.000000e+00> : vector<16xf32>
    %125 = vector.multi_reduction <add>, %124, %cst_120 [0] : vector<128x16xf32> to vector<16xf32>
    %126 = vector.shape_cast %125 : vector<16xf32> to vector<1x16xf32>
    %cst_121 = arith.constant 1.280000e+02 : f32
    %127 = vector.broadcast %cst_121 : f32 to vector<1x16xf32>
    %128 = arith.divf %126, %127 : vector<1x16xf32>
    %129 = vector.broadcast %121 : vector<1x16xf32> to vector<128x16xf32>
    %130 = arith.subf %115, %129 : vector<128x16xf32>
    %cst_122 = arith.constant 9.99999997E-7 : f32
    %131 = vector.broadcast %cst_122 : f32 to vector<1x16xf32>
    %132 = arith.addf %128, %131 : vector<1x16xf32>
    %133 = math.rsqrt %132 : vector<1x16xf32>
    %134 = vector.broadcast %133 : vector<1x16xf32> to vector<128x16xf32>
    %135 = arith.mulf %130, %134 : vector<128x16xf32>
    %136 = vector.broadcast %116 : vector<1x16xf32> to vector<128x16xf32>
    %137 = arith.mulf %135, %136 : vector<128x16xf32>
    %138 = vector.broadcast %117 : vector<1x16xf32> to vector<128x16xf32>
    %139 = arith.addf %137, %138 : vector<128x16xf32>
    %cst_123 = arith.constant 0.000000e+00 : f32
    %140 = vector.broadcast %cst_123 : f32 to vector<128x16xf32>
    %141 = arith.maximumf %139, %140 : vector<128x16xf32>
    %cst_124 = arith.constant 0.000000e+00 : f32
    %142 = vector.broadcast %cst_124 : f32 to vector<2x10x10x16xf32>
    %c0_125 = arith.constant 0 : index
    %c0_126 = arith.constant 0 : index
    %c0_127 = arith.constant 0 : index
    %c0_128 = arith.constant 0 : index
    %143 = vector.load %arg9[%c0_125, %c0_126, %c0_127, %c0_128] : memref<2x10x10x16xf32, #tpu.memory_space<vmem>>, vector<2x10x10x16xf32>
    tpu.vector_store %arg9[%c0_125, %c0_126, %c0_127, %c0_128], %142 {strides = array<i32>} : memref<2x10x10x16xf32, #tpu.memory_space<vmem>>, vector<2x10x10x16xf32>,
    %144 = vector.shape_cast %141 : vector<128x16xf32> to vector<2x8x8x16xf32>
    %c0_129 = arith.constant 0 : index
    %c1_130 = arith.constant 1 : index
    %c1_131 = arith.constant 1 : index
    %c0_132 = arith.constant 0 : index
    %145 = vector.load %arg9[%c0_129, %c1_130, %c1_131, %c0_132] : memref<2x10x10x16xf32, #tpu.memory_space<vmem>>, vector<2x8x8x16xf32>
    tpu.vector_store %arg9[%c0_129, %c1_130, %c1_131, %c0_132], %144 {strides = array<i32>} : memref<2x10x10x16xf32, #tpu.memory_space<vmem>>, vector<2x8x8x16xf32>,
    return
  }
  func.func @transform_0(%arg0: i32) -> (i32, i32, i32, i32) {
    %c0_i32 = arith.constant 0 : i32
    %c0_i32_0 = arith.constant 0 : i32
    %c0_i32_1 = arith.constant 0 : i32
    %c0_i32_2 = arith.constant 0 : i32
    %c0_i32_3 = arith.constant 0 : i32
    return %c0_i32, %c0_i32_0, %c0_i32_1, %c0_i32_2 : i32, i32, i32, i32
  }
  func.func @transform_1(%arg0: i32) -> (i32, i32, i32, i32) {
    %c0_i32 = arith.constant 0 : i32
    %c0_i32_0 = arith.constant 0 : i32
    %c0_i32_1 = arith.constant 0 : i32
    %c0_i32_2 = arith.constant 0 : i32
    %c0_i32_3 = arith.constant 0 : i32
    return %c0_i32, %c0_i32_0, %c0_i32_1, %c0_i32_2 : i32, i32, i32, i32
  }
  func.func @transform_2(%arg0: i32) -> (i32, i32, i32, i32) {
    %c0_i32 = arith.constant 0 : i32
    %c0_i32_0 = arith.constant 0 : i32
    %c0_i32_1 = arith.constant 0 : i32
    %c0_i32_2 = arith.constant 0 : i32
    %c0_i32_3 = arith.constant 0 : i32
    return %c0_i32, %c0_i32_0, %c0_i32_1, %c0_i32_2 : i32, i32, i32, i32
  }
  func.func @transform_3(%arg0: i32) -> (i32, i32, i32, i32) {
    %c0_i32 = arith.constant 0 : i32
    %c0_i32_0 = arith.constant 0 : i32
    %c0_i32_1 = arith.constant 0 : i32
    %c0_i32_2 = arith.constant 0 : i32
    %c0_i32_3 = arith.constant 0 : i32
    return %c0_i32, %c0_i32_0, %c0_i32_1, %c0_i32_2 : i32, i32, i32, i32
  }
  func.func @transform_4(%arg0: i32) -> (i32, i32, i32) {
    %c0_i32 = arith.constant 0 : i32
    %c0_i32_0 = arith.constant 0 : i32
    %c0_i32_1 = arith.constant 0 : i32
    %c0_i32_2 = arith.constant 0 : i32
    return %c0_i32, %c0_i32_0, %c0_i32_1 : i32, i32, i32
  }
  func.func @transform_5(%arg0: i32) -> (i32, i32) {
    %c0_i32 = arith.constant 0 : i32
    %c0_i32_0 = arith.constant 0 : i32
    %c0_i32_1 = arith.constant 0 : i32
    return %c0_i32, %c0_i32_0 : i32, i32
  }
  func.func @transform_6(%arg0: i32) -> (i32, i32) {
    %c0_i32 = arith.constant 0 : i32
    %c0_i32_0 = arith.constant 0 : i32
    %c0_i32_1 = arith.constant 0 : i32
    return %c0_i32, %c0_i32_0 : i32, i32
  }
  func.func @transform_7(%arg0: i32) -> (i32, i32) {
    %c0_i32 = arith.constant 0 : i32
    %c0_i32_0 = arith.constant 0 : i32
    %c0_i32_1 = arith.constant 0 : i32
    return %c0_i32, %c0_i32_0 : i32, i32
  }
  func.func @transform_8(%arg0: i32) -> (i32, i32, i32, i32) {
    %c0_i32 = arith.constant 0 : i32
    %c0_i32_0 = arith.constant 0 : i32
    %c0_i32_1 = arith.constant 0 : i32
    %c0_i32_2 = arith.constant 0 : i32
    %c0_i32_3 = arith.constant 0 : i32
    return %c0_i32, %c0_i32_0, %c0_i32_1, %c0_i32_2 : i32, i32, i32, i32
  }
}

module attributes {stable_mosaic.version = 11 : i64} {
  func.func @_tail_kernel(%arg0: i32, %arg1: memref<2x10x10x16xf32, #tpu.memory_space<vmem>>, %arg2: memref<9x16x32xbf16, #tpu.memory_space<vmem>>, %arg3: memref<1x32xf32, #tpu.memory_space<vmem>>, %arg4: memref<9x32x32xbf16, #tpu.memory_space<vmem>>, %arg5: memref<1x32xf32, #tpu.memory_space<vmem>>, %arg6: memref<1x32xf32, #tpu.memory_space<vmem>>, %arg7: memref<1x32xf32, #tpu.memory_space<vmem>>, %arg8: memref<32x32xbf16, #tpu.memory_space<vmem>>, %arg9: memref<1x32xf32, #tpu.memory_space<vmem>>, %arg10: memref<1x32xf32, #tpu.memory_space<vmem>>, %arg11: memref<1x32xf32, #tpu.memory_space<vmem>>, %arg12: memref<9x32x32xbf16, #tpu.memory_space<vmem>>, %arg13: memref<1x32xf32, #tpu.memory_space<vmem>>, %arg14: memref<1x32xf32, #tpu.memory_space<vmem>>, %arg15: memref<1x32xf32, #tpu.memory_space<vmem>>, %arg16: memref<32x32xbf16, #tpu.memory_space<vmem>>, %arg17: memref<1x32xf32, #tpu.memory_space<vmem>>, %arg18: memref<1x32xf32, #tpu.memory_space<vmem>>, %arg19: memref<1x32xf32, #tpu.memory_space<vmem>>, %arg20: memref<2x8x8x32xf32, #tpu.memory_space<vmem>>, %arg21: memref<2x10x10x32xf32, #tpu.memory_space<vmem>>) attributes {dimension_semantics = [#tpu.dimension_semantics<arbitrary>], iteration_bounds = array<i64: 1>, scalar_prefetch = 0 : i64, scratch_operands = 1 : i64, tpu.core_type = #tpu.core_type<tc>, window_params = [{pipeline_mode = #tpu.pipeline_mode<synchronous>, transform_indices = @transform_0, window_bounds = array<i64: 2, 10, 10, 16>}, {pipeline_mode = #tpu.pipeline_mode<synchronous>, transform_indices = @transform_1, window_bounds = array<i64: 9, 16, 32>}, {pipeline_mode = #tpu.pipeline_mode<synchronous>, transform_indices = @transform_2, window_bounds = array<i64: 1, 32>}, {pipeline_mode = #tpu.pipeline_mode<synchronous>, transform_indices = @transform_3, window_bounds = array<i64: 9, 32, 32>}, {pipeline_mode = #tpu.pipeline_mode<synchronous>, transform_indices = @transform_4, window_bounds = array<i64: 1, 32>}, {pipeline_mode = #tpu.pipeline_mode<synchronous>, transform_indices = @transform_5, window_bounds = array<i64: 1, 32>}, {pipeline_mode = #tpu.pipeline_mode<synchronous>, transform_indices = @transform_6, window_bounds = array<i64: 1, 32>}, {pipeline_mode = #tpu.pipeline_mode<synchronous>, transform_indices = @transform_7, window_bounds = array<i64: 32, 32>}, {pipeline_mode = #tpu.pipeline_mode<synchronous>, transform_indices = @transform_8, window_bounds = array<i64: 1, 32>}, {pipeline_mode = #tpu.pipeline_mode<synchronous>, transform_indices = @transform_9, window_bounds = array<i64: 1, 32>}, {pipeline_mode = #tpu.pipeline_mode<synchronous>, transform_indices = @transform_10, window_bounds = array<i64: 1, 32>}, {pipeline_mode = #tpu.pipeline_mode<synchronous>, transform_indices = @transform_11, window_bounds = array<i64: 9, 32, 32>}, {pipeline_mode = #tpu.pipeline_mode<synchronous>, transform_indices = @transform_12, window_bounds = array<i64: 1, 32>}, {pipeline_mode = #tpu.pipeline_mode<synchronous>, transform_indices = @transform_13, window_bounds = array<i64: 1, 32>}, {pipeline_mode = #tpu.pipeline_mode<synchronous>, transform_indices = @transform_14, window_bounds = array<i64: 1, 32>}, {pipeline_mode = #tpu.pipeline_mode<synchronous>, transform_indices = @transform_15, window_bounds = array<i64: 32, 32>}, {pipeline_mode = #tpu.pipeline_mode<synchronous>, transform_indices = @transform_16, window_bounds = array<i64: 1, 32>}, {pipeline_mode = #tpu.pipeline_mode<synchronous>, transform_indices = @transform_17, window_bounds = array<i64: 1, 32>}, {pipeline_mode = #tpu.pipeline_mode<synchronous>, transform_indices = @transform_18, window_bounds = array<i64: 1, 32>}, {pipeline_mode = #tpu.pipeline_mode<synchronous>, transform_indices = @transform_19, window_bounds = array<i64: 2, 8, 8, 32>}]} {
    %cst = arith.constant 0.000000e+00 : f32
    %0 = vector.broadcast %cst : f32 to vector<128x32xf32>
    %c0 = arith.constant 0 : index
    %c0_0 = arith.constant 0 : index
    %c0_1 = arith.constant 0 : index
    %c0_2 = arith.constant 0 : index
    %1 = vector.load %arg1[%c0, %c0_0, %c0_1, %c0_2] : memref<2x10x10x16xf32, #tpu.memory_space<vmem>>, vector<2x8x8x16xf32>
    %2 = vector.shape_cast %1 : vector<2x8x8x16xf32> to vector<128x16xf32>
    %3 = arith.truncf %2 : vector<128x16xf32> to vector<128x16xbf16>
    %c0_3 = arith.constant 0 : index
    %c0_4 = arith.constant 0 : index
    %c0_5 = arith.constant 0 : index
    %4 = vector.load %arg2[%c0_3, %c0_4, %c0_5] : memref<9x16x32xbf16, #tpu.memory_space<vmem>>, vector<1x16x32xbf16>
    %5 = vector.shape_cast %4 : vector<1x16x32xbf16> to vector<16x32xbf16>
    %cst_6 = arith.constant dense<0.000000e+00> : vector<128x32xf32>
    %6 = tpu.matmul %3, %5, %cst_6 {dimension_numbers = #tpu.dot_dimension_numbers<[1], [0], [0], [1], [0, 0, 1, 1], [], []>} : vector<128x16xbf16>, vector<16x32xbf16>, vector<128x32xf32> -> vector<128x32xf32>
    %7 = arith.addf %0, %6 : vector<128x32xf32>
    %c0_7 = arith.constant 0 : index
    %c0_8 = arith.constant 0 : index
    %c1 = arith.constant 1 : index
    %c0_9 = arith.constant 0 : index
    %8 = vector.load %arg1[%c0_7, %c0_8, %c1, %c0_9] : memref<2x10x10x16xf32, #tpu.memory_space<vmem>>, vector<2x8x8x16xf32>
    %9 = vector.shape_cast %8 : vector<2x8x8x16xf32> to vector<128x16xf32>
    %10 = arith.truncf %9 : vector<128x16xf32> to vector<128x16xbf16>
    %c1_10 = arith.constant 1 : index
    %c0_11 = arith.constant 0 : index
    %c0_12 = arith.constant 0 : index
    %11 = vector.load %arg2[%c1_10, %c0_11, %c0_12] : memref<9x16x32xbf16, #tpu.memory_space<vmem>>, vector<1x16x32xbf16>
    %12 = vector.shape_cast %11 : vector<1x16x32xbf16> to vector<16x32xbf16>
    %cst_13 = arith.constant dense<0.000000e+00> : vector<128x32xf32>
    %13 = tpu.matmul %10, %12, %cst_13 {dimension_numbers = #tpu.dot_dimension_numbers<[1], [0], [0], [1], [0, 0, 1, 1], [], []>} : vector<128x16xbf16>, vector<16x32xbf16>, vector<128x32xf32> -> vector<128x32xf32>
    %14 = arith.addf %7, %13 : vector<128x32xf32>
    %c0_14 = arith.constant 0 : index
    %c0_15 = arith.constant 0 : index
    %c2 = arith.constant 2 : index
    %c0_16 = arith.constant 0 : index
    %15 = vector.load %arg1[%c0_14, %c0_15, %c2, %c0_16] : memref<2x10x10x16xf32, #tpu.memory_space<vmem>>, vector<2x8x8x16xf32>
    %16 = vector.shape_cast %15 : vector<2x8x8x16xf32> to vector<128x16xf32>
    %17 = arith.truncf %16 : vector<128x16xf32> to vector<128x16xbf16>
    %c2_17 = arith.constant 2 : index
    %c0_18 = arith.constant 0 : index
    %c0_19 = arith.constant 0 : index
    %18 = vector.load %arg2[%c2_17, %c0_18, %c0_19] : memref<9x16x32xbf16, #tpu.memory_space<vmem>>, vector<1x16x32xbf16>
    %19 = vector.shape_cast %18 : vector<1x16x32xbf16> to vector<16x32xbf16>
    %cst_20 = arith.constant dense<0.000000e+00> : vector<128x32xf32>
    %20 = tpu.matmul %17, %19, %cst_20 {dimension_numbers = #tpu.dot_dimension_numbers<[1], [0], [0], [1], [0, 0, 1, 1], [], []>} : vector<128x16xbf16>, vector<16x32xbf16>, vector<128x32xf32> -> vector<128x32xf32>
    %21 = arith.addf %14, %20 : vector<128x32xf32>
    %c0_21 = arith.constant 0 : index
    %c1_22 = arith.constant 1 : index
    %c0_23 = arith.constant 0 : index
    %c0_24 = arith.constant 0 : index
    %22 = vector.load %arg1[%c0_21, %c1_22, %c0_23, %c0_24] : memref<2x10x10x16xf32, #tpu.memory_space<vmem>>, vector<2x8x8x16xf32>
    %23 = vector.shape_cast %22 : vector<2x8x8x16xf32> to vector<128x16xf32>
    %24 = arith.truncf %23 : vector<128x16xf32> to vector<128x16xbf16>
    %c3 = arith.constant 3 : index
    %c0_25 = arith.constant 0 : index
    %c0_26 = arith.constant 0 : index
    %25 = vector.load %arg2[%c3, %c0_25, %c0_26] : memref<9x16x32xbf16, #tpu.memory_space<vmem>>, vector<1x16x32xbf16>
    %26 = vector.shape_cast %25 : vector<1x16x32xbf16> to vector<16x32xbf16>
    %cst_27 = arith.constant dense<0.000000e+00> : vector<128x32xf32>
    %27 = tpu.matmul %24, %26, %cst_27 {dimension_numbers = #tpu.dot_dimension_numbers<[1], [0], [0], [1], [0, 0, 1, 1], [], []>} : vector<128x16xbf16>, vector<16x32xbf16>, vector<128x32xf32> -> vector<128x32xf32>
    %28 = arith.addf %21, %27 : vector<128x32xf32>
    %c0_28 = arith.constant 0 : index
    %c1_29 = arith.constant 1 : index
    %c1_30 = arith.constant 1 : index
    %c0_31 = arith.constant 0 : index
    %29 = vector.load %arg1[%c0_28, %c1_29, %c1_30, %c0_31] : memref<2x10x10x16xf32, #tpu.memory_space<vmem>>, vector<2x8x8x16xf32>
    %30 = vector.shape_cast %29 : vector<2x8x8x16xf32> to vector<128x16xf32>
    %31 = arith.truncf %30 : vector<128x16xf32> to vector<128x16xbf16>
    %c4 = arith.constant 4 : index
    %c0_32 = arith.constant 0 : index
    %c0_33 = arith.constant 0 : index
    %32 = vector.load %arg2[%c4, %c0_32, %c0_33] : memref<9x16x32xbf16, #tpu.memory_space<vmem>>, vector<1x16x32xbf16>
    %33 = vector.shape_cast %32 : vector<1x16x32xbf16> to vector<16x32xbf16>
    %cst_34 = arith.constant dense<0.000000e+00> : vector<128x32xf32>
    %34 = tpu.matmul %31, %33, %cst_34 {dimension_numbers = #tpu.dot_dimension_numbers<[1], [0], [0], [1], [0, 0, 1, 1], [], []>} : vector<128x16xbf16>, vector<16x32xbf16>, vector<128x32xf32> -> vector<128x32xf32>
    %35 = arith.addf %28, %34 : vector<128x32xf32>
    %c0_35 = arith.constant 0 : index
    %c1_36 = arith.constant 1 : index
    %c2_37 = arith.constant 2 : index
    %c0_38 = arith.constant 0 : index
    %36 = vector.load %arg1[%c0_35, %c1_36, %c2_37, %c0_38] : memref<2x10x10x16xf32, #tpu.memory_space<vmem>>, vector<2x8x8x16xf32>
    %37 = vector.shape_cast %36 : vector<2x8x8x16xf32> to vector<128x16xf32>
    %38 = arith.truncf %37 : vector<128x16xf32> to vector<128x16xbf16>
    %c5 = arith.constant 5 : index
    %c0_39 = arith.constant 0 : index
    %c0_40 = arith.constant 0 : index
    %39 = vector.load %arg2[%c5, %c0_39, %c0_40] : memref<9x16x32xbf16, #tpu.memory_space<vmem>>, vector<1x16x32xbf16>
    %40 = vector.shape_cast %39 : vector<1x16x32xbf16> to vector<16x32xbf16>
    %cst_41 = arith.constant dense<0.000000e+00> : vector<128x32xf32>
    %41 = tpu.matmul %38, %40, %cst_41 {dimension_numbers = #tpu.dot_dimension_numbers<[1], [0], [0], [1], [0, 0, 1, 1], [], []>} : vector<128x16xbf16>, vector<16x32xbf16>, vector<128x32xf32> -> vector<128x32xf32>
    %42 = arith.addf %35, %41 : vector<128x32xf32>
    %c0_42 = arith.constant 0 : index
    %c2_43 = arith.constant 2 : index
    %c0_44 = arith.constant 0 : index
    %c0_45 = arith.constant 0 : index
    %43 = vector.load %arg1[%c0_42, %c2_43, %c0_44, %c0_45] : memref<2x10x10x16xf32, #tpu.memory_space<vmem>>, vector<2x8x8x16xf32>
    %44 = vector.shape_cast %43 : vector<2x8x8x16xf32> to vector<128x16xf32>
    %45 = arith.truncf %44 : vector<128x16xf32> to vector<128x16xbf16>
    %c6 = arith.constant 6 : index
    %c0_46 = arith.constant 0 : index
    %c0_47 = arith.constant 0 : index
    %46 = vector.load %arg2[%c6, %c0_46, %c0_47] : memref<9x16x32xbf16, #tpu.memory_space<vmem>>, vector<1x16x32xbf16>
    %47 = vector.shape_cast %46 : vector<1x16x32xbf16> to vector<16x32xbf16>
    %cst_48 = arith.constant dense<0.000000e+00> : vector<128x32xf32>
    %48 = tpu.matmul %45, %47, %cst_48 {dimension_numbers = #tpu.dot_dimension_numbers<[1], [0], [0], [1], [0, 0, 1, 1], [], []>} : vector<128x16xbf16>, vector<16x32xbf16>, vector<128x32xf32> -> vector<128x32xf32>
    %49 = arith.addf %42, %48 : vector<128x32xf32>
    %c0_49 = arith.constant 0 : index
    %c2_50 = arith.constant 2 : index
    %c1_51 = arith.constant 1 : index
    %c0_52 = arith.constant 0 : index
    %50 = vector.load %arg1[%c0_49, %c2_50, %c1_51, %c0_52] : memref<2x10x10x16xf32, #tpu.memory_space<vmem>>, vector<2x8x8x16xf32>
    %51 = vector.shape_cast %50 : vector<2x8x8x16xf32> to vector<128x16xf32>
    %52 = arith.truncf %51 : vector<128x16xf32> to vector<128x16xbf16>
    %c7 = arith.constant 7 : index
    %c0_53 = arith.constant 0 : index
    %c0_54 = arith.constant 0 : index
    %53 = vector.load %arg2[%c7, %c0_53, %c0_54] : memref<9x16x32xbf16, #tpu.memory_space<vmem>>, vector<1x16x32xbf16>
    %54 = vector.shape_cast %53 : vector<1x16x32xbf16> to vector<16x32xbf16>
    %cst_55 = arith.constant dense<0.000000e+00> : vector<128x32xf32>
    %55 = tpu.matmul %52, %54, %cst_55 {dimension_numbers = #tpu.dot_dimension_numbers<[1], [0], [0], [1], [0, 0, 1, 1], [], []>} : vector<128x16xbf16>, vector<16x32xbf16>, vector<128x32xf32> -> vector<128x32xf32>
    %56 = arith.addf %49, %55 : vector<128x32xf32>
    %c0_56 = arith.constant 0 : index
    %c2_57 = arith.constant 2 : index
    %c2_58 = arith.constant 2 : index
    %c0_59 = arith.constant 0 : index
    %57 = vector.load %arg1[%c0_56, %c2_57, %c2_58, %c0_59] : memref<2x10x10x16xf32, #tpu.memory_space<vmem>>, vector<2x8x8x16xf32>
    %58 = vector.shape_cast %57 : vector<2x8x8x16xf32> to vector<128x16xf32>
    %59 = arith.truncf %58 : vector<128x16xf32> to vector<128x16xbf16>
    %c8 = arith.constant 8 : index
    %c0_60 = arith.constant 0 : index
    %c0_61 = arith.constant 0 : index
    %60 = vector.load %arg2[%c8, %c0_60, %c0_61] : memref<9x16x32xbf16, #tpu.memory_space<vmem>>, vector<1x16x32xbf16>
    %61 = vector.shape_cast %60 : vector<1x16x32xbf16> to vector<16x32xbf16>
    %cst_62 = arith.constant dense<0.000000e+00> : vector<128x32xf32>
    %62 = tpu.matmul %59, %61, %cst_62 {dimension_numbers = #tpu.dot_dimension_numbers<[1], [0], [0], [1], [0, 0, 1, 1], [], []>} : vector<128x16xbf16>, vector<16x32xbf16>, vector<128x32xf32> -> vector<128x32xf32>
    %63 = arith.addf %56, %62 : vector<128x32xf32>
    %c0_63 = arith.constant 0 : index
    %c0_64 = arith.constant 0 : index
    %64 = vector.load %arg3[%c0_63, %c0_64] : memref<1x32xf32, #tpu.memory_space<vmem>>, vector<1x32xf32>
    %65 = vector.broadcast %64 : vector<1x32xf32> to vector<128x32xf32>
    %66 = arith.addf %63, %65 : vector<128x32xf32>
    %cst_65 = arith.constant 0.000000e+00 : f32
    %67 = vector.broadcast %cst_65 : f32 to vector<2x10x10x32xf32>
    %c0_66 = arith.constant 0 : index
    %c0_67 = arith.constant 0 : index
    %c0_68 = arith.constant 0 : index
    %c0_69 = arith.constant 0 : index
    %68 = vector.load %arg21[%c0_66, %c0_67, %c0_68, %c0_69] : memref<2x10x10x32xf32, #tpu.memory_space<vmem>>, vector<2x10x10x32xf32>
    tpu.vector_store %arg21[%c0_66, %c0_67, %c0_68, %c0_69], %67 {strides = array<i32>} : memref<2x10x10x32xf32, #tpu.memory_space<vmem>>, vector<2x10x10x32xf32>,
    %cst_70 = arith.constant 0.000000e+00 : f32
    %69 = vector.broadcast %cst_70 : f32 to vector<128x32xf32>
    %70 = arith.maximumf %66, %69 : vector<128x32xf32>
    %71 = vector.shape_cast %70 : vector<128x32xf32> to vector<2x8x8x32xf32>
    %c0_71 = arith.constant 0 : index
    %c1_72 = arith.constant 1 : index
    %c1_73 = arith.constant 1 : index
    %c0_74 = arith.constant 0 : index
    %72 = vector.load %arg21[%c0_71, %c1_72, %c1_73, %c0_74] : memref<2x10x10x32xf32, #tpu.memory_space<vmem>>, vector<2x8x8x32xf32>
    tpu.vector_store %arg21[%c0_71, %c1_72, %c1_73, %c0_74], %71 {strides = array<i32>} : memref<2x10x10x32xf32, #tpu.memory_space<vmem>>, vector<2x8x8x32xf32>,
    %cst_75 = arith.constant 0.000000e+00 : f32
    %73 = vector.broadcast %cst_75 : f32 to vector<128x32xf32>
    %c0_76 = arith.constant 0 : index
    %c0_77 = arith.constant 0 : index
    %c0_78 = arith.constant 0 : index
    %c0_79 = arith.constant 0 : index
    %74 = vector.load %arg21[%c0_76, %c0_77, %c0_78, %c0_79] : memref<2x10x10x32xf32, #tpu.memory_space<vmem>>, vector<2x8x8x32xf32>
    %75 = vector.shape_cast %74 : vector<2x8x8x32xf32> to vector<128x32xf32>
    %76 = arith.truncf %75 : vector<128x32xf32> to vector<128x32xbf16>
    %c0_80 = arith.constant 0 : index
    %c0_81 = arith.constant 0 : index
    %c0_82 = arith.constant 0 : index
    %77 = vector.load %arg4[%c0_80, %c0_81, %c0_82] : memref<9x32x32xbf16, #tpu.memory_space<vmem>>, vector<1x32x32xbf16>
    %78 = vector.shape_cast %77 : vector<1x32x32xbf16> to vector<32x32xbf16>
    %cst_83 = arith.constant dense<0.000000e+00> : vector<128x32xf32>
    %79 = tpu.matmul %76, %78, %cst_83 {dimension_numbers = #tpu.dot_dimension_numbers<[1], [0], [0], [1], [0, 0, 1, 1], [], []>} : vector<128x32xbf16>, vector<32x32xbf16>, vector<128x32xf32> -> vector<128x32xf32>
    %80 = arith.addf %73, %79 : vector<128x32xf32>
    %c0_84 = arith.constant 0 : index
    %c0_85 = arith.constant 0 : index
    %c1_86 = arith.constant 1 : index
    %c0_87 = arith.constant 0 : index
    %81 = vector.load %arg21[%c0_84, %c0_85, %c1_86, %c0_87] : memref<2x10x10x32xf32, #tpu.memory_space<vmem>>, vector<2x8x8x32xf32>
    %82 = vector.shape_cast %81 : vector<2x8x8x32xf32> to vector<128x32xf32>
    %83 = arith.truncf %82 : vector<128x32xf32> to vector<128x32xbf16>
    %c1_88 = arith.constant 1 : index
    %c0_89 = arith.constant 0 : index
    %c0_90 = arith.constant 0 : index
    %84 = vector.load %arg4[%c1_88, %c0_89, %c0_90] : memref<9x32x32xbf16, #tpu.memory_space<vmem>>, vector<1x32x32xbf16>
    %85 = vector.shape_cast %84 : vector<1x32x32xbf16> to vector<32x32xbf16>
    %cst_91 = arith.constant dense<0.000000e+00> : vector<128x32xf32>
    %86 = tpu.matmul %83, %85, %cst_91 {dimension_numbers = #tpu.dot_dimension_numbers<[1], [0], [0], [1], [0, 0, 1, 1], [], []>} : vector<128x32xbf16>, vector<32x32xbf16>, vector<128x32xf32> -> vector<128x32xf32>
    %87 = arith.addf %80, %86 : vector<128x32xf32>
    %c0_92 = arith.constant 0 : index
    %c0_93 = arith.constant 0 : index
    %c2_94 = arith.constant 2 : index
    %c0_95 = arith.constant 0 : index
    %88 = vector.load %arg21[%c0_92, %c0_93, %c2_94, %c0_95] : memref<2x10x10x32xf32, #tpu.memory_space<vmem>>, vector<2x8x8x32xf32>
    %89 = vector.shape_cast %88 : vector<2x8x8x32xf32> to vector<128x32xf32>
    %90 = arith.truncf %89 : vector<128x32xf32> to vector<128x32xbf16>
    %c2_96 = arith.constant 2 : index
    %c0_97 = arith.constant 0 : index
    %c0_98 = arith.constant 0 : index
    %91 = vector.load %arg4[%c2_96, %c0_97, %c0_98] : memref<9x32x32xbf16, #tpu.memory_space<vmem>>, vector<1x32x32xbf16>
    %92 = vector.shape_cast %91 : vector<1x32x32xbf16> to vector<32x32xbf16>
    %cst_99 = arith.constant dense<0.000000e+00> : vector<128x32xf32>
    %93 = tpu.matmul %90, %92, %cst_99 {dimension_numbers = #tpu.dot_dimension_numbers<[1], [0], [0], [1], [0, 0, 1, 1], [], []>} : vector<128x32xbf16>, vector<32x32xbf16>, vector<128x32xf32> -> vector<128x32xf32>
    %94 = arith.addf %87, %93 : vector<128x32xf32>
    %c0_100 = arith.constant 0 : index
    %c1_101 = arith.constant 1 : index
    %c0_102 = arith.constant 0 : index
    %c0_103 = arith.constant 0 : index
    %95 = vector.load %arg21[%c0_100, %c1_101, %c0_102, %c0_103] : memref<2x10x10x32xf32, #tpu.memory_space<vmem>>, vector<2x8x8x32xf32>
    %96 = vector.shape_cast %95 : vector<2x8x8x32xf32> to vector<128x32xf32>
    %97 = arith.truncf %96 : vector<128x32xf32> to vector<128x32xbf16>
    %c3_104 = arith.constant 3 : index
    %c0_105 = arith.constant 0 : index
    %c0_106 = arith.constant 0 : index
    %98 = vector.load %arg4[%c3_104, %c0_105, %c0_106] : memref<9x32x32xbf16, #tpu.memory_space<vmem>>, vector<1x32x32xbf16>
    %99 = vector.shape_cast %98 : vector<1x32x32xbf16> to vector<32x32xbf16>
    %cst_107 = arith.constant dense<0.000000e+00> : vector<128x32xf32>
    %100 = tpu.matmul %97, %99, %cst_107 {dimension_numbers = #tpu.dot_dimension_numbers<[1], [0], [0], [1], [0, 0, 1, 1], [], []>} : vector<128x32xbf16>, vector<32x32xbf16>, vector<128x32xf32> -> vector<128x32xf32>
    %101 = arith.addf %94, %100 : vector<128x32xf32>
    %c0_108 = arith.constant 0 : index
    %c1_109 = arith.constant 1 : index
    %c1_110 = arith.constant 1 : index
    %c0_111 = arith.constant 0 : index
    %102 = vector.load %arg21[%c0_108, %c1_109, %c1_110, %c0_111] : memref<2x10x10x32xf32, #tpu.memory_space<vmem>>, vector<2x8x8x32xf32>
    %103 = vector.shape_cast %102 : vector<2x8x8x32xf32> to vector<128x32xf32>
    %104 = arith.truncf %103 : vector<128x32xf32> to vector<128x32xbf16>
    %c4_112 = arith.constant 4 : index
    %c0_113 = arith.constant 0 : index
    %c0_114 = arith.constant 0 : index
    %105 = vector.load %arg4[%c4_112, %c0_113, %c0_114] : memref<9x32x32xbf16, #tpu.memory_space<vmem>>, vector<1x32x32xbf16>
    %106 = vector.shape_cast %105 : vector<1x32x32xbf16> to vector<32x32xbf16>
    %cst_115 = arith.constant dense<0.000000e+00> : vector<128x32xf32>
    %107 = tpu.matmul %104, %106, %cst_115 {dimension_numbers = #tpu.dot_dimension_numbers<[1], [0], [0], [1], [0, 0, 1, 1], [], []>} : vector<128x32xbf16>, vector<32x32xbf16>, vector<128x32xf32> -> vector<128x32xf32>
    %108 = arith.addf %101, %107 : vector<128x32xf32>
    %c0_116 = arith.constant 0 : index
    %c1_117 = arith.constant 1 : index
    %c2_118 = arith.constant 2 : index
    %c0_119 = arith.constant 0 : index
    %109 = vector.load %arg21[%c0_116, %c1_117, %c2_118, %c0_119] : memref<2x10x10x32xf32, #tpu.memory_space<vmem>>, vector<2x8x8x32xf32>
    %110 = vector.shape_cast %109 : vector<2x8x8x32xf32> to vector<128x32xf32>
    %111 = arith.truncf %110 : vector<128x32xf32> to vector<128x32xbf16>
    %c5_120 = arith.constant 5 : index
    %c0_121 = arith.constant 0 : index
    %c0_122 = arith.constant 0 : index
    %112 = vector.load %arg4[%c5_120, %c0_121, %c0_122] : memref<9x32x32xbf16, #tpu.memory_space<vmem>>, vector<1x32x32xbf16>
    %113 = vector.shape_cast %112 : vector<1x32x32xbf16> to vector<32x32xbf16>
    %cst_123 = arith.constant dense<0.000000e+00> : vector<128x32xf32>
    %114 = tpu.matmul %111, %113, %cst_123 {dimension_numbers = #tpu.dot_dimension_numbers<[1], [0], [0], [1], [0, 0, 1, 1], [], []>} : vector<128x32xbf16>, vector<32x32xbf16>, vector<128x32xf32> -> vector<128x32xf32>
    %115 = arith.addf %108, %114 : vector<128x32xf32>
    %c0_124 = arith.constant 0 : index
    %c2_125 = arith.constant 2 : index
    %c0_126 = arith.constant 0 : index
    %c0_127 = arith.constant 0 : index
    %116 = vector.load %arg21[%c0_124, %c2_125, %c0_126, %c0_127] : memref<2x10x10x32xf32, #tpu.memory_space<vmem>>, vector<2x8x8x32xf32>
    %117 = vector.shape_cast %116 : vector<2x8x8x32xf32> to vector<128x32xf32>
    %118 = arith.truncf %117 : vector<128x32xf32> to vector<128x32xbf16>
    %c6_128 = arith.constant 6 : index
    %c0_129 = arith.constant 0 : index
    %c0_130 = arith.constant 0 : index
    %119 = vector.load %arg4[%c6_128, %c0_129, %c0_130] : memref<9x32x32xbf16, #tpu.memory_space<vmem>>, vector<1x32x32xbf16>
    %120 = vector.shape_cast %119 : vector<1x32x32xbf16> to vector<32x32xbf16>
    %cst_131 = arith.constant dense<0.000000e+00> : vector<128x32xf32>
    %121 = tpu.matmul %118, %120, %cst_131 {dimension_numbers = #tpu.dot_dimension_numbers<[1], [0], [0], [1], [0, 0, 1, 1], [], []>} : vector<128x32xbf16>, vector<32x32xbf16>, vector<128x32xf32> -> vector<128x32xf32>
    %122 = arith.addf %115, %121 : vector<128x32xf32>
    %c0_132 = arith.constant 0 : index
    %c2_133 = arith.constant 2 : index
    %c1_134 = arith.constant 1 : index
    %c0_135 = arith.constant 0 : index
    %123 = vector.load %arg21[%c0_132, %c2_133, %c1_134, %c0_135] : memref<2x10x10x32xf32, #tpu.memory_space<vmem>>, vector<2x8x8x32xf32>
    %124 = vector.shape_cast %123 : vector<2x8x8x32xf32> to vector<128x32xf32>
    %125 = arith.truncf %124 : vector<128x32xf32> to vector<128x32xbf16>
    %c7_136 = arith.constant 7 : index
    %c0_137 = arith.constant 0 : index
    %c0_138 = arith.constant 0 : index
    %126 = vector.load %arg4[%c7_136, %c0_137, %c0_138] : memref<9x32x32xbf16, #tpu.memory_space<vmem>>, vector<1x32x32xbf16>
    %127 = vector.shape_cast %126 : vector<1x32x32xbf16> to vector<32x32xbf16>
    %cst_139 = arith.constant dense<0.000000e+00> : vector<128x32xf32>
    %128 = tpu.matmul %125, %127, %cst_139 {dimension_numbers = #tpu.dot_dimension_numbers<[1], [0], [0], [1], [0, 0, 1, 1], [], []>} : vector<128x32xbf16>, vector<32x32xbf16>, vector<128x32xf32> -> vector<128x32xf32>
    %129 = arith.addf %122, %128 : vector<128x32xf32>
    %c0_140 = arith.constant 0 : index
    %c2_141 = arith.constant 2 : index
    %c2_142 = arith.constant 2 : index
    %c0_143 = arith.constant 0 : index
    %130 = vector.load %arg21[%c0_140, %c2_141, %c2_142, %c0_143] : memref<2x10x10x32xf32, #tpu.memory_space<vmem>>, vector<2x8x8x32xf32>
    %131 = vector.shape_cast %130 : vector<2x8x8x32xf32> to vector<128x32xf32>
    %132 = arith.truncf %131 : vector<128x32xf32> to vector<128x32xbf16>
    %c8_144 = arith.constant 8 : index
    %c0_145 = arith.constant 0 : index
    %c0_146 = arith.constant 0 : index
    %133 = vector.load %arg4[%c8_144, %c0_145, %c0_146] : memref<9x32x32xbf16, #tpu.memory_space<vmem>>, vector<1x32x32xbf16>
    %134 = vector.shape_cast %133 : vector<1x32x32xbf16> to vector<32x32xbf16>
    %cst_147 = arith.constant dense<0.000000e+00> : vector<128x32xf32>
    %135 = tpu.matmul %132, %134, %cst_147 {dimension_numbers = #tpu.dot_dimension_numbers<[1], [0], [0], [1], [0, 0, 1, 1], [], []>} : vector<128x32xbf16>, vector<32x32xbf16>, vector<128x32xf32> -> vector<128x32xf32>
    %136 = arith.addf %129, %135 : vector<128x32xf32>
    %c0_148 = arith.constant 0 : index
    %c0_149 = arith.constant 0 : index
    %137 = vector.load %arg5[%c0_148, %c0_149] : memref<1x32xf32, #tpu.memory_space<vmem>>, vector<1x32xf32>
    %138 = vector.broadcast %137 : vector<1x32xf32> to vector<128x32xf32>
    %139 = arith.addf %136, %138 : vector<128x32xf32>
    %c0_150 = arith.constant 0 : index
    %c0_151 = arith.constant 0 : index
    %140 = vector.load %arg6[%c0_150, %c0_151] : memref<1x32xf32, #tpu.memory_space<vmem>>, vector<1x32xf32>
    %c0_152 = arith.constant 0 : index
    %c0_153 = arith.constant 0 : index
    %141 = vector.load %arg7[%c0_152, %c0_153] : memref<1x32xf32, #tpu.memory_space<vmem>>, vector<1x32xf32>
    %cst_154 = arith.constant dense<0.000000e+00> : vector<32xf32>
    %142 = vector.multi_reduction <add>, %139, %cst_154 [0] : vector<128x32xf32> to vector<32xf32>
    %143 = vector.shape_cast %142 : vector<32xf32> to vector<1x32xf32>
    %cst_155 = arith.constant 1.280000e+02 : f32
    %144 = vector.broadcast %cst_155 : f32 to vector<1x32xf32>
    %145 = arith.divf %143, %144 : vector<1x32xf32>
    %146 = vector.broadcast %145 : vector<1x32xf32> to vector<128x32xf32>
    %147 = arith.subf %139, %146 : vector<128x32xf32>
    %148 = arith.mulf %147, %147 : vector<128x32xf32>
    %cst_156 = arith.constant dense<0.000000e+00> : vector<32xf32>
    %149 = vector.multi_reduction <add>, %148, %cst_156 [0] : vector<128x32xf32> to vector<32xf32>
    %150 = vector.shape_cast %149 : vector<32xf32> to vector<1x32xf32>
    %cst_157 = arith.constant 1.280000e+02 : f32
    %151 = vector.broadcast %cst_157 : f32 to vector<1x32xf32>
    %152 = arith.divf %150, %151 : vector<1x32xf32>
    %153 = vector.broadcast %145 : vector<1x32xf32> to vector<128x32xf32>
    %154 = arith.subf %139, %153 : vector<128x32xf32>
    %cst_158 = arith.constant 9.99999997E-7 : f32
    %155 = vector.broadcast %cst_158 : f32 to vector<1x32xf32>
    %156 = arith.addf %152, %155 : vector<1x32xf32>
    %157 = math.rsqrt %156 : vector<1x32xf32>
    %158 = vector.broadcast %157 : vector<1x32xf32> to vector<128x32xf32>
    %159 = arith.mulf %154, %158 : vector<128x32xf32>
    %160 = vector.broadcast %140 : vector<1x32xf32> to vector<128x32xf32>
    %161 = arith.mulf %159, %160 : vector<128x32xf32>
    %162 = vector.broadcast %141 : vector<1x32xf32> to vector<128x32xf32>
    %163 = arith.addf %161, %162 : vector<128x32xf32>
    %cst_159 = arith.constant 0.000000e+00 : f32
    %164 = vector.broadcast %cst_159 : f32 to vector<128x32xf32>
    %165 = arith.maximumf %163, %164 : vector<128x32xf32>
    %166 = arith.truncf %165 : vector<128x32xf32> to vector<128x32xbf16>
    %c0_160 = arith.constant 0 : index
    %c0_161 = arith.constant 0 : index
    %167 = vector.load %arg8[%c0_160, %c0_161] : memref<32x32xbf16, #tpu.memory_space<vmem>>, vector<32x32xbf16>
    %cst_162 = arith.constant dense<0.000000e+00> : vector<128x32xf32>
    %168 = tpu.matmul %166, %167, %cst_162 {dimension_numbers = #tpu.dot_dimension_numbers<[1], [0], [0], [1], [0, 0, 1, 1], [], []>} : vector<128x32xbf16>, vector<32x32xbf16>, vector<128x32xf32> -> vector<128x32xf32>
    %c0_163 = arith.constant 0 : index
    %c0_164 = arith.constant 0 : index
    %169 = vector.load %arg9[%c0_163, %c0_164] : memref<1x32xf32, #tpu.memory_space<vmem>>, vector<1x32xf32>
    %170 = vector.broadcast %169 : vector<1x32xf32> to vector<128x32xf32>
    %171 = arith.addf %168, %170 : vector<128x32xf32>
    %c0_165 = arith.constant 0 : index
    %c0_166 = arith.constant 0 : index
    %172 = vector.load %arg10[%c0_165, %c0_166] : memref<1x32xf32, #tpu.memory_space<vmem>>, vector<1x32xf32>
    %c0_167 = arith.constant 0 : index
    %c0_168 = arith.constant 0 : index
    %173 = vector.load %arg11[%c0_167, %c0_168] : memref<1x32xf32, #tpu.memory_space<vmem>>, vector<1x32xf32>
    %cst_169 = arith.constant dense<0.000000e+00> : vector<32xf32>
    %174 = vector.multi_reduction <add>, %171, %cst_169 [0] : vector<128x32xf32> to vector<32xf32>
    %175 = vector.shape_cast %174 : vector<32xf32> to vector<1x32xf32>
    %cst_170 = arith.constant 1.280000e+02 : f32
    %176 = vector.broadcast %cst_170 : f32 to vector<1x32xf32>
    %177 = arith.divf %175, %176 : vector<1x32xf32>
    %178 = vector.broadcast %177 : vector<1x32xf32> to vector<128x32xf32>
    %179 = arith.subf %171, %178 : vector<128x32xf32>
    %180 = arith.mulf %179, %179 : vector<128x32xf32>
    %cst_171 = arith.constant dense<0.000000e+00> : vector<32xf32>
    %181 = vector.multi_reduction <add>, %180, %cst_171 [0] : vector<128x32xf32> to vector<32xf32>
    %182 = vector.shape_cast %181 : vector<32xf32> to vector<1x32xf32>
    %cst_172 = arith.constant 1.280000e+02 : f32
    %183 = vector.broadcast %cst_172 : f32 to vector<1x32xf32>
    %184 = arith.divf %182, %183 : vector<1x32xf32>
    %185 = vector.broadcast %177 : vector<1x32xf32> to vector<128x32xf32>
    %186 = arith.subf %171, %185 : vector<128x32xf32>
    %cst_173 = arith.constant 9.99999997E-7 : f32
    %187 = vector.broadcast %cst_173 : f32 to vector<1x32xf32>
    %188 = arith.addf %184, %187 : vector<1x32xf32>
    %189 = math.rsqrt %188 : vector<1x32xf32>
    %190 = vector.broadcast %189 : vector<1x32xf32> to vector<128x32xf32>
    %191 = arith.mulf %186, %190 : vector<128x32xf32>
    %192 = vector.broadcast %172 : vector<1x32xf32> to vector<128x32xf32>
    %193 = arith.mulf %191, %192 : vector<128x32xf32>
    %194 = vector.broadcast %173 : vector<1x32xf32> to vector<128x32xf32>
    %195 = arith.addf %193, %194 : vector<128x32xf32>
    %196 = arith.addf %66, %195 : vector<128x32xf32>
    %cst_174 = arith.constant 0.000000e+00 : f32
    %197 = vector.broadcast %cst_174 : f32 to vector<128x32xf32>
    %198 = arith.maximumf %196, %197 : vector<128x32xf32>
    %199 = vector.shape_cast %198 : vector<128x32xf32> to vector<2x8x8x32xf32>
    %c0_175 = arith.constant 0 : index
    %c1_176 = arith.constant 1 : index
    %c1_177 = arith.constant 1 : index
    %c0_178 = arith.constant 0 : index
    %200 = vector.load %arg21[%c0_175, %c1_176, %c1_177, %c0_178] : memref<2x10x10x32xf32, #tpu.memory_space<vmem>>, vector<2x8x8x32xf32>
    tpu.vector_store %arg21[%c0_175, %c1_176, %c1_177, %c0_178], %199 {strides = array<i32>} : memref<2x10x10x32xf32, #tpu.memory_space<vmem>>, vector<2x8x8x32xf32>,
    %cst_179 = arith.constant 0.000000e+00 : f32
    %201 = vector.broadcast %cst_179 : f32 to vector<128x32xf32>
    %c0_180 = arith.constant 0 : index
    %c0_181 = arith.constant 0 : index
    %c0_182 = arith.constant 0 : index
    %c0_183 = arith.constant 0 : index
    %202 = vector.load %arg21[%c0_180, %c0_181, %c0_182, %c0_183] : memref<2x10x10x32xf32, #tpu.memory_space<vmem>>, vector<2x8x8x32xf32>
    %203 = vector.shape_cast %202 : vector<2x8x8x32xf32> to vector<128x32xf32>
    %204 = arith.truncf %203 : vector<128x32xf32> to vector<128x32xbf16>
    %c0_184 = arith.constant 0 : index
    %c0_185 = arith.constant 0 : index
    %c0_186 = arith.constant 0 : index
    %205 = vector.load %arg12[%c0_184, %c0_185, %c0_186] : memref<9x32x32xbf16, #tpu.memory_space<vmem>>, vector<1x32x32xbf16>
    %206 = vector.shape_cast %205 : vector<1x32x32xbf16> to vector<32x32xbf16>
    %cst_187 = arith.constant dense<0.000000e+00> : vector<128x32xf32>
    %207 = tpu.matmul %204, %206, %cst_187 {dimension_numbers = #tpu.dot_dimension_numbers<[1], [0], [0], [1], [0, 0, 1, 1], [], []>} : vector<128x32xbf16>, vector<32x32xbf16>, vector<128x32xf32> -> vector<128x32xf32>
    %208 = arith.addf %201, %207 : vector<128x32xf32>
    %c0_188 = arith.constant 0 : index
    %c0_189 = arith.constant 0 : index
    %c1_190 = arith.constant 1 : index
    %c0_191 = arith.constant 0 : index
    %209 = vector.load %arg21[%c0_188, %c0_189, %c1_190, %c0_191] : memref<2x10x10x32xf32, #tpu.memory_space<vmem>>, vector<2x8x8x32xf32>
    %210 = vector.shape_cast %209 : vector<2x8x8x32xf32> to vector<128x32xf32>
    %211 = arith.truncf %210 : vector<128x32xf32> to vector<128x32xbf16>
    %c1_192 = arith.constant 1 : index
    %c0_193 = arith.constant 0 : index
    %c0_194 = arith.constant 0 : index
    %212 = vector.load %arg12[%c1_192, %c0_193, %c0_194] : memref<9x32x32xbf16, #tpu.memory_space<vmem>>, vector<1x32x32xbf16>
    %213 = vector.shape_cast %212 : vector<1x32x32xbf16> to vector<32x32xbf16>
    %cst_195 = arith.constant dense<0.000000e+00> : vector<128x32xf32>
    %214 = tpu.matmul %211, %213, %cst_195 {dimension_numbers = #tpu.dot_dimension_numbers<[1], [0], [0], [1], [0, 0, 1, 1], [], []>} : vector<128x32xbf16>, vector<32x32xbf16>, vector<128x32xf32> -> vector<128x32xf32>
    %215 = arith.addf %208, %214 : vector<128x32xf32>
    %c0_196 = arith.constant 0 : index
    %c0_197 = arith.constant 0 : index
    %c2_198 = arith.constant 2 : index
    %c0_199 = arith.constant 0 : index
    %216 = vector.load %arg21[%c0_196, %c0_197, %c2_198, %c0_199] : memref<2x10x10x32xf32, #tpu.memory_space<vmem>>, vector<2x8x8x32xf32>
    %217 = vector.shape_cast %216 : vector<2x8x8x32xf32> to vector<128x32xf32>
    %218 = arith.truncf %217 : vector<128x32xf32> to vector<128x32xbf16>
    %c2_200 = arith.constant 2 : index
    %c0_201 = arith.constant 0 : index
    %c0_202 = arith.constant 0 : index
    %219 = vector.load %arg12[%c2_200, %c0_201, %c0_202] : memref<9x32x32xbf16, #tpu.memory_space<vmem>>, vector<1x32x32xbf16>
    %220 = vector.shape_cast %219 : vector<1x32x32xbf16> to vector<32x32xbf16>
    %cst_203 = arith.constant dense<0.000000e+00> : vector<128x32xf32>
    %221 = tpu.matmul %218, %220, %cst_203 {dimension_numbers = #tpu.dot_dimension_numbers<[1], [0], [0], [1], [0, 0, 1, 1], [], []>} : vector<128x32xbf16>, vector<32x32xbf16>, vector<128x32xf32> -> vector<128x32xf32>
    %222 = arith.addf %215, %221 : vector<128x32xf32>
    %c0_204 = arith.constant 0 : index
    %c1_205 = arith.constant 1 : index
    %c0_206 = arith.constant 0 : index
    %c0_207 = arith.constant 0 : index
    %223 = vector.load %arg21[%c0_204, %c1_205, %c0_206, %c0_207] : memref<2x10x10x32xf32, #tpu.memory_space<vmem>>, vector<2x8x8x32xf32>
    %224 = vector.shape_cast %223 : vector<2x8x8x32xf32> to vector<128x32xf32>
    %225 = arith.truncf %224 : vector<128x32xf32> to vector<128x32xbf16>
    %c3_208 = arith.constant 3 : index
    %c0_209 = arith.constant 0 : index
    %c0_210 = arith.constant 0 : index
    %226 = vector.load %arg12[%c3_208, %c0_209, %c0_210] : memref<9x32x32xbf16, #tpu.memory_space<vmem>>, vector<1x32x32xbf16>
    %227 = vector.shape_cast %226 : vector<1x32x32xbf16> to vector<32x32xbf16>
    %cst_211 = arith.constant dense<0.000000e+00> : vector<128x32xf32>
    %228 = tpu.matmul %225, %227, %cst_211 {dimension_numbers = #tpu.dot_dimension_numbers<[1], [0], [0], [1], [0, 0, 1, 1], [], []>} : vector<128x32xbf16>, vector<32x32xbf16>, vector<128x32xf32> -> vector<128x32xf32>
    %229 = arith.addf %222, %228 : vector<128x32xf32>
    %c0_212 = arith.constant 0 : index
    %c1_213 = arith.constant 1 : index
    %c1_214 = arith.constant 1 : index
    %c0_215 = arith.constant 0 : index
    %230 = vector.load %arg21[%c0_212, %c1_213, %c1_214, %c0_215] : memref<2x10x10x32xf32, #tpu.memory_space<vmem>>, vector<2x8x8x32xf32>
    %231 = vector.shape_cast %230 : vector<2x8x8x32xf32> to vector<128x32xf32>
    %232 = arith.truncf %231 : vector<128x32xf32> to vector<128x32xbf16>
    %c4_216 = arith.constant 4 : index
    %c0_217 = arith.constant 0 : index
    %c0_218 = arith.constant 0 : index
    %233 = vector.load %arg12[%c4_216, %c0_217, %c0_218] : memref<9x32x32xbf16, #tpu.memory_space<vmem>>, vector<1x32x32xbf16>
    %234 = vector.shape_cast %233 : vector<1x32x32xbf16> to vector<32x32xbf16>
    %cst_219 = arith.constant dense<0.000000e+00> : vector<128x32xf32>
    %235 = tpu.matmul %232, %234, %cst_219 {dimension_numbers = #tpu.dot_dimension_numbers<[1], [0], [0], [1], [0, 0, 1, 1], [], []>} : vector<128x32xbf16>, vector<32x32xbf16>, vector<128x32xf32> -> vector<128x32xf32>
    %236 = arith.addf %229, %235 : vector<128x32xf32>
    %c0_220 = arith.constant 0 : index
    %c1_221 = arith.constant 1 : index
    %c2_222 = arith.constant 2 : index
    %c0_223 = arith.constant 0 : index
    %237 = vector.load %arg21[%c0_220, %c1_221, %c2_222, %c0_223] : memref<2x10x10x32xf32, #tpu.memory_space<vmem>>, vector<2x8x8x32xf32>
    %238 = vector.shape_cast %237 : vector<2x8x8x32xf32> to vector<128x32xf32>
    %239 = arith.truncf %238 : vector<128x32xf32> to vector<128x32xbf16>
    %c5_224 = arith.constant 5 : index
    %c0_225 = arith.constant 0 : index
    %c0_226 = arith.constant 0 : index
    %240 = vector.load %arg12[%c5_224, %c0_225, %c0_226] : memref<9x32x32xbf16, #tpu.memory_space<vmem>>, vector<1x32x32xbf16>
    %241 = vector.shape_cast %240 : vector<1x32x32xbf16> to vector<32x32xbf16>
    %cst_227 = arith.constant dense<0.000000e+00> : vector<128x32xf32>
    %242 = tpu.matmul %239, %241, %cst_227 {dimension_numbers = #tpu.dot_dimension_numbers<[1], [0], [0], [1], [0, 0, 1, 1], [], []>} : vector<128x32xbf16>, vector<32x32xbf16>, vector<128x32xf32> -> vector<128x32xf32>
    %243 = arith.addf %236, %242 : vector<128x32xf32>
    %c0_228 = arith.constant 0 : index
    %c2_229 = arith.constant 2 : index
    %c0_230 = arith.constant 0 : index
    %c0_231 = arith.constant 0 : index
    %244 = vector.load %arg21[%c0_228, %c2_229, %c0_230, %c0_231] : memref<2x10x10x32xf32, #tpu.memory_space<vmem>>, vector<2x8x8x32xf32>
    %245 = vector.shape_cast %244 : vector<2x8x8x32xf32> to vector<128x32xf32>
    %246 = arith.truncf %245 : vector<128x32xf32> to vector<128x32xbf16>
    %c6_232 = arith.constant 6 : index
    %c0_233 = arith.constant 0 : index
    %c0_234 = arith.constant 0 : index
    %247 = vector.load %arg12[%c6_232, %c0_233, %c0_234] : memref<9x32x32xbf16, #tpu.memory_space<vmem>>, vector<1x32x32xbf16>
    %248 = vector.shape_cast %247 : vector<1x32x32xbf16> to vector<32x32xbf16>
    %cst_235 = arith.constant dense<0.000000e+00> : vector<128x32xf32>
    %249 = tpu.matmul %246, %248, %cst_235 {dimension_numbers = #tpu.dot_dimension_numbers<[1], [0], [0], [1], [0, 0, 1, 1], [], []>} : vector<128x32xbf16>, vector<32x32xbf16>, vector<128x32xf32> -> vector<128x32xf32>
    %250 = arith.addf %243, %249 : vector<128x32xf32>
    %c0_236 = arith.constant 0 : index
    %c2_237 = arith.constant 2 : index
    %c1_238 = arith.constant 1 : index
    %c0_239 = arith.constant 0 : index
    %251 = vector.load %arg21[%c0_236, %c2_237, %c1_238, %c0_239] : memref<2x10x10x32xf32, #tpu.memory_space<vmem>>, vector<2x8x8x32xf32>
    %252 = vector.shape_cast %251 : vector<2x8x8x32xf32> to vector<128x32xf32>
    %253 = arith.truncf %252 : vector<128x32xf32> to vector<128x32xbf16>
    %c7_240 = arith.constant 7 : index
    %c0_241 = arith.constant 0 : index
    %c0_242 = arith.constant 0 : index
    %254 = vector.load %arg12[%c7_240, %c0_241, %c0_242] : memref<9x32x32xbf16, #tpu.memory_space<vmem>>, vector<1x32x32xbf16>
    %255 = vector.shape_cast %254 : vector<1x32x32xbf16> to vector<32x32xbf16>
    %cst_243 = arith.constant dense<0.000000e+00> : vector<128x32xf32>
    %256 = tpu.matmul %253, %255, %cst_243 {dimension_numbers = #tpu.dot_dimension_numbers<[1], [0], [0], [1], [0, 0, 1, 1], [], []>} : vector<128x32xbf16>, vector<32x32xbf16>, vector<128x32xf32> -> vector<128x32xf32>
    %257 = arith.addf %250, %256 : vector<128x32xf32>
    %c0_244 = arith.constant 0 : index
    %c2_245 = arith.constant 2 : index
    %c2_246 = arith.constant 2 : index
    %c0_247 = arith.constant 0 : index
    %258 = vector.load %arg21[%c0_244, %c2_245, %c2_246, %c0_247] : memref<2x10x10x32xf32, #tpu.memory_space<vmem>>, vector<2x8x8x32xf32>
    %259 = vector.shape_cast %258 : vector<2x8x8x32xf32> to vector<128x32xf32>
    %260 = arith.truncf %259 : vector<128x32xf32> to vector<128x32xbf16>
    %c8_248 = arith.constant 8 : index
    %c0_249 = arith.constant 0 : index
    %c0_250 = arith.constant 0 : index
    %261 = vector.load %arg12[%c8_248, %c0_249, %c0_250] : memref<9x32x32xbf16, #tpu.memory_space<vmem>>, vector<1x32x32xbf16>
    %262 = vector.shape_cast %261 : vector<1x32x32xbf16> to vector<32x32xbf16>
    %cst_251 = arith.constant dense<0.000000e+00> : vector<128x32xf32>
    %263 = tpu.matmul %260, %262, %cst_251 {dimension_numbers = #tpu.dot_dimension_numbers<[1], [0], [0], [1], [0, 0, 1, 1], [], []>} : vector<128x32xbf16>, vector<32x32xbf16>, vector<128x32xf32> -> vector<128x32xf32>
    %264 = arith.addf %257, %263 : vector<128x32xf32>
    %c0_252 = arith.constant 0 : index
    %c0_253 = arith.constant 0 : index
    %265 = vector.load %arg13[%c0_252, %c0_253] : memref<1x32xf32, #tpu.memory_space<vmem>>, vector<1x32xf32>
    %266 = vector.broadcast %265 : vector<1x32xf32> to vector<128x32xf32>
    %267 = arith.addf %264, %266 : vector<128x32xf32>
    %c0_254 = arith.constant 0 : index
    %c0_255 = arith.constant 0 : index
    %268 = vector.load %arg14[%c0_254, %c0_255] : memref<1x32xf32, #tpu.memory_space<vmem>>, vector<1x32xf32>
    %c0_256 = arith.constant 0 : index
    %c0_257 = arith.constant 0 : index
    %269 = vector.load %arg15[%c0_256, %c0_257] : memref<1x32xf32, #tpu.memory_space<vmem>>, vector<1x32xf32>
    %cst_258 = arith.constant dense<0.000000e+00> : vector<32xf32>
    %270 = vector.multi_reduction <add>, %267, %cst_258 [0] : vector<128x32xf32> to vector<32xf32>
    %271 = vector.shape_cast %270 : vector<32xf32> to vector<1x32xf32>
    %cst_259 = arith.constant 1.280000e+02 : f32
    %272 = vector.broadcast %cst_259 : f32 to vector<1x32xf32>
    %273 = arith.divf %271, %272 : vector<1x32xf32>
    %274 = vector.broadcast %273 : vector<1x32xf32> to vector<128x32xf32>
    %275 = arith.subf %267, %274 : vector<128x32xf32>
    %276 = arith.mulf %275, %275 : vector<128x32xf32>
    %cst_260 = arith.constant dense<0.000000e+00> : vector<32xf32>
    %277 = vector.multi_reduction <add>, %276, %cst_260 [0] : vector<128x32xf32> to vector<32xf32>
    %278 = vector.shape_cast %277 : vector<32xf32> to vector<1x32xf32>
    %cst_261 = arith.constant 1.280000e+02 : f32
    %279 = vector.broadcast %cst_261 : f32 to vector<1x32xf32>
    %280 = arith.divf %278, %279 : vector<1x32xf32>
    %281 = vector.broadcast %273 : vector<1x32xf32> to vector<128x32xf32>
    %282 = arith.subf %267, %281 : vector<128x32xf32>
    %cst_262 = arith.constant 9.99999997E-7 : f32
    %283 = vector.broadcast %cst_262 : f32 to vector<1x32xf32>
    %284 = arith.addf %280, %283 : vector<1x32xf32>
    %285 = math.rsqrt %284 : vector<1x32xf32>
    %286 = vector.broadcast %285 : vector<1x32xf32> to vector<128x32xf32>
    %287 = arith.mulf %282, %286 : vector<128x32xf32>
    %288 = vector.broadcast %268 : vector<1x32xf32> to vector<128x32xf32>
    %289 = arith.mulf %287, %288 : vector<128x32xf32>
    %290 = vector.broadcast %269 : vector<1x32xf32> to vector<128x32xf32>
    %291 = arith.addf %289, %290 : vector<128x32xf32>
    %cst_263 = arith.constant 0.000000e+00 : f32
    %292 = vector.broadcast %cst_263 : f32 to vector<128x32xf32>
    %293 = arith.maximumf %291, %292 : vector<128x32xf32>
    %294 = arith.truncf %293 : vector<128x32xf32> to vector<128x32xbf16>
    %c0_264 = arith.constant 0 : index
    %c0_265 = arith.constant 0 : index
    %295 = vector.load %arg16[%c0_264, %c0_265] : memref<32x32xbf16, #tpu.memory_space<vmem>>, vector<32x32xbf16>
    %cst_266 = arith.constant dense<0.000000e+00> : vector<128x32xf32>
    %296 = tpu.matmul %294, %295, %cst_266 {dimension_numbers = #tpu.dot_dimension_numbers<[1], [0], [0], [1], [0, 0, 1, 1], [], []>} : vector<128x32xbf16>, vector<32x32xbf16>, vector<128x32xf32> -> vector<128x32xf32>
    %c0_267 = arith.constant 0 : index
    %c0_268 = arith.constant 0 : index
    %297 = vector.load %arg17[%c0_267, %c0_268] : memref<1x32xf32, #tpu.memory_space<vmem>>, vector<1x32xf32>
    %298 = vector.broadcast %297 : vector<1x32xf32> to vector<128x32xf32>
    %299 = arith.addf %296, %298 : vector<128x32xf32>
    %c0_269 = arith.constant 0 : index
    %c0_270 = arith.constant 0 : index
    %300 = vector.load %arg18[%c0_269, %c0_270] : memref<1x32xf32, #tpu.memory_space<vmem>>, vector<1x32xf32>
    %c0_271 = arith.constant 0 : index
    %c0_272 = arith.constant 0 : index
    %301 = vector.load %arg19[%c0_271, %c0_272] : memref<1x32xf32, #tpu.memory_space<vmem>>, vector<1x32xf32>
    %cst_273 = arith.constant dense<0.000000e+00> : vector<32xf32>
    %302 = vector.multi_reduction <add>, %299, %cst_273 [0] : vector<128x32xf32> to vector<32xf32>
    %303 = vector.shape_cast %302 : vector<32xf32> to vector<1x32xf32>
    %cst_274 = arith.constant 1.280000e+02 : f32
    %304 = vector.broadcast %cst_274 : f32 to vector<1x32xf32>
    %305 = arith.divf %303, %304 : vector<1x32xf32>
    %306 = vector.broadcast %305 : vector<1x32xf32> to vector<128x32xf32>
    %307 = arith.subf %299, %306 : vector<128x32xf32>
    %308 = arith.mulf %307, %307 : vector<128x32xf32>
    %cst_275 = arith.constant dense<0.000000e+00> : vector<32xf32>
    %309 = vector.multi_reduction <add>, %308, %cst_275 [0] : vector<128x32xf32> to vector<32xf32>
    %310 = vector.shape_cast %309 : vector<32xf32> to vector<1x32xf32>
    %cst_276 = arith.constant 1.280000e+02 : f32
    %311 = vector.broadcast %cst_276 : f32 to vector<1x32xf32>
    %312 = arith.divf %310, %311 : vector<1x32xf32>
    %313 = vector.broadcast %305 : vector<1x32xf32> to vector<128x32xf32>
    %314 = arith.subf %299, %313 : vector<128x32xf32>
    %cst_277 = arith.constant 9.99999997E-7 : f32
    %315 = vector.broadcast %cst_277 : f32 to vector<1x32xf32>
    %316 = arith.addf %312, %315 : vector<1x32xf32>
    %317 = math.rsqrt %316 : vector<1x32xf32>
    %318 = vector.broadcast %317 : vector<1x32xf32> to vector<128x32xf32>
    %319 = arith.mulf %314, %318 : vector<128x32xf32>
    %320 = vector.broadcast %300 : vector<1x32xf32> to vector<128x32xf32>
    %321 = arith.mulf %319, %320 : vector<128x32xf32>
    %322 = vector.broadcast %301 : vector<1x32xf32> to vector<128x32xf32>
    %323 = arith.addf %321, %322 : vector<128x32xf32>
    %324 = arith.addf %196, %323 : vector<128x32xf32>
    %325 = vector.shape_cast %324 : vector<128x32xf32> to vector<2x8x8x32xf32>
    %c0_278 = arith.constant 0 : index
    %c0_279 = arith.constant 0 : index
    %c0_280 = arith.constant 0 : index
    %c0_281 = arith.constant 0 : index
    %326 = vector.load %arg20[%c0_278, %c0_279, %c0_280, %c0_281] : memref<2x8x8x32xf32, #tpu.memory_space<vmem>>, vector<2x8x8x32xf32>
    tpu.vector_store %arg20[%c0_278, %c0_279, %c0_280, %c0_281], %325 {strides = array<i32>} : memref<2x8x8x32xf32, #tpu.memory_space<vmem>>, vector<2x8x8x32xf32>,
    return
  }
  func.func @transform_0(%arg0: i32) -> (i32, i32, i32, i32) {
    %c0_i32 = arith.constant 0 : i32
    %c0_i32_0 = arith.constant 0 : i32
    %c0_i32_1 = arith.constant 0 : i32
    %c0_i32_2 = arith.constant 0 : i32
    %c0_i32_3 = arith.constant 0 : i32
    return %c0_i32, %c0_i32_0, %c0_i32_1, %c0_i32_2 : i32, i32, i32, i32
  }
  func.func @transform_1(%arg0: i32) -> (i32, i32, i32) {
    %c0_i32 = arith.constant 0 : i32
    %c0_i32_0 = arith.constant 0 : i32
    %c0_i32_1 = arith.constant 0 : i32
    %c0_i32_2 = arith.constant 0 : i32
    return %c0_i32, %c0_i32_0, %c0_i32_1 : i32, i32, i32
  }
  func.func @transform_2(%arg0: i32) -> (i32, i32) {
    %c0_i32 = arith.constant 0 : i32
    %c0_i32_0 = arith.constant 0 : i32
    %c0_i32_1 = arith.constant 0 : i32
    return %c0_i32, %c0_i32_0 : i32, i32
  }
  func.func @transform_3(%arg0: i32) -> (i32, i32, i32) {
    %c0_i32 = arith.constant 0 : i32
    %c0_i32_0 = arith.constant 0 : i32
    %c0_i32_1 = arith.constant 0 : i32
    %c0_i32_2 = arith.constant 0 : i32
    return %c0_i32, %c0_i32_0, %c0_i32_1 : i32, i32, i32
  }
  func.func @transform_4(%arg0: i32) -> (i32, i32) {
    %c0_i32 = arith.constant 0 : i32
    %c0_i32_0 = arith.constant 0 : i32
    %c0_i32_1 = arith.constant 0 : i32
    return %c0_i32, %c0_i32_0 : i32, i32
  }
  func.func @transform_5(%arg0: i32) -> (i32, i32) {
    %c0_i32 = arith.constant 0 : i32
    %c0_i32_0 = arith.constant 0 : i32
    %c0_i32_1 = arith.constant 0 : i32
    return %c0_i32, %c0_i32_0 : i32, i32
  }
  func.func @transform_6(%arg0: i32) -> (i32, i32) {
    %c0_i32 = arith.constant 0 : i32
    %c0_i32_0 = arith.constant 0 : i32
    %c0_i32_1 = arith.constant 0 : i32
    return %c0_i32, %c0_i32_0 : i32, i32
  }
  func.func @transform_7(%arg0: i32) -> (i32, i32) {
    %c0_i32 = arith.constant 0 : i32
    %c0_i32_0 = arith.constant 0 : i32
    %c0_i32_1 = arith.constant 0 : i32
    return %c0_i32, %c0_i32_0 : i32, i32
  }
  func.func @transform_8(%arg0: i32) -> (i32, i32) {
    %c0_i32 = arith.constant 0 : i32
    %c0_i32_0 = arith.constant 0 : i32
    %c0_i32_1 = arith.constant 0 : i32
    return %c0_i32, %c0_i32_0 : i32, i32
  }
  func.func @transform_9(%arg0: i32) -> (i32, i32) {
    %c0_i32 = arith.constant 0 : i32
    %c0_i32_0 = arith.constant 0 : i32
    %c0_i32_1 = arith.constant 0 : i32
    return %c0_i32, %c0_i32_0 : i32, i32
  }
  func.func @transform_10(%arg0: i32) -> (i32, i32) {
    %c0_i32 = arith.constant 0 : i32
    %c0_i32_0 = arith.constant 0 : i32
    %c0_i32_1 = arith.constant 0 : i32
    return %c0_i32, %c0_i32_0 : i32, i32
  }
  func.func @transform_11(%arg0: i32) -> (i32, i32, i32) {
    %c0_i32 = arith.constant 0 : i32
    %c0_i32_0 = arith.constant 0 : i32
    %c0_i32_1 = arith.constant 0 : i32
    %c0_i32_2 = arith.constant 0 : i32
    return %c0_i32, %c0_i32_0, %c0_i32_1 : i32, i32, i32
  }
  func.func @transform_12(%arg0: i32) -> (i32, i32) {
    %c0_i32 = arith.constant 0 : i32
    %c0_i32_0 = arith.constant 0 : i32
    %c0_i32_1 = arith.constant 0 : i32
    return %c0_i32, %c0_i32_0 : i32, i32
  }
  func.func @transform_13(%arg0: i32) -> (i32, i32) {
    %c0_i32 = arith.constant 0 : i32
    %c0_i32_0 = arith.constant 0 : i32
    %c0_i32_1 = arith.constant 0 : i32
    return %c0_i32, %c0_i32_0 : i32, i32
  }
  func.func @transform_14(%arg0: i32) -> (i32, i32) {
    %c0_i32 = arith.constant 0 : i32
    %c0_i32_0 = arith.constant 0 : i32
    %c0_i32_1 = arith.constant 0 : i32
    return %c0_i32, %c0_i32_0 : i32, i32
  }
  func.func @transform_15(%arg0: i32) -> (i32, i32) {
    %c0_i32 = arith.constant 0 : i32
    %c0_i32_0 = arith.constant 0 : i32
    %c0_i32_1 = arith.constant 0 : i32
    return %c0_i32, %c0_i32_0 : i32, i32
  }
  func.func @transform_16(%arg0: i32) -> (i32, i32) {
    %c0_i32 = arith.constant 0 : i32
    %c0_i32_0 = arith.constant 0 : i32
    %c0_i32_1 = arith.constant 0 : i32
    return %c0_i32, %c0_i32_0 : i32, i32
  }
  func.func @transform_17(%arg0: i32) -> (i32, i32) {
    %c0_i32 = arith.constant 0 : i32
    %c0_i32_0 = arith.constant 0 : i32
    %c0_i32_1 = arith.constant 0 : i32
    return %c0_i32, %c0_i32_0 : i32, i32
  }
  func.func @transform_18(%arg0: i32) -> (i32, i32) {
    %c0_i32 = arith.constant 0 : i32
    %c0_i32_0 = arith.constant 0 : i32
    %c0_i32_1 = arith.constant 0 : i32
    return %c0_i32, %c0_i32_0 : i32, i32
  }
  func.func @transform_19(%arg0: i32) -> (i32, i32, i32, i32) {
    %c0_i32 = arith.constant 0 : i32
    %c0_i32_0 = arith.constant 0 : i32
    %c0_i32_1 = arith.constant 0 : i32
    %c0_i32_2 = arith.constant 0 : i32
    %c0_i32_3 = arith.constant 0 : i32
    return %c0_i32, %c0_i32_0, %c0_i32_1, %c0_i32_2 : i32, i32, i32, i32
  }
}

</mosaic_0001>

<bundles_post_ra>
// kernel: vae_encoder_pallas.2
= control target key start
LH: loop header
LB: loop body
LE: loop exit
PB: predicated region body
PF: predicated region fallthrough
CT: control target
= control target key end

     0   :  { %vm106_vm0 = vcmask 1041408   ;;  %vm81_vm1 = vcmask 31744   ;;  %vm2684_vm2 = vcmask 130048   ;;  %vm2873_vm3 = vcmask 123904   ;;  %s5068_s4 = inlined_call_operand.vmem [shape: bf16[16,4,16], index: 4, kind: input, shape index: {}]   ;;  %s5069_s1 = inlined_call_operand.vmem [shape: f32[2,9,9,4], index: 1, kind: input, shape index: {}]   ;;  %s5070_s0 = inlined_call_operand.vmem [shape: f32[2,9,9,4], index: 0, kind: input, shape index: {}]   ;;  %s5071_s2 = inlined_call_operand.vmem [shape: f32[2,9,9,4], index: 2, kind: input, shape index: {}]   ;;  %s5072_s3 = inlined_call_operand.vmem [shape: f32[2,9,9,4], index: 3, kind: input, shape index: {}]   ;;  %s5073_s5 = inlined_call_operand.vmem [shape: f32[1,16], index: 5, kind: input, shape index: {}]   ;;  %s5074_s8 = inlined_call_operand.vmem [shape: f32[2,10,10,16], index: 8, kind: output, shape index: {}]   ;;  %s5075_s6 = inlined_call_operand.vmem [shape: f32[1,16], index: 6, kind: input, shape index: {}]   ;;  %s5076_s7 = inlined_call_operand.vmem [shape: f32[1,16], index: 7, kind: input, shape index: {}]  }
   0x1   :  { %v2934_v0 = vld [vmem:[%s5068_s4 + $0x2] sm:$0x3]  ;;  %v3021_v1 = vld [vmem:[%s5068_s4 + $0x10] sm:$0x3]  ;;  %v54_v12 = vld [vmem:[%s5068_s4] sm:$0x3] }
   0x2   :  { %v55_v2 = vld [vmem:[%s5069_s1] sm:$0xff]  ;;  %3896 = vmatprep.subr.msk.bf16.mxu1 %vm106_vm0, %v2934_v0  ;;  %3904 = vmatprep.subr.msk.bf16.mxu0 %vm106_vm0, %v3021_v1  ;;  %v108_v3 = vsel %vm106_vm0, %v2934_v0, 0  ;;  %v1379_v4 = vsel %vm106_vm0, %v3021_v1, 0  ;;  %v3977_v5 = vld [vmem:[%s5069_s1 + $0x10] sm:$0xff]  ;;  %v232_v17 = vsel %vm106_vm0, %v54_v12, 0 }
   0x3   :  { %v3982_v6 = vld [vmem:[%s5070_s0 + $0x10] sm:$0xff]  ;;  %v3987_v7 = vld [vmem:[%s5070_s0 + $0x20] sm:$0xff]  ;;  %3369 = vmatpush3.bf16.msra.mxu1 %v108_v3  ;;  %3513 = vmatpush3.bf16.msra.mxu0 %v1379_v4  ;;  %v71_v8 = vpack.c.bf16 %v3977_v5, %v55_v2 }
   0x4   :  { %v1344_v9 = vpack.c.bf16 %v3987_v7, %v3982_v6  ;;  %v3995_v10 = vld [vmem:[%s5069_s1 + $0x20] sm:$0xff]  ;;  %v4000_v11 = vld [vmem:[%s5069_s1 + $0x30] sm:$0xff]  ;;  %3897 = vmatprep.subr.msk.bf16.mxu1 %vm106_vm0, %v54_v12 }
   0x5   :  { %v72_v13 = vpack.c.bf16 %v4000_v11, %v3995_v10  ;;  %v4011_v14 = vld [vmem:[%s5070_s0 + $0x30] sm:$0xff]  ;;  %v4016_v15 = vld [vmem:[%s5070_s0 + $0x40] sm:$0xff]  ;;  %3370 = vmatprep.mubr.msk.bf16.mxu1 %vm81_vm1, %v71_v8  ;;  %v1511_v60 = vpack.c.bf16 %v3995_v10, %v3977_v5 }
   0x6   :  { %v3046_v16 = vld [vmem:[%s5068_s4 + $0x12] sm:$0x3]  ;;  %3514 = vmatprep.mubr.msk.bf16.mxu0 %vm81_vm1, %v1344_v9  ;;  %v1345_v18 = vpack.c.bf16 %v4016_v15, %v4011_v14  ;;  %v4030_v20 = vld [vmem:[%s5069_s1 + $0x40] sm:$0xff]  ;;  %v3071_v39 = vld [vmem:[%s5068_s4 + $0x14] sm:$0x3]  ;;  %v47_v61 = vpack.c.bf16 %v4011_v14, %v3987_v7 }
   0x7   :  { %v1546_v19 = vsel %vm106_vm0, %v3046_v16, 0  ;;  %v4035_v21 = vld [vmem:[%s5069_s1 + $0x50] sm:$0xff]  ;;  %3371 = vmatmul.mubr.msk.bf16.vlgmr.msra.gmra.mrb[0].mxu1 %vm81_vm1, %v72_v13  ;;  %3905 = vmatprep.subr.msk.bf16.mxu0 %vm106_vm0, %v3046_v16  ;;  %v4049_v24 = vld [vmem:[%s5070_s0 + $0x60] sm:$0xff]  ;;  %v1512_v62 = vpack.c.bf16 %v4030_v20, %v4000_v11  ;;  %v1712_v1 = vsel %vm106_vm0, %v3071_v39, 0 }
   0x8   :  { %v4040_v22 = vld [vmem:[%s5070_s0 + $0x50] sm:$0xff]  ;;  %v73_v23 = vpack.c.bf16 %v4035_v21, %v4030_v20  ;;  %3515 = vmatmul.mubr.msk.bf16.vlgmr.msra.gmra.mrb[0].mxu0 %vm81_vm1, %v1345_v18  ;;  %3387 = vmatpush3.bf16.msra.mxu1 %v232_v17  ;;  %v4057_v26 = vld [vmem:[%s5069_s1 + $0x60] sm:$0xff] }
   0x9   :  { %v1346_v25 = vpack.c.bf16 %v4049_v24, %v4040_v22  ;;  %v4062_v27 = vld [vmem:[%s5069_s1 + $0x70] sm:$0xff]  ;;  %3531 = vmatpush3.bf16.msra.mxu0 %v1546_v19  ;;  %v3012_v29 = vld [vmem:[%s5070_s0 + $0x80] sm:$0xff]  ;;  %v48_v0 = vpack.c.bf16 %v4040_v22, %v4016_v15  ;;  %v1513_v2 = vpack.c.bf16 %v4057_v26, %v4035_v21 }
   0xa   :  { %v4067_v28 = vld [vmem:[%s5070_s0 + $0x70] sm:$0xff]  ;;  %3374 = vmatprep.mubr.msk.bf16.mxu1 %vm81_vm1, %v73_v23  ;;  %v4079_v31 = vld [vmem:[%s5069_s1 + $0xa0] sm:$0xff]  ;;  %v74_v34 = vpack.c.bf16 %v4062_v27, %v4057_v26  ;;  %3906 = vmatprep.subr.msk.bf16.mxu0 %vm106_vm0, %v3071_v39 }
   0xb   :  { %v63_v30 = vld [vmem:[%s5069_s1 + $0x90] sm:$0xff]  ;;  %3518 = vmatprep.mubr.msk.bf16.mxu0 %vm81_vm1, %v1346_v25  ;;  %v4085_v32 = vld [vmem:[%s5070_s0 + $0xa0] sm:$0xff]  ;;  %v1347_v35 = vpack.c.bf16 %v3012_v29, %v4067_v28  ;;  %v49_v7 = vpack.c.bf16 %v4067_v28, %v4049_v24 }
   0xc   :  { %v4090_v33 = vld [vmem:[%s5070_s0 + $0xb0] sm:$0xff]  ;;  %v75_v36 = vpack.c.bf16 %v4079_v31, %v63_v30  ;;  %v2951_v38 = vld [vmem:[%s5068_s4 + $0x4] sm:$0x3]  ;;  %v2960_v3 = vld [vmem:[%s5068_s4 + $0x6] sm:$0x3] }
   0xd   :  { %v1348_v37 = vpack.c.bf16 %v4090_v33, %v4085_v32  ;;  %3898 = vmatprep.subr.msk.bf16.mxu1 %vm106_vm0, %v2951_v38  ;;  %v65_v40 = vld [vmem:[%s5069_s1 + $0xb0] sm:$0xff]  ;;  %v66_v41 = vld [vmem:[%s5069_s1 + $0xc0] sm:$0xff]  ;;  %v382_v63 = vsel %vm106_vm0, %v2951_v38, 0  ;;  %v548_v29 = vsel %vm106_vm0, %v2960_v3, 0 }
   0xe   :  { %v3015_v42 = vld [vmem:[%s5070_s0 + $0xc0] sm:$0xff]  ;;  %v3016_v43 = vld [vmem:[%s5070_s0 + $0xd0] sm:$0xff]  ;;  %v76_v48 = vpack.c.bf16 %v66_v41, %v65_v40  ;;  %v1515_v10 = vpack.c.bf16 %v65_v40, %v4079_v31 }
   0xf   :  { %3375 = vmatmul.mubr.msk.bf16.gmra.mrb[4].mxu1 %vm81_vm1, %v74_v34  ;;  %v67_v44 = vld [vmem:[%s5069_s1 + $0xd0] sm:$0xff]  ;;  %v68_v45 = vld [vmem:[%s5069_s1 + $0xe0] sm:$0xff]  ;;  %v1349_v49 = vpack.c.bf16 %v3016_v43, %v3015_v42  ;;  %v51_v11 = vpack.c.bf16 %v3015_v42, %v4090_v33  ;;  %v2969_v33 = vld [vmem:[%s5068_s4 + $0x8] sm:$0x3] }
  0x10   :  { %3519 = vmatmul.mubr.msk.bf16.gmra.mrb[4].mxu0 %vm81_vm1, %v1347_v35  ;;  %3378 = vmatprep.mubr.msk.bf16.mxu1 %vm81_vm1, %v75_v36  ;;  %v3017_v46 = vld [vmem:[%s5070_s0 + $0xe0] sm:$0xff]  ;;  %v4134_v47 = vld [vmem:[%s5070_s0 + $0xf0] sm:$0xff]  ;;  %v77_v50 = vpack.c.bf16 %v68_v45, %v67_v44  ;;  %v1516_v12 = vpack.c.bf16 %v67_v44, %v66_v41  ;;  %v3121_v35 = vld [vmem:[%s5068_s4 + $0x18] sm:$0x3] }
  0x11   :  { %3522 = vmatprep.mubr.msk.bf16.mxu0 %vm81_vm1, %v1348_v37  ;;  %v1350_v51 = vpack.c.bf16 %v4134_v47, %v3017_v46  ;;  %v69_v52 = vld [vmem:[%s5069_s1 + $0xf0] sm:$0xff]  ;;  %v70_v53 = vld [vmem:[%s5069_s1 + $0x100] sm:$0xff]  ;;  %v52_v13 = vpack.c.bf16 %v3017_v46, %v3016_v43 }
  0x12   :  { %v3019_v54 = vld [vmem:[%s5070_s0 + $0x100] sm:$0xff]  ;;  %v3020_v55 = vld [vmem:[%s5070_s0 + $0x110] sm:$0xff]  ;;  %v78_v57 = vpack.c.bf16 %v70_v53, %v69_v52  ;;  %v1517_v14 = vpack.c.bf16 %v69_v52, %v68_v45 }
  0x13   :  { %v30_v56 = vld [vmem:[%s5070_s0] sm:$0xff]  ;;  %v1351_v58 = vpack.c.bf16 %v3020_v55, %v3019_v54  ;;  %v3096_v4 = vld [vmem:[%s5068_s4 + $0x16] sm:$0x3]  ;;  %v53_v19 = vpack.c.bf16 %v3019_v54, %v4134_v47 }
  0x14   :  { %v46_v59 = vpack.c.bf16 %v3982_v6, %v30_v56  ;;  %v3037_v5 = vld [vmem:[%s5069_s1 + $0x80] sm:$0xff]  ;;  %v38_v6 = vld [vmem:[%s5070_s0 + $0x90] sm:$0xff]  ;;  %v1878_v31 = vsel %vm106_vm0, %v3096_v4, 0 }
  0x15   :  { %v1514_v8 = vpack.c.bf16 %v3037_v5, %v4062_v27  ;;  %v50_v9 = vpack.c.bf16 %v4085_v32, %v38_v6  ;;  %v3045_v15 = vld [vmem:[%s5069_s1 + $0x110] sm:$0xff]  ;;  %v331_v16 = vld [vmem:[%s5070_s0 + $0x1] sm:$0xff]  ;;  %v2045_v5 = vsel %vm106_vm0, %v3121_v35, 0 }
  0x16   :  { %v332_v17 = vld [vmem:[%s5070_s0 + $0x11] sm:$0xff]  ;;  %v3056_v18 = vld [vmem:[%s5070_s0 + $0x21] sm:$0xff]  ;;  %v1518_v20 = vpack.c.bf16 %v3045_v15, %v70_v53 }
  0x17   :  { %3379 = vmatmul.mubr.msk.bf16.gmra.mrb[8].mxu1 %vm81_vm1, %v76_v48  ;;  %v347_v21 = vpack.c.bf16 %v332_v17, %v331_v16  ;;  %v1677_v22 = vpack.c.bf16 %v3056_v18, %v332_v17  ;;  %v334_v23 = vld [vmem:[%s5070_s0 + $0x31] sm:$0xff]  ;;  %v3058_v24 = vld [vmem:[%s5070_s0 + $0x41] sm:$0xff] }
  0x18   :  { %3523 = vmatmul.mubr.msk.bf16.gmra.mrb[8].mxu0 %vm81_vm1, %v1349_v49  ;;  %3382 = vmatprep.mubr.msk.bf16.mxu1 %vm81_vm1, %v77_v50  ;;  %v336_v25 = vld [vmem:[%s5070_s0 + $0x51] sm:$0xff]  ;;  %v348_v26 = vpack.c.bf16 %v334_v23, %v3056_v18  ;;  %v3060_v27 = vld [vmem:[%s5070_s0 + $0x61] sm:$0xff]  ;;  %v1678_v28 = vpack.c.bf16 %v3058_v24, %v334_v23 }
  0x19   :  { %3526 = vmatprep.mubr.msk.bf16.mxu0 %vm81_vm1, %v1350_v51  ;;  %v349_v30 = vpack.c.bf16 %v336_v25, %v3058_v24  ;;  %v1679_v32 = vpack.c.bf16 %v3060_v27, %v336_v25  ;;  %v338_v34 = vld [vmem:[%s5070_s0 + $0x71] sm:$0xff]  ;;  %v3062_v36 = vld [vmem:[%s5070_s0 + $0x81] sm:$0xff] }
  0x1a   :  { %v339_v37 = vld [vmem:[%s5070_s0 + $0x91] sm:$0xff]  ;;  %v340_v38 = vld [vmem:[%s5070_s0 + $0xa1] sm:$0xff]  ;;  %v350_v40 = vpack.c.bf16 %v338_v34, %v3060_v27  ;;  %v1680_v41 = vpack.c.bf16 %v3062_v36, %v338_v34 }
  0x1b   :  { %v3064_v39 = vld [vmem:[%s5070_s0 + $0xb1] sm:$0xff]  ;;  %v351_v42 = vpack.c.bf16 %v340_v38, %v339_v37  ;;  %v342_v44 = vld [vmem:[%s5070_s0 + $0xc1] sm:$0xff] }
  0x1c   :  { %v1681_v43 = vpack.c.bf16 %v3064_v39, %v340_v38  ;;  %v3066_v45 = vld [vmem:[%s5070_s0 + $0xd1] sm:$0xff]  ;;  %v344_v46 = vld [vmem:[%s5070_s0 + $0xe1] sm:$0xff]  ;;  %v352_v48 = vpack.c.bf16 %v342_v44, %v3064_v39 }
  0x1d   :  { %v3068_v47 = vld [vmem:[%s5070_s0 + $0xf1] sm:$0xff]  ;;  %v1682_v49 = vpack.c.bf16 %v3066_v45, %v342_v44  ;;  %v353_v50 = vpack.c.bf16 %v344_v46, %v3066_v45  ;;  %v346_v52 = vld [vmem:[%s5070_s0 + $0x101] sm:$0xff]  ;;  %v2987_v45 = vld [vmem:[%s5068_s4 + $0xc] sm:$0x3] }
  0x1e   :  { %v1683_v51 = vpack.c.bf16 %v3068_v47, %v344_v46  ;;  %v3070_v53 = vld [vmem:[%s5070_s0 + $0x111] sm:$0xff]  ;;  %v497_v54 = vld [vmem:[%s5069_s1 + $0x1] sm:$0xff] }
  0x1f   :  { %3383 = vmatmul.mubr.msk.bf16.gmra.mrb[12].mxu1 %vm81_vm1, %v78_v57  ;;  %v498_v55 = vld [vmem:[%s5069_s1 + $0x11] sm:$0xff]  ;;  %v3081_v56 = vld [vmem:[%s5069_s1 + $0x21] sm:$0xff]  ;;  %v354_v57 = vpack.c.bf16 %v346_v52, %v3068_v47  ;;  %v3171_v47 = vld [vmem:[%s5068_s4 + $0x1c] sm:$0x3] }
  0x20   :  { %3527 = vmatmul.mubr.msk.bf16.gmra.mrb[12].mxu0 %vm81_vm1, %v1351_v58  ;;  %3388 = vmatprep.mubr.msk.bf16.mxu1 %vm81_vm1, %v46_v59  ;;  %v1684_v58 = vpack.c.bf16 %v3070_v53, %v346_v52  ;;  %v513_v59 = vpack.c.bf16 %v498_v55, %v497_v54  ;;  %v508_v18 = vld [vmem:[%s5069_s1 + $0xc1] sm:$0xff]  ;;  %v3095_v27 = vld [vmem:[%s5069_s1 + $0x111] sm:$0xff] }
  0x21   :  { %3532 = vmatprep.mubr.msk.bf16.mxu0 %vm81_vm1, %v1511_v60  ;;  %v1843_v60 = vpack.c.bf16 %v3081_v56, %v498_v55  ;;  %v3108_v36 = vld [vmem:[%s5071_s2 + $0x40] sm:$0xff]  ;;  %v668_v37 = vld [vmem:[%s5071_s2 + $0x50] sm:$0xff] }
  0x22   :  { %v3110_v39 = vld [vmem:[%s5071_s2 + $0x60] sm:$0xff]  ;;  %v670_v46 = vld [vmem:[%s5071_s2 + $0x70] sm:$0xff] }
  0x23   :  { %v2012_v44 = vpack.c.bf16 %v3110_v39, %v668_v37  ;;  %v682_v52 = vpack.c.bf16 %v670_v46, %v3110_v39  ;;  %v3145_v39 = vld [vmem:[%s5072_s3 + $0x110] sm:$0xff] }
  0x27   :  { %3389 = vmatmul.mubr.msk.bf16.vlgmr.msra.gmra.mrb[0].mxu1 %vm81_vm1, %v47_v61  ;;  %v500_v61 = vld [vmem:[%s5069_s1 + $0x31] sm:$0xff] }
  0x28   :  { %3533 = vmatmul.mubr.msk.bf16.vlgmr.msra.gmra.mrb[0].mxu0 %vm81_vm1, %v1512_v62  ;;  %3405 = vmatpush3.bf16.msra.mxu1 %v382_v63  ;;  %v3083_v62 = vld [vmem:[%s5069_s1 + $0x41] sm:$0xff]  ;;  %v502_v63 = vld [vmem:[%s5069_s1 + $0x51] sm:$0xff] }
  0x29   :  { %3549 = vmatpush3.bf16.msra.mxu0 %v1712_v1  ;;  %3392 = vmatprep.mubr.msk.bf16.mxu1 %vm81_vm1, %v48_v0  ;;  %v514_v0 = vpack.c.bf16 %v500_v61, %v3081_v56  ;;  %v3085_v1 = vld [vmem:[%s5069_s1 + $0x61] sm:$0xff] }
  0x2a   :  { %3536 = vmatprep.mubr.msk.bf16.mxu0 %vm81_vm1, %v1513_v2  ;;  %3899 = vmatprep.subr.msk.bf16.mxu1 %vm106_vm0, %v2960_v3  ;;  %v1844_v2 = vpack.c.bf16 %v3083_v62, %v500_v61  ;;  %v714_v3 = vsel %vm106_vm0, %v2969_v33, 0  ;;  %v1845_v6 = vpack.c.bf16 %v3085_v1, %v502_v63  ;;  %v674_v56 = vld [vmem:[%s5071_s2 + $0xc0] sm:$0xff] }
  0x2b   :  { %3907 = vmatprep.subr.msk.bf16.mxu0 %vm106_vm0, %v3096_v4  ;;  %v515_v4 = vpack.c.bf16 %v502_v63, %v3083_v62 }
  0x2f   :  { %3393 = vmatmul.mubr.msk.bf16.gmra.mrb[4].mxu1 %vm81_vm1, %v49_v7  ;;  %v2978_v7 = vld [vmem:[%s5068_s4 + $0xa] sm:$0x3] }
  0x30   :  { %3537 = vmatmul.mubr.msk.bf16.gmra.mrb[4].mxu0 %vm81_vm1, %v1514_v8  ;;  %3396 = vmatprep.mubr.msk.bf16.mxu1 %vm81_vm1, %v50_v9  ;;  %v504_v8 = vld [vmem:[%s5069_s1 + $0x71] sm:$0xff]  ;;  %v3146_v9 = vld [vmem:[%s5068_s4 + $0x1a] sm:$0x3] }
  0x31   :  { %3540 = vmatprep.mubr.msk.bf16.mxu0 %vm81_vm1, %v1515_v10  ;;  %v3087_v10 = vld [vmem:[%s5069_s1 + $0x81] sm:$0xff] }
  0x32   :  { %v1846_v15 = vpack.c.bf16 %v3087_v10, %v504_v8  ;;  %v3133_v10 = vld [vmem:[%s5072_s3 + $0x40] sm:$0xff] }
  0x37   :  { %3397 = vmatmul.mubr.msk.bf16.gmra.mrb[8].mxu1 %vm81_vm1, %v51_v11  ;;  %v505_v11 = vld [vmem:[%s5069_s1 + $0x91] sm:$0xff] }
  0x38   :  { %3541 = vmatmul.mubr.msk.bf16.gmra.mrb[8].mxu0 %vm81_vm1, %v1516_v12  ;;  %3400 = vmatprep.mubr.msk.bf16.mxu1 %vm81_vm1, %v52_v13  ;;  %v506_v12 = vld [vmem:[%s5069_s1 + $0xa1] sm:$0xff]  ;;  %v3089_v13 = vld [vmem:[%s5069_s1 + $0xb1] sm:$0xff] }
  0x39   :  { %3544 = vmatprep.mubr.msk.bf16.mxu0 %vm81_vm1, %v1517_v14  ;;  %v516_v14 = vpack.c.bf16 %v504_v8, %v3085_v1  ;;  %v517_v16 = vpack.c.bf16 %v506_v12, %v505_v11  ;;  %v1847_v17 = vpack.c.bf16 %v3089_v13, %v506_v12  ;;  %v3120_v1 = vld [vmem:[%s5071_s2 + $0x110] sm:$0xff] }
  0x3a   :  { %v834_v11 = vld [vmem:[%s5072_s3 + $0x50] sm:$0xff] }
  0x3f   :  { %3401 = vmatmul.mubr.msk.bf16.gmra.mrb[12].mxu1 %vm81_vm1, %v53_v19  ;;  %v3091_v19 = vld [vmem:[%s5069_s1 + $0xd1] sm:$0xff] }
  0x40   :  { %3545 = vmatmul.mubr.msk.bf16.gmra.mrb[12].mxu0 %vm81_vm1, %v1518_v20  ;;  %3406 = vmatprep.mubr.msk.bf16.mxu1 %vm81_vm1, %v347_v21  ;;  %v510_v20 = vld [vmem:[%s5069_s1 + $0xe1] sm:$0xff]  ;;  %v3093_v21 = vld [vmem:[%s5069_s1 + $0xf1] sm:$0xff]  ;;  %v1848_v23 = vpack.c.bf16 %v3091_v19, %v508_v18 }
  0x41   :  { %3550 = vmatprep.mubr.msk.bf16.mxu0 %vm81_vm1, %v1677_v22  ;;  %v518_v22 = vpack.c.bf16 %v508_v18, %v3089_v13  ;;  %v519_v24 = vpack.c.bf16 %v510_v20, %v3091_v19  ;;  %v1849_v25 = vpack.c.bf16 %v3093_v21, %v510_v20  ;;  %v3135_v13 = vld [vmem:[%s5072_s3 + $0x60] sm:$0xff]  ;;  %v2996_v19 = vld [vmem:[%s5068_s4 + $0xe] sm:$0x3]  ;;  %v836_v20 = vld [vmem:[%s5072_s3 + $0x70] sm:$0xff] }
  0x42   :  { %v2179_v18 = vpack.c.bf16 %v3135_v13, %v834_v11 }
  0x47   :  { %3407 = vmatmul.mubr.msk.bf16.vlgmr.msra.gmra.mrb[0].mxu1 %vm81_vm1, %v348_v26  ;;  %v512_v26 = vld [vmem:[%s5069_s1 + $0x101] sm:$0xff] }
  0x48   :  { %3551 = vmatmul.mubr.msk.bf16.vlgmr.msra.gmra.mrb[0].mxu0 %vm81_vm1, %v1678_v28  ;;  %3423 = vmatpush3.bf16.msra.mxu1 %v548_v29  ;;  %v663_v28 = vld [vmem:[%s5071_s2] sm:$0xff]  ;;  %v664_v29 = vld [vmem:[%s5071_s2 + $0x10] sm:$0xff] }
  0x49   :  { %3567 = vmatpush3.bf16.msra.mxu0 %v1878_v31  ;;  %3410 = vmatprep.mubr.msk.bf16.mxu1 %vm81_vm1, %v349_v30  ;;  %v3106_v30 = vld [vmem:[%s5071_s2 + $0x20] sm:$0xff]  ;;  %v520_v31 = vpack.c.bf16 %v512_v26, %v3093_v21  ;;  %v3196_v21 = vld [vmem:[%s5068_s4 + $0x1e] sm:$0x3] }
  0x4a   :  { %3554 = vmatprep.mubr.msk.bf16.mxu0 %vm81_vm1, %v1679_v32  ;;  %3900 = vmatprep.subr.msk.bf16.mxu1 %vm106_vm0, %v2969_v33  ;;  %v1850_v32 = vpack.c.bf16 %v3095_v27, %v512_v26  ;;  %v679_v33 = vpack.c.bf16 %v664_v29, %v663_v28  ;;  %v2010_v34 = vpack.c.bf16 %v3106_v30, %v664_v29 }
  0x4b   :  { %3908 = vmatprep.subr.msk.bf16.mxu0 %vm106_vm0, %v3121_v35  ;;  %v666_v35 = vld [vmem:[%s5071_s2 + $0x30] sm:$0xff]  ;;  %v848_v26 = vpack.c.bf16 %v836_v20, %v3135_v13 }
  0x4c   :  { %v680_v38 = vpack.c.bf16 %v666_v35, %v3106_v30  ;;  %v840_v30 = vld [vmem:[%s5072_s3 + $0xc0] sm:$0xff]  ;;  %v1162_v13 = vld [vmem:[%s5072_s3 + $0x11] sm:$0xff] }
  0x4f   :  { %3411 = vmatmul.mubr.msk.bf16.gmra.mrb[4].mxu1 %vm81_vm1, %v350_v40  ;;  %v2011_v40 = vpack.c.bf16 %v3108_v36, %v666_v35 }
  0x50   :  { %3555 = vmatmul.mubr.msk.bf16.gmra.mrb[4].mxu0 %vm81_vm1, %v1680_v41  ;;  %3414 = vmatprep.mubr.msk.bf16.mxu1 %vm81_vm1, %v351_v42  ;;  %v880_v41 = vsel %vm106_vm0, %v2978_v7, 0  ;;  %v681_v42 = vpack.c.bf16 %v668_v37, %v3108_v36 }
  0x51   :  { %3558 = vmatprep.mubr.msk.bf16.mxu0 %vm81_vm1, %v1681_v43  ;;  %v2212_v43 = vsel %vm106_vm0, %v3146_v9, 0 }
  0x57   :  { %3415 = vmatmul.mubr.msk.bf16.gmra.mrb[8].mxu1 %vm81_vm1, %v352_v48  ;;  %v3112_v48 = vld [vmem:[%s5071_s2 + $0x80] sm:$0xff] }
  0x58   :  { %3559 = vmatmul.mubr.msk.bf16.gmra.mrb[8].mxu0 %vm81_vm1, %v1682_v49  ;;  %3418 = vmatprep.mubr.msk.bf16.mxu1 %vm81_vm1, %v353_v50  ;;  %v671_v49 = vld [vmem:[%s5071_s2 + $0x90] sm:$0xff]  ;;  %v672_v50 = vld [vmem:[%s5071_s2 + $0xa0] sm:$0xff]  ;;  %v2013_v53 = vpack.c.bf16 %v3112_v48, %v670_v46 }
  0x59   :  { %3562 = vmatprep.mubr.msk.bf16.mxu0 %vm81_vm1, %v1683_v51  ;;  %v3114_v51 = vld [vmem:[%s5071_s2 + $0xb0] sm:$0xff]  ;;  %v683_v54 = vpack.c.bf16 %v672_v50, %v671_v49  ;;  %v3158_v48 = vld [vmem:[%s5071_s2 + $0x41] sm:$0xff] }
  0x5a   :  { %v2014_v55 = vpack.c.bf16 %v3114_v51, %v672_v50  ;;  %v1000_v49 = vld [vmem:[%s5071_s2 + $0x51] sm:$0xff] }
  0x5f   :  { %3419 = vmatmul.mubr.msk.bf16.gmra.mrb[12].mxu1 %vm81_vm1, %v354_v57  ;;  %v3116_v57 = vld [vmem:[%s5071_s2 + $0xd0] sm:$0xff] }
  0x60   :  { %3563 = vmatmul.mubr.msk.bf16.gmra.mrb[12].mxu0 %vm81_vm1, %v1684_v58  ;;  %3424 = vmatprep.mubr.msk.bf16.mxu1 %vm81_vm1, %v513_v59  ;;  %v676_v58 = vld [vmem:[%s5071_s2 + $0xe0] sm:$0xff]  ;;  %v3118_v59 = vld [vmem:[%s5071_s2 + $0xf0] sm:$0xff]  ;;  %v2015_v61 = vpack.c.bf16 %v3116_v57, %v674_v56 }
  0x61   :  { %3568 = vmatprep.mubr.msk.bf16.mxu0 %vm81_vm1, %v1843_v60  ;;  %v684_v60 = vpack.c.bf16 %v674_v56, %v3114_v51  ;;  %v685_v62 = vpack.c.bf16 %v676_v58, %v3116_v57  ;;  %v2016_v63 = vpack.c.bf16 %v3118_v59, %v676_v58  ;;  %v3160_v51 = vld [vmem:[%s5071_s2 + $0x61] sm:$0xff]  ;;  %v1002_v57 = vld [vmem:[%s5071_s2 + $0x71] sm:$0xff] }
  0x62   :  { %v2345_v56 = vpack.c.bf16 %v3160_v51, %v1000_v49  ;;  %v3162_v58 = vld [vmem:[%s5071_s2 + $0x81] sm:$0xff] }
  0x67   :  { %3425 = vmatmul.mubr.msk.bf16.vlgmr.msra.gmra.mrb[0].mxu1 %vm81_vm1, %v514_v0  ;;  %v678_v0 = vld [vmem:[%s5071_s2 + $0x100] sm:$0xff] }
  0x68   :  { %3569 = vmatmul.mubr.msk.bf16.vlgmr.msra.gmra.mrb[0].mxu0 %vm81_vm1, %v1844_v2  ;;  %3441 = vmatpush3.bf16.msra.mxu1 %v714_v3  ;;  %v829_v2 = vld [vmem:[%s5072_s3] sm:$0xff]  ;;  %v830_v3 = vld [vmem:[%s5072_s3 + $0x10] sm:$0xff] }
  0x69   :  { %3585 = vmatpush3.bf16.msra.mxu0 %v2045_v5  ;;  %3428 = vmatprep.mubr.msk.bf16.mxu1 %vm81_vm1, %v515_v4  ;;  %v3131_v4 = vld [vmem:[%s5072_s3 + $0x20] sm:$0xff]  ;;  %v686_v5 = vpack.c.bf16 %v678_v0, %v3118_v59  ;;  %v1003_v59 = vld [vmem:[%s5071_s2 + $0x91] sm:$0xff] }
  0x6a   :  { %3572 = vmatprep.mubr.msk.bf16.mxu0 %vm81_vm1, %v1845_v6  ;;  %3901 = vmatprep.subr.msk.bf16.mxu1 %vm106_vm0, %v2978_v7  ;;  %v2017_v6 = vpack.c.bf16 %v3120_v1, %v678_v0  ;;  %v845_v7 = vpack.c.bf16 %v830_v3, %v829_v2  ;;  %v2177_v8 = vpack.c.bf16 %v3131_v4, %v830_v3  ;;  %v1006_v2 = vld [vmem:[%s5071_s2 + $0xc1] sm:$0xff]  ;;  %v3166_v3 = vld [vmem:[%s5071_s2 + $0xd1] sm:$0xff] }
  0x6b   :  { %3909 = vmatprep.subr.msk.bf16.mxu0 %vm106_vm0, %v3146_v9  ;;  %v832_v9 = vld [vmem:[%s5072_s3 + $0x30] sm:$0xff] }
  0x6c   :  { %v846_v12 = vpack.c.bf16 %v832_v9, %v3131_v4  ;;  %v1008_v4 = vld [vmem:[%s5071_s2 + $0xe1] sm:$0xff] }
  0x6f   :  { %3429 = vmatmul.mubr.msk.bf16.gmra.mrb[4].mxu1 %vm81_vm1, %v516_v14  ;;  %v2178_v14 = vpack.c.bf16 %v3133_v10, %v832_v9 }
  0x70   :  { %3573 = vmatmul.mubr.msk.bf16.gmra.mrb[4].mxu0 %vm81_vm1, %v1846_v15  ;;  %3432 = vmatprep.mubr.msk.bf16.mxu1 %vm81_vm1, %v517_v16  ;;  %v1046_v15 = vsel %vm106_vm0, %v2987_v45, 0  ;;  %v847_v16 = vpack.c.bf16 %v834_v11, %v3133_v10  ;;  %v1010_v10 = vld [vmem:[%s5071_s2 + $0x101] sm:$0xff]  ;;  %v3170_v11 = vld [vmem:[%s5071_s2 + $0x111] sm:$0xff] }
  0x71   :  { %3576 = vmatprep.mubr.msk.bf16.mxu0 %vm81_vm1, %v1847_v17  ;;  %v2378_v17 = vsel %vm106_vm0, %v3171_v47, 0 }
  0x77   :  { %3433 = vmatmul.mubr.msk.bf16.gmra.mrb[8].mxu1 %vm81_vm1, %v518_v22  ;;  %v3137_v22 = vld [vmem:[%s5072_s3 + $0x80] sm:$0xff] }
  0x78   :  { %3577 = vmatmul.mubr.msk.bf16.gmra.mrb[8].mxu0 %vm81_vm1, %v1848_v23  ;;  %3436 = vmatprep.mubr.msk.bf16.mxu1 %vm81_vm1, %v519_v24  ;;  %v837_v23 = vld [vmem:[%s5072_s3 + $0x90] sm:$0xff]  ;;  %v838_v24 = vld [vmem:[%s5072_s3 + $0xa0] sm:$0xff]  ;;  %v2180_v27 = vpack.c.bf16 %v3137_v22, %v836_v20 }
  0x79   :  { %3580 = vmatprep.mubr.msk.bf16.mxu0 %vm81_vm1, %v1849_v25  ;;  %v3139_v25 = vld [vmem:[%s5072_s3 + $0xb0] sm:$0xff]  ;;  %v849_v28 = vpack.c.bf16 %v838_v24, %v837_v23  ;;  %v3183_v20 = vld [vmem:[%s5072_s3 + $0x41] sm:$0xff] }
  0x7a   :  { %v2181_v29 = vpack.c.bf16 %v3139_v25, %v838_v24  ;;  %v3185_v22 = vld [vmem:[%s5072_s3 + $0x61] sm:$0xff] }
  0x7f   :  { %3437 = vmatmul.mubr.msk.bf16.gmra.mrb[12].mxu1 %vm81_vm1, %v520_v31  ;;  %v3141_v31 = vld [vmem:[%s5072_s3 + $0xd0] sm:$0xff] }
  0x80   :  { %3581 = vmatmul.mubr.msk.bf16.gmra.mrb[12].mxu0 %vm81_vm1, %v1850_v32  ;;  %3442 = vmatprep.mubr.msk.bf16.mxu1 %vm81_vm1, %v679_v33  ;;  %v842_v32 = vld [vmem:[%s5072_s3 + $0xe0] sm:$0xff]  ;;  %v3143_v33 = vld [vmem:[%s5072_s3 + $0xf0] sm:$0xff]  ;;  %v2182_v35 = vpack.c.bf16 %v3141_v31, %v840_v30 }
  0x81   :  { %3586 = vmatprep.mubr.msk.bf16.mxu0 %vm81_vm1, %v2010_v34  ;;  %v850_v34 = vpack.c.bf16 %v840_v30, %v3139_v25  ;;  %v851_v36 = vpack.c.bf16 %v842_v32, %v3141_v31  ;;  %v2183_v37 = vpack.c.bf16 %v3143_v33, %v842_v32  ;;  %v1170_v30 = vld [vmem:[%s5072_s3 + $0xa1] sm:$0xff]  ;;  %v3189_v31 = vld [vmem:[%s5072_s3 + $0xb1] sm:$0xff] }
  0x87   :  { %3443 = vmatmul.mubr.msk.bf16.vlgmr.msra.gmra.mrb[0].mxu1 %vm81_vm1, %v680_v38  ;;  %v844_v38 = vld [vmem:[%s5072_s3 + $0x100] sm:$0xff] }
  0x88   :  { %3587 = vmatmul.mubr.msk.bf16.vlgmr.msra.gmra.mrb[0].mxu0 %vm81_vm1, %v2011_v40  ;;  %3459 = vmatpush3.bf16.msra.mxu1 %v880_v41  ;;  %v995_v40 = vld [vmem:[%s5071_s2 + $0x1] sm:$0xff]  ;;  %v996_v41 = vld [vmem:[%s5071_s2 + $0x11] sm:$0xff] }
  0x89   :  { %3603 = vmatpush3.bf16.msra.mxu0 %v2212_v43  ;;  %3446 = vmatprep.mubr.msk.bf16.mxu1 %vm81_vm1, %v681_v42  ;;  %v3156_v42 = vld [vmem:[%s5071_s2 + $0x21] sm:$0xff]  ;;  %v852_v43 = vpack.c.bf16 %v844_v38, %v3143_v33 }
  0x8a   :  { %3590 = vmatprep.mubr.msk.bf16.mxu0 %vm81_vm1, %v2012_v44  ;;  %3902 = vmatprep.subr.msk.bf16.mxu1 %vm106_vm0, %v2987_v45  ;;  %v2184_v44 = vpack.c.bf16 %v3145_v39, %v844_v38  ;;  %v1011_v45 = vpack.c.bf16 %v996_v41, %v995_v40  ;;  %v2343_v46 = vpack.c.bf16 %v3156_v42, %v996_v41  ;;  %v1174_v38 = vld [vmem:[%s5072_s3 + $0xe1] sm:$0xff]  ;;  %v3193_v39 = vld [vmem:[%s5072_s3 + $0xf1] sm:$0xff] }
  0x8b   :  { %3910 = vmatprep.subr.msk.bf16.mxu0 %vm106_vm0, %v3171_v47  ;;  %v998_v47 = vld [vmem:[%s5071_s2 + $0x31] sm:$0xff] }
  0x8c   :  { %v1012_v50 = vpack.c.bf16 %v998_v47, %v3156_v42 }
  0x8f   :  { %3447 = vmatmul.mubr.msk.bf16.gmra.mrb[4].mxu1 %vm81_vm1, %v682_v52  ;;  %v2344_v52 = vpack.c.bf16 %v3158_v48, %v998_v47 }
  0x90   :  { %3591 = vmatmul.mubr.msk.bf16.gmra.mrb[4].mxu0 %vm81_vm1, %v2013_v53  ;;  %3450 = vmatprep.mubr.msk.bf16.mxu1 %vm81_vm1, %v683_v54  ;;  %v1212_v53 = vsel %vm106_vm0, %v2996_v19, 0  ;;  %v1013_v54 = vpack.c.bf16 %v1000_v49, %v3158_v48 }
  0x91   :  { %3594 = vmatprep.mubr.msk.bf16.mxu0 %vm81_vm1, %v2014_v55  ;;  %v2544_v55 = vsel %vm106_vm0, %v3196_v21, 0 }
  0x97   :  { %3451 = vmatmul.mubr.msk.bf16.gmra.mrb[8].mxu1 %vm81_vm1, %v684_v60  ;;  %v1004_v60 = vld [vmem:[%s5071_s2 + $0xa1] sm:$0xff] }
  0x98   :  { %3595 = vmatmul.mubr.msk.bf16.gmra.mrb[8].mxu0 %vm81_vm1, %v2015_v61  ;;  %3454 = vmatprep.mubr.msk.bf16.mxu1 %vm81_vm1, %v685_v62  ;;  %v3164_v61 = vld [vmem:[%s5071_s2 + $0xb1] sm:$0xff]  ;;  %v1014_v62 = vpack.c.bf16 %v1002_v57, %v3160_v51  ;;  %v1015_v0 = vpack.c.bf16 %v1004_v60, %v1003_v59 }
  0x99   :  { %3598 = vmatprep.mubr.msk.bf16.mxu0 %vm81_vm1, %v2016_v63  ;;  %v2346_v63 = vpack.c.bf16 %v3162_v58, %v1002_v57  ;;  %v2347_v1 = vpack.c.bf16 %v3164_v61, %v1004_v60 }
  0x9f   :  { %3455 = vmatmul.mubr.msk.bf16.gmra.mrb[12].mxu1 %vm81_vm1, %v686_v5  ;;  %v3168_v5 = vld [vmem:[%s5071_s2 + $0xf1] sm:$0xff] }
  0xa0   :  { %3599 = vmatmul.mubr.msk.bf16.gmra.mrb[12].mxu0 %vm81_vm1, %v2017_v6  ;;  %3460 = vmatprep.mubr.msk.bf16.mxu1 %vm81_vm1, %v845_v7  ;;  %v1016_v6 = vpack.c.bf16 %v1006_v2, %v3164_v61  ;;  %v2348_v7 = vpack.c.bf16 %v3166_v3, %v1006_v2  ;;  %v2349_v9 = vpack.c.bf16 %v3168_v5, %v1008_v4 }
  0xa1   :  { %3604 = vmatprep.mubr.msk.bf16.mxu0 %vm81_vm1, %v2177_v8  ;;  %v1017_v8 = vpack.c.bf16 %v1008_v4, %v3166_v3 }
  0xa7   :  { %3461 = vmatmul.mubr.msk.bf16.vlgmr.msra.gmra.mrb[0].mxu1 %vm81_vm1, %v846_v12  ;;  %v1161_v12 = vld [vmem:[%s5072_s3 + $0x1] sm:$0xff] }
  0xa8   :  { %3605 = vmatmul.mubr.msk.bf16.vlgmr.msra.gmra.mrb[0].mxu0 %vm81_vm1, %v2178_v14  ;;  %3477 = vmatpush3.bf16.msra.mxu1 %v1046_v15  ;;  %v3181_v14 = vld [vmem:[%s5072_s3 + $0x21] sm:$0xff]  ;;  %v1018_v15 = vpack.c.bf16 %v1010_v10, %v3168_v5 }
  0xa9   :  { %3621 = vmatpush3.bf16.msra.mxu0 %v2378_v17  ;;  %3464 = vmatprep.mubr.msk.bf16.mxu1 %vm81_vm1, %v847_v16  ;;  %v2350_v16 = vpack.c.bf16 %v3170_v11, %v1010_v10  ;;  %v1177_v17 = vpack.c.bf16 %v1162_v13, %v1161_v12 }
  0xaa   :  { %3608 = vmatprep.mubr.msk.bf16.mxu0 %vm81_vm1, %v2179_v18  ;;  %3903 = vmatprep.subr.msk.bf16.mxu1 %vm106_vm0, %v2996_v19  ;;  %v2509_v18 = vpack.c.bf16 %v3181_v14, %v1162_v13  ;;  %v1164_v19 = vld [vmem:[%s5072_s3 + $0x31] sm:$0xff] }
  0xab   :  { %3911 = vmatprep.subr.msk.bf16.mxu0 %vm106_vm0, %v3196_v21  ;;  %v1166_v21 = vld [vmem:[%s5072_s3 + $0x51] sm:$0xff]  ;;  %v1178_v23 = vpack.c.bf16 %v1164_v19, %v3181_v14  ;;  %v2510_v24 = vpack.c.bf16 %v3183_v20, %v1164_v19 }
  0xac   :  { %v1179_v25 = vpack.c.bf16 %v1166_v21, %v3183_v20 }
  0xaf   :  { %3465 = vmatmul.mubr.msk.bf16.gmra.mrb[4].mxu1 %vm81_vm1, %v848_v26  ;;  %v2511_v26 = vpack.c.bf16 %v3185_v22, %v1166_v21 }
  0xb0   :  { %3609 = vmatmul.mubr.msk.bf16.gmra.mrb[4].mxu0 %vm81_vm1, %v2180_v27  ;;  %3468 = vmatprep.mubr.msk.bf16.mxu1 %vm81_vm1, %v849_v28  ;;  %v1168_v27 = vld [vmem:[%s5072_s3 + $0x71] sm:$0xff]  ;;  %v3187_v28 = vld [vmem:[%s5072_s3 + $0x81] sm:$0xff] }
  0xb1   :  { %3612 = vmatprep.mubr.msk.bf16.mxu0 %vm81_vm1, %v2181_v29  ;;  %v1169_v29 = vld [vmem:[%s5072_s3 + $0x91] sm:$0xff]  ;;  %v1180_v32 = vpack.c.bf16 %v1168_v27, %v3185_v22  ;;  %v2512_v33 = vpack.c.bf16 %v3187_v28, %v1168_v27 }
  0xb7   :  { %3469 = vmatmul.mubr.msk.bf16.gmra.mrb[8].mxu1 %vm81_vm1, %v850_v34  ;;  %v1181_v34 = vpack.c.bf16 %v1170_v30, %v1169_v29 }
  0xb8   :  { %3613 = vmatmul.mubr.msk.bf16.gmra.mrb[8].mxu0 %vm81_vm1, %v2182_v35  ;;  %3472 = vmatprep.mubr.msk.bf16.mxu1 %vm81_vm1, %v851_v36  ;;  %v2513_v35 = vpack.c.bf16 %v3189_v31, %v1170_v30  ;;  %v1172_v36 = vld [vmem:[%s5072_s3 + $0xc1] sm:$0xff] }
  0xb9   :  { %3616 = vmatprep.mubr.msk.bf16.mxu0 %vm81_vm1, %v2183_v37  ;;  %v3191_v37 = vld [vmem:[%s5072_s3 + $0xd1] sm:$0xff]  ;;  %v1182_v40 = vpack.c.bf16 %v1172_v36, %v3189_v31 }
  0xba   :  { %v2514_v41 = vpack.c.bf16 %v3191_v37, %v1172_v36  ;;  %v1183_v42 = vpack.c.bf16 %v1174_v38, %v3191_v37 }
  0xbf   :  { %3473 = vmatmul.mubr.msk.bf16.gmra.mrb[12].mxu1 %vm81_vm1, %v852_v43  ;;  %v2515_v43 = vpack.c.bf16 %v3193_v39, %v1174_v38 }
  0xc0   :  { %3617 = vmatmul.mubr.msk.bf16.gmra.mrb[12].mxu0 %vm81_vm1, %v2184_v44  ;;  %3478 = vmatprep.mubr.msk.bf16.mxu1 %vm81_vm1, %v1011_v45  ;;  %v1176_v44 = vld [vmem:[%s5072_s3 + $0x101] sm:$0xff]  ;;  %v3195_v45 = vld [vmem:[%s5072_s3 + $0x111] sm:$0xff] }
  0xc1   :  { %3622 = vmatprep.mubr.msk.bf16.mxu0 %vm81_vm1, %v2343_v46  ;;  %v1184_v46 = vpack.c.bf16 %v1176_v44, %v3193_v39  ;;  %v2516_v47 = vpack.c.bf16 %v3195_v45, %v1176_v44 }
  0xc7   :  { %3479 = vmatmul.mubr.msk.bf16.vlgmr.msra.gmra.mrb[0].mxu1 %vm81_vm1, %v1012_v50 }
  0xc8   :  { %3623 = vmatmul.mubr.msk.bf16.vlgmr.msra.gmra.mrb[0].mxu0 %vm81_vm1, %v2344_v52  ;;  %3495 = vmatpush3.bf16.msra.mxu1 %v1212_v53  ;;  %v4676_v52 = vld [vmem:[%s5073_s5] ss:$0 sm:$0xff] }
  0xc9   :  { %3639 = vmatpush3.bf16.msra.mxu0 %v2544_v55  ;;  %3482 = vmatprep.mubr.msk.bf16.mxu1 %vm81_vm1, %v1013_v54 }
  0xca   :  { %3626 = vmatprep.mubr.msk.bf16.mxu0 %vm81_vm1, %v2345_v56 }
  0xcf   :  { %3483 = vmatmul.mubr.msk.bf16.gmra.mrb[4].mxu1 %vm81_vm1, %v1014_v62 }
  0xd0   :  { %3627 = vmatmul.mubr.msk.bf16.gmra.mrb[4].mxu0 %vm81_vm1, %v2346_v63  ;;  %3486 = vmatprep.mubr.msk.bf16.mxu1 %vm81_vm1, %v1015_v0 }
  0xd1   :  { %3630 = vmatprep.mubr.msk.bf16.mxu0 %vm81_vm1, %v2347_v1  ;;  %v3915_v1 = vmov 0.0  }
  0xd2   :  { %2874 = vst.msk [vmem:[%s5074_s8 + $0x8] sm:$0x3] %vm2873_vm3, %v3915_v1  ;;  %2876 = vst.msk [vmem:[%s5074_s8 + $0x18] sm:$0x3] %vm2873_vm3, %v3915_v1 }
  0xd3   :  { %2875 = vst.msk [vmem:[%s5074_s8 + $0x10] sm:$0xff] %vm2684_vm2, %v3915_v1  ;;  %2877 = vst.msk [vmem:[%s5074_s8 + $0x20] sm:$0xff] %vm2684_vm2, %v3915_v1 }
  0xd4   :  { %2878 = vst.msk [vmem:[%s5074_s8 + $0x28] sm:$0x3] %vm2873_vm3, %v3915_v1  ;;  %2880 = vst.msk [vmem:[%s5074_s8 + $0x38] sm:$0x3] %vm2873_vm3, %v3915_v1 }
  0xd5   :  { %2879 = vst.msk [vmem:[%s5074_s8 + $0x30] sm:$0xff] %vm2684_vm2, %v3915_v1  ;;  %2881 = vst.msk [vmem:[%s5074_s8 + $0x40] sm:$0xff] %vm2684_vm2, %v3915_v1 }
  0xd6   :  { %2882 = vst.msk [vmem:[%s5074_s8 + $0x48] sm:$0x3] %vm2873_vm3, %v3915_v1  ;;  %2884 = vst.msk [vmem:[%s5074_s8 + $0x58] sm:$0x3] %vm2873_vm3, %v3915_v1 }
  0xd7   :  { %3487 = vmatmul.mubr.msk.bf16.gmra.mrb[8].mxu1 %vm81_vm1, %v1016_v6  ;;  %2883 = vst.msk [vmem:[%s5074_s8 + $0x50] sm:$0xff] %vm2684_vm2, %v3915_v1  ;;  %2885 = vst.msk [vmem:[%s5074_s8 + $0x60] sm:$0xff] %vm2684_vm2, %v3915_v1 }
  0xd8   :  { %3631 = vmatmul.mubr.msk.bf16.gmra.mrb[8].mxu0 %vm81_vm1, %v2348_v7  ;;  %3490 = vmatprep.mubr.msk.bf16.mxu1 %vm81_vm1, %v1017_v8  ;;  %2886 = vst.msk [vmem:[%s5074_s8 + $0x68] sm:$0x3] %vm2873_vm3, %v3915_v1  ;;  %2888 = vst.msk [vmem:[%s5074_s8 + $0x78] sm:$0x3] %vm2873_vm3, %v3915_v1 }
  0xd9   :  { %3634 = vmatprep.mubr.msk.bf16.mxu0 %vm81_vm1, %v2349_v9  ;;  %2887 = vst.msk [vmem:[%s5074_s8 + $0x70] sm:$0xff] %vm2684_vm2, %v3915_v1  ;;  %2889 = vst.msk [vmem:[%s5074_s8 + $0x80] sm:$0xff] %vm2684_vm2, %v3915_v1 }
  0xda   :  { %2890 = vst.msk [vmem:[%s5074_s8 + $0x88] sm:$0x3] %vm2873_vm3, %v3915_v1  ;;  %2892 = vst.msk [vmem:[%s5074_s8 + $0x98] sm:$0x3] %vm2873_vm3, %v3915_v1 }
  0xdb   :  { %2894 = vst.msk [vmem:[%s5074_s8 + $0xa8] sm:$0x3] %vm2873_vm3, %v3915_v1  ;;  %2896 = vst.msk [vmem:[%s5074_s8 + $0xb8] sm:$0x3] %vm2873_vm3, %v3915_v1 }
  0xdc   :  { %2895 = vst.msk [vmem:[%s5074_s8 + $0xb0] sm:$0xff] %vm2684_vm2, %v3915_v1  ;;  %2897 = vst.msk [vmem:[%s5074_s8 + $0xc0] sm:$0xff] %vm2684_vm2, %v3915_v1 }
  0xdd   :  { %2898 = vst.msk [vmem:[%s5074_s8 + $0xc8] sm:$0x3] %vm2873_vm3, %v3915_v1  ;;  %2900 = vst.msk [vmem:[%s5074_s8 + $0xd8] sm:$0x3] %vm2873_vm3, %v3915_v1 }
  0xde   :  { %2899 = vst.msk [vmem:[%s5074_s8 + $0xd0] sm:$0xff] %vm2684_vm2, %v3915_v1  ;;  %2901 = vst.msk [vmem:[%s5074_s8 + $0xe0] sm:$0xff] %vm2684_vm2, %v3915_v1 }
  0xdf   :  { %3491 = vmatmul.mubr.msk.bf16.gmra.mrb[12].mxu1 %vm81_vm1, %v1018_v15  ;;  %2902 = vst.msk [vmem:[%s5074_s8 + $0xe8] sm:$0x3] %vm2873_vm3, %v3915_v1  ;;  %2904 = vst.msk [vmem:[%s5074_s8 + $0xf8] sm:$0x3] %vm2873_vm3, %v3915_v1 }
  0xe0   :  { %3635 = vmatmul.mubr.msk.bf16.gmra.mrb[12].mxu0 %vm81_vm1, %v2350_v16  ;;  %3496 = vmatprep.mubr.msk.bf16.mxu1 %vm81_vm1, %v1177_v17  ;;  %2903 = vst.msk [vmem:[%s5074_s8 + $0xf0] sm:$0xff] %vm2684_vm2, %v3915_v1  ;;  %2905 = vst.msk [vmem:[%s5074_s8 + $0x100] sm:$0xff] %vm2684_vm2, %v3915_v1 }
  0xe1   :  { %3640 = vmatprep.mubr.msk.bf16.mxu0 %vm81_vm1, %v2509_v18  ;;  %2906 = vst.msk [vmem:[%s5074_s8 + $0x108] sm:$0x3] %vm2873_vm3, %v3915_v1  ;;  %2908 = vst.msk [vmem:[%s5074_s8 + $0x118] sm:$0x3] %vm2873_vm3, %v3915_v1 }
  0xe2   :  { %2907 = vst.msk [vmem:[%s5074_s8 + $0x110] sm:$0xff] %vm2684_vm2, %v3915_v1  ;;  %2909 = vst.msk [vmem:[%s5074_s8 + $0x120] sm:$0xff] %vm2684_vm2, %v3915_v1 }
  0xe3   :  { %2910 = vst.msk [vmem:[%s5074_s8 + $0x128] sm:$0x3] %vm2873_vm3, %v3915_v1  ;;  %2912 = vst.msk [vmem:[%s5074_s8 + $0x138] sm:$0x3] %vm2873_vm3, %v3915_v1 }
  0xe4   :  { %2872 = vst.msk [vmem:[%s5074_s8] sm:$0xff] %vm2684_vm2, %v3915_v1  ;;  %2891 = vst.msk [vmem:[%s5074_s8 + $0x90] sm:$0xff] %vm2684_vm2, %v3915_v1 }
  0xe5   :  { %2893 = vst.msk [vmem:[%s5074_s8 + $0xa0] sm:$0xff] %vm2684_vm2, %v3915_v1  ;;  %2911 = vst.msk [vmem:[%s5074_s8 + $0x130] sm:$0xff] %vm2684_vm2, %v3915_v1 }
  0xe7   :  { %3497 = vmatmul.mubr.msk.bf16.vlgmr.msra.gmra.mrb[0].mxu1 %vm81_vm1, %v1178_v23 }
  0xe8   :  { %3641 = vmatmul.mubr.msk.bf16.vlgmr.msra.gmra.mrb[0].mxu0 %vm81_vm1, %v2510_v24  ;;  %3500 = vmatprep.mubr.msk.bf16.mxu1 %vm81_vm1, %v1179_v25 }
  0xe9   :  { %3644 = vmatprep.mubr.msk.bf16.mxu0 %vm81_vm1, %v2511_v26 }
  0xef   :  { %3501 = vmatmul.mubr.msk.bf16.gmra.mrb[4].mxu1 %vm81_vm1, %v1180_v32 }
  0xf0   :  { %3645 = vmatmul.mubr.msk.bf16.gmra.mrb[4].mxu0 %vm81_vm1, %v2512_v33  ;;  %3504 = vmatprep.mubr.msk.bf16.mxu1 %vm81_vm1, %v1181_v34 }
  0xf1   :  { %3648 = vmatprep.mubr.msk.bf16.mxu0 %vm81_vm1, %v2513_v35 }
  0xf7   :  { %3505 = vmatmul.mubr.msk.bf16.gmra.mrb[8].mxu1 %vm81_vm1, %v1182_v40 }
  0xf8   :  { %3649 = vmatmul.mubr.msk.bf16.gmra.mrb[8].mxu0 %vm81_vm1, %v2514_v41  ;;  %3508 = vmatprep.mubr.msk.bf16.mxu1 %vm81_vm1, %v1183_v42 }
  0xf9   :  { %3652 = vmatprep.mubr.msk.bf16.mxu0 %vm81_vm1, %v2515_v43 }
  0xff   :  { %3509 = vmatmul.mubr.msk.bf16.gmra.mrb[12].mxu1 %vm81_vm1, %v1184_v46 }
 0x100   :  { %3653 = vmatmul.mubr.msk.bf16.gmra.mrb[12].mxu0 %vm81_vm1, %v2516_v47 }
 0x1ba   :  { %v3498_v48 = vpop.f32.mrb[0].mxu1 }
 0x1bb   :  { %v3642_v49 = vpop.f32.mrb[0].mxu0  ;;  %v1248_v50 = vpop.f32.mrb[1].mxu1 }
 0x1bc   :  { %v3656_v51 = vadd.f32 %v3642_v49, %v3498_v48  ;;  %v2580_v53 = vpop.f32.mrb[1].mxu0  ;;  %v3499_v54 = vpop.f32.mrb[2].mxu1 }
 0x1bd   :  { %v3657_v55 = vadd.f32 %v2580_v53, %v1248_v50  ;;  %v3643_v56 = vpop.f32.mrb[2].mxu0  ;;  %v1251_v57 = vpop.f32.mrb[3].mxu1 }
 0x1be   :  { %v3658_v58 = vadd.f32 %v3643_v56, %v3499_v54  ;;  %v2583_v59 = vpop.f32.mrb[3].mxu0  ;;  %v4682_v62 = vadd.f32 %v3656_v51, %v4676_v52 }
 0x1bf   :  { %v4679_v60 = vadd.f32 %v3657_v55, %v4676_v52  ;;  %v3659_v61 = vadd.f32 %v2583_v59, %v1251_v57 }
 0x1c0   :  { %v4850_v3 = vadd.f32 %v3658_v58, %v4676_v52  ;;  %v2688_v11 = vsel %vm2684_vm2, %v4682_v62, 0.0 }
 0x1c1   :  { %v4685_v63 = vadd.f32 %v3659_v61, %v4676_v52  ;;  %v2685_v2 = vsel %vm2684_vm2, %v4679_v60, 0.0 }
 0x1c2   :  { %v3502_v0 = vpop.f32.mrb[4].mxu1  ;;  %v2690_v18 = vsel %vm2684_vm2, %v4850_v3, 0.0 }
 0x1c3   :  { %v2686_v4 = vsel %vm2684_vm2, %v4685_v63, 0.0  ;;  %v3646_v5 = vpop.f32.mrb[4].mxu0  ;;  %v1264_v6 = vpop.f32.mrb[5].mxu1 }
 0x1c4   :  { %v2687_v7 = vadd.f32 %v2686_v4, %v2685_v2  ;;  %v3660_v8 = vadd.f32 %v3646_v5, %v3502_v0  ;;  %v2596_v9 = vpop.f32.mrb[5].mxu0  ;;  %v3503_v10 = vpop.f32.mrb[6].mxu1 }
 0x1c5   :  { %v3661_v12 = vadd.f32 %v2596_v9, %v1264_v6  ;;  %v3647_v13 = vpop.f32.mrb[6].mxu0  ;;  %v1267_v14 = vpop.f32.mrb[7].mxu1 }
 0x1c6   :  { %v2689_v15 = vadd.f32 %v2688_v11, %v2687_v7  ;;  %v3662_v16 = vadd.f32 %v3647_v13, %v3503_v10  ;;  %v2599_v17 = vpop.f32.mrb[7].mxu0  ;;  %v4862_v22 = vadd.f32 %v3660_v8, %v4676_v52 }
 0x1c7   :  { %v4859_v19 = vadd.f32 %v3661_v12, %v4676_v52  ;;  %v3663_v20 = vadd.f32 %v2599_v17, %v1267_v14 }
 0x1c8   :  { %v2691_v21 = vadd.f32 %v2690_v18, %v2689_v15  ;;  %v4870_v27 = vadd.f32 %v3662_v16, %v4676_v52  ;;  %v2696_v35 = vsel %vm2684_vm2, %v4862_v22, 0.0 }
 0x1c9   :  { %v2692_v23 = vsel %vm2684_vm2, %v4859_v19, 0.0  ;;  %v4867_v24 = vadd.f32 %v3663_v20, %v4676_v52 }
 0x1ca   :  { %v2693_v25 = vadd.f32 %v2692_v23, %v2691_v21  ;;  %v3506_v26 = vpop.f32.mrb[8].mxu1  ;;  %v2698_v42 = vsel %vm2684_vm2, %v4870_v27, 0.0 }
 0x1cb   :  { %v2694_v28 = vsel %vm2684_vm2, %v4867_v24, 0.0  ;;  %v3650_v29 = vpop.f32.mrb[8].mxu0  ;;  %v1280_v30 = vpop.f32.mrb[9].mxu1 }
 0x1cc   :  { %v2695_v31 = vadd.f32 %v2694_v28, %v2693_v25  ;;  %v3664_v32 = vadd.f32 %v3650_v29, %v3506_v26  ;;  %v2612_v33 = vpop.f32.mrb[9].mxu0  ;;  %v3507_v34 = vpop.f32.mrb[10].mxu1 }
 0x1cd   :  { %v3665_v36 = vadd.f32 %v2612_v33, %v1280_v30  ;;  %v3651_v37 = vpop.f32.mrb[10].mxu0  ;;  %v1283_v38 = vpop.f32.mrb[11].mxu1 }
 0x1ce   :  { %v2697_v39 = vadd.f32 %v2696_v35, %v2695_v31  ;;  %v3666_v40 = vadd.f32 %v3651_v37, %v3507_v34  ;;  %v2615_v41 = vpop.f32.mrb[11].mxu0  ;;  %v2676_v46 = vadd.f32 %v3664_v32, %v4676_v52 }
 0x1cf   :  { %v2674_v43 = vadd.f32 %v3665_v36, %v4676_v52  ;;  %v3667_v44 = vadd.f32 %v2615_v41, %v1283_v38 }
 0x1d0   :  { %v2699_v45 = vadd.f32 %v2698_v42, %v2697_v39  ;;  %v2677_v51 = vadd.f32 %v3666_v40, %v4676_v52  ;;  %v2704_v61 = vsel %vm2684_vm2, %v2676_v46, 0.0 }
 0x1d1   :  { %v2700_v47 = vsel %vm2684_vm2, %v2674_v43, 0.0  ;;  %v2675_v48 = vadd.f32 %v3667_v44, %v4676_v52 }
 0x1d2   :  { %v2701_v49 = vadd.f32 %v2700_v47, %v2699_v45  ;;  %v3510_v50 = vpop.f32.mrb[12].mxu1  ;;  %v2706_v7 = vsel %vm2684_vm2, %v2677_v51, 0.0 }
 0x1d3   :  { %v2702_v53 = vsel %vm2684_vm2, %v2675_v48, 0.0  ;;  %v3654_v54 = vpop.f32.mrb[12].mxu0  ;;  %v1296_v55 = vpop.f32.mrb[13].mxu1 }
 0x1d4   :  { %v2703_v56 = vadd.f32 %v2702_v53, %v2701_v49  ;;  %v3668_v57 = vadd.f32 %v3654_v54, %v3510_v50  ;;  %v2628_v58 = vpop.f32.mrb[13].mxu0  ;;  %v3511_v59 = vpop.f32.mrb[14].mxu1 }
 0x1d5   :  { %v3669_v0 = vadd.f32 %v2628_v58, %v1296_v55  ;;  %v3655_v1 = vpop.f32.mrb[14].mxu0  ;;  %v1299_v2 = vpop.f32.mrb[15].mxu1 }
 0x1d6   :  { %v2705_v4 = vadd.f32 %v2704_v61, %v2703_v56  ;;  %v3670_v5 = vadd.f32 %v3655_v1, %v3511_v59  ;;  %v2631_v6 = vpop.f32.mrb[15].mxu0  ;;  %v2680_v11 = vadd.f32 %v3668_v57, %v4676_v52 }
 0x1d7   :  { %v2678_v8 = vadd.f32 %v3669_v0, %v4676_v52  ;;  %v3671_v9 = vadd.f32 %v2631_v6, %v1299_v2 }
 0x1d8   :  { %v2707_v10 = vadd.f32 %v2706_v7, %v2705_v4  ;;  %v2681_v15 = vadd.f32 %v3670_v5, %v4676_v52  ;;  %v2712_v18 = vsel %vm2684_vm2, %v2680_v11, 0.0 }
 0x1d9   :  { %v2708_v12 = vsel %vm2684_vm2, %v2678_v8, 0.0  ;;  %v2679_v13 = vadd.f32 %v3671_v9, %v4676_v52 }
 0x1da   :  { %v2709_v14 = vadd.f32 %v2708_v12, %v2707_v10  ;;  %v2714_v21 = vsel %vm2684_vm2, %v2681_v15, 0.0 }
 0x1db   :  { %v2710_v16 = vsel %vm2684_vm2, %v2679_v13, 0.0 }
 0x1dc   :  { %v2711_v17 = vadd.f32 %v2710_v16, %v2709_v14 }
 0x1de   :  { %v2713_v20 = vadd.f32 %v2712_v18, %v2711_v17 }
 0x1e0   :  { %v2715_v23 = vadd.f32 %v2714_v21, %v2713_v20 }
 0x1e2   :  { %v2716_v25 = vrot.slane %v2715_v23, 4 }
 0x1e4   :  { %v2717_v26 = vadd.f32 %v2716_v25, %v2715_v23 }
 0x1e6   :  { %v2718_v28 = vrot.slane %v2717_v26, 2 }
 0x1e8   :  { %v2719_v29 = vadd.f32 %v2718_v28, %v2717_v26 }
 0x1ea   :  { %v2720_v30 = vrot.slane %v2719_v29, 1 }
 0x1ec   :  { %v2721_v31 = vadd.f32 %v2720_v30, %v2719_v29 }
 0x1ee   :  { %v2723_v32 = vmul.f32 0.0078125, %v2721_v31 }
 0x1f0   :  { %v4895_v33 = vsub.f32 %v4679_v60, %v2723_v32  ;;  %v4898_v52 = vsub.f32 %v4685_v63, %v2723_v32  ;;  %v4901_v34 = vsub.f32 %v4682_v62, %v2723_v32  ;;  %v4904_v35 = vsub.f32 %v4850_v3, %v2723_v32 }
 0x1f1   :  { %v4907_v36 = vsub.f32 %v4859_v19, %v2723_v32  ;;  %v4910_v37 = vsub.f32 %v4867_v24, %v2723_v32  ;;  %v4913_v38 = vsub.f32 %v4862_v22, %v2723_v32  ;;  %v4916_v60 = vsub.f32 %v4870_v27, %v2723_v32 }
 0x1f2   :  { %v4918_v63 = vsub.f32 %v2674_v43, %v2723_v32  ;;  %v4920_v39 = vsub.f32 %v2675_v48, %v2723_v32  ;;  %v4922_v62 = vsub.f32 %v2676_v46, %v2723_v32  ;;  %v4924_v3 = vsub.f32 %v2677_v51, %v2723_v32 }
 0x1f3   :  { %v4926_v40 = vsub.f32 %v2678_v8, %v2723_v32  ;;  %v4928_v19 = vsub.f32 %v2679_v13, %v2723_v32  ;;  %v4930_v24 = vsub.f32 %v2680_v11, %v2723_v32  ;;  %v4932_v41 = vsub.f32 %v2681_v15, %v2723_v32 }
 0x1f4   :  { %v2740_v22 = vmul.f32 %v4895_v33, %v4895_v33  ;;  %v2741_v27 = vmul.f32 %v4898_v52, %v4898_v52  ;;  %v2742_v42 = vmul.f32 %v4901_v34, %v4901_v34  ;;  %v2743_v43 = vmul.f32 %v4904_v35, %v4904_v35 }
 0x1f5   :  { %v2744_v47 = vmul.f32 %v4907_v36, %v4907_v36  ;;  %v2745_v50 = vmul.f32 %v4910_v37, %v4910_v37  ;;  %v2746_v54 = vmul.f32 %v4913_v38, %v4913_v38  ;;  %v2747_v57 = vmul.f32 %v4916_v60, %v4916_v60 }
 0x1f6   :  { %v2756_v44 = vsel %vm2684_vm2, %v2740_v22, 0.0  ;;  %v2757_v45 = vsel %vm2684_vm2, %v2741_v27, 0.0  ;;  %v2759_v48 = vsel %vm2684_vm2, %v2742_v42, 0.0  ;;  %v2761_v51 = vsel %vm2684_vm2, %v2743_v43, 0.0 }
 0x1f7   :  { %v2758_v46 = vadd.f32 %v2757_v45, %v2756_v44  ;;  %v2763_v55 = vsel %vm2684_vm2, %v2744_v47, 0.0  ;;  %v2765_v58 = vsel %vm2684_vm2, %v2745_v50, 0.0  ;;  %v2748_v61 = vmul.f32 %v4918_v63, %v4918_v63 }
 0x1f8   :  { %v2767_v0 = vsel %vm2684_vm2, %v2746_v54, 0.0  ;;  %v2749_v2 = vmul.f32 %v4920_v39, %v4920_v39  ;;  %v2769_v4 = vsel %vm2684_vm2, %v2747_v57, 0.0  ;;  %v2750_v6 = vmul.f32 %v4922_v62, %v4922_v62 }
 0x1f9   :  { %v2760_v49 = vadd.f32 %v2759_v48, %v2758_v46  ;;  %v2771_v7 = vsel %vm2684_vm2, %v2748_v61, 0.0  ;;  %v2751_v9 = vmul.f32 %v4924_v3, %v4924_v3  ;;  %v2752_v12 = vmul.f32 %v4926_v40, %v4926_v40 }
 0x1fa   :  { %v2773_v10 = vsel %vm2684_vm2, %v2749_v2, 0.0  ;;  %v2775_v13 = vsel %vm2684_vm2, %v2750_v6, 0.0  ;;  %v2753_v15 = vmul.f32 %v4928_v19, %v4928_v19  ;;  %v2754_v18 = vmul.f32 %v4930_v24, %v4930_v24 }
 0x1fb   :  { %v2762_v53 = vadd.f32 %v2761_v51, %v2760_v49  ;;  %v2777_v16 = vsel %vm2684_vm2, %v2751_v9, 0.0  ;;  %v2779_v20 = vsel %vm2684_vm2, %v2752_v12, 0.0  ;;  %v2755_v23 = vmul.f32 %v4932_v41, %v4932_v41 }
 0x1fc   :  { %v2781_v25 = vsel %vm2684_vm2, %v2753_v15, 0.0  ;;  %v2783_v28 = vsel %vm2684_vm2, %v2754_v18, 0.0 }
 0x1fd   :  { %v2764_v56 = vadd.f32 %v2763_v55, %v2762_v53  ;;  %v2785_v30 = vsel %vm2684_vm2, %v2755_v23, 0.0  ;;  %v3206_v53 = vld [vmem:[%s5075_s6] ss:$0 sm:$0xff] }
 0x1ff   :  { %v2766_v59 = vadd.f32 %v2765_v58, %v2764_v56 }
 0x201   :  { %v2768_v1 = vadd.f32 %v2767_v0, %v2766_v59 }
 0x203   :  { %v2770_v5 = vadd.f32 %v2769_v4, %v2768_v1 }
 0x205   :  { %v2772_v8 = vadd.f32 %v2771_v7, %v2770_v5 }
 0x207   :  { %v2774_v11 = vadd.f32 %v2773_v10, %v2772_v8 }
 0x209   :  { %v2776_v14 = vadd.f32 %v2775_v13, %v2774_v11 }
 0x20b   :  { %v2778_v17 = vadd.f32 %v2777_v16, %v2776_v14 }
 0x20d   :  { %v2780_v21 = vadd.f32 %v2779_v20, %v2778_v17 }
 0x20f   :  { %v2782_v26 = vadd.f32 %v2781_v25, %v2780_v21 }
 0x211   :  { %v2784_v29 = vadd.f32 %v2783_v28, %v2782_v26 }
 0x213   :  { %v2786_v31 = vadd.f32 %v2785_v30, %v2784_v29 }
 0x215   :  { %v2787_v32 = vrot.slane %v2786_v31, 4 }
 0x217   :  { %v2788_v22 = vadd.f32 %v2787_v32, %v2786_v31 }
 0x219   :  { %v2789_v27 = vrot.slane %v2788_v22, 2 }
 0x21b   :  { %v2790_v42 = vadd.f32 %v2789_v27, %v2788_v22 }
 0x21d   :  { %v2791_v43 = vrot.slane %v2790_v42, 1 }
 0x21f   :  { %v2792_v44 = vadd.f32 %v2791_v43, %v2790_v42 }
 0x221   :  { %v2793_v45 = vmul.f32 0.0078125, %v2792_v44 }
 0x223   :  { %v2794_v46 = vadd.f32 1e-06, %v2793_v45 }
 0x225   :  { %3913 = vrsqrt.f32 %v2794_v46 }
 0x22f   :  { %v3914_v47 = vpop.eup %3913 }
 0x230   :  { %v2796_v48 = vmul.f32 %v3914_v47, %v4895_v33  ;;  %v2797_v49 = vmul.f32 %v3914_v47, %v4898_v52  ;;  %v2798_v50 = vmul.f32 %v3914_v47, %v4901_v34  ;;  %v2799_v51 = vmul.f32 %v3914_v47, %v4904_v35 }
 0x231   :  { %v2800_v54 = vmul.f32 %v3914_v47, %v4907_v36  ;;  %v2801_v55 = vmul.f32 %v3914_v47, %v4910_v37  ;;  %v2802_v56 = vmul.f32 %v3914_v47, %v4913_v38  ;;  %v2803_v57 = vmul.f32 %v3914_v47, %v4916_v60 }
 0x232   :  { %v2804_v33 = vmul.f32 %v3914_v47, %v4918_v63  ;;  %v2805_v52 = vmul.f32 %v3914_v47, %v4920_v39  ;;  %v2806_v34 = vmul.f32 %v3914_v47, %v4922_v62  ;;  %v2807_v35 = vmul.f32 %v3914_v47, %v4924_v3  ;;  %v3207_v63 = vld [vmem:[%s5076_s7] ss:$0 sm:$0xff] }
 0x233   :  { %v2808_v58 = vmul.f32 %v3914_v47, %v4926_v40  ;;  %v2809_v59 = vmul.f32 %v3914_v47, %v4928_v19  ;;  %v2810_v36 = vmul.f32 %v3914_v47, %v4930_v24  ;;  %v2811_v37 = vmul.f32 %v3914_v47, %v4932_v41 }
 0x234   :  { %v2818_v61 = vmul.f32 %v3206_v53, %v2796_v48  ;;  %v2819_v38 = vmul.f32 %v3206_v53, %v2797_v49  ;;  %v2820_v0 = vmul.f32 %v3206_v53, %v2798_v50  ;;  %v2821_v60 = vmul.f32 %v3206_v53, %v2799_v51 }
 0x235   :  { %v2822_v39 = vmul.f32 %v3206_v53, %v2800_v54  ;;  %v2823_v62 = vmul.f32 %v3206_v53, %v2801_v55  ;;  %v2824_v1 = vmul.f32 %v3206_v53, %v2802_v56  ;;  %v2825_v3 = vmul.f32 %v3206_v53, %v2803_v57 }
 0x236   :  { %v2826_v2 = vmul.f32 %v3206_v53, %v2804_v33  ;;  %v2827_v40 = vmul.f32 %v3206_v53, %v2805_v52  ;;  %v2828_v4 = vmul.f32 %v3206_v53, %v2806_v34  ;;  %v2829_v19 = vmul.f32 %v3206_v53, %v2807_v35 }
 0x237   :  { %v2830_v5 = vmul.f32 %v3206_v53, %v2808_v58  ;;  %v2831_v24 = vmul.f32 %v3206_v53, %v2809_v59  ;;  %v2832_v6 = vmul.f32 %v3206_v53, %v2810_v36  ;;  %v2833_v41 = vmul.f32 %v3206_v53, %v2811_v37 }
 0x238   :  { %v2840_v7 = vadd.f32 %v3207_v63, %v2818_v61  ;;  %v2841_v8 = vadd.f32 %v3207_v63, %v2819_v38  ;;  %v2842_v9 = vadd.f32 %v3207_v63, %v2820_v0  ;;  %v2843_v10 = vadd.f32 %v3207_v63, %v2821_v60 }
 0x239   :  { %v2844_v11 = vadd.f32 %v3207_v63, %v2822_v39  ;;  %v2845_v12 = vadd.f32 %v3207_v63, %v2823_v62  ;;  %v2846_v13 = vadd.f32 %v3207_v63, %v2824_v1  ;;  %v2847_v14 = vadd.f32 %v3207_v63, %v2825_v3 }
 0x23a   :  { %v2848_v15 = vadd.f32 %v3207_v63, %v2826_v2  ;;  %v2849_v16 = vadd.f32 %v3207_v63, %v2827_v40  ;;  %v2850_v17 = vadd.f32 %v3207_v63, %v2828_v4  ;;  %v2851_v18 = vadd.f32 %v3207_v63, %v2829_v19 }
 0x23b   :  { %v2852_v20 = vadd.f32 %v3207_v63, %v2830_v5  ;;  %v2853_v21 = vadd.f32 %v3207_v63, %v2831_v24  ;;  %v2854_v23 = vadd.f32 %v3207_v63, %v2832_v6  ;;  %v2855_v25 = vadd.f32 %v3207_v63, %v2833_v41 }
 0x23c   :  { %v2856_v26 = vmax.f32 %v2840_v7, 0.0  ;;  %v2857_v28 = vmax.f32 %v2841_v8, 0.0  ;;  %v2858_v29 = vmax.f32 %v2842_v9, 0.0  ;;  %v2859_v30 = vmax.f32 %v2843_v10, 0.0 }
 0x23d   :  { %v2860_v31 = vmax.f32 %v2844_v11, 0.0  ;;  %v2861_v32 = vmax.f32 %v2845_v12, 0.0  ;;  %v2862_v22 = vmax.f32 %v2846_v13, 0.0  ;;  %v2863_v27 = vmax.f32 %v2847_v14, 0.0 }
 0x23e   :  { %v2864_v42 = vmax.f32 %v2848_v15, 0.0  ;;  %v2865_v43 = vmax.f32 %v2849_v16, 0.0  ;;  %v2866_v44 = vmax.f32 %v2850_v17, 0.0  ;;  %v2867_v45 = vmax.f32 %v2851_v18, 0.0  ;;  %3208 = vst.msk [vmem:[%s5074_s8 + $0x11] sm:$0xff] %vm2684_vm2, %v2856_v26  ;;  %3209 = vst.msk [vmem:[%s5074_s8 + $0x21] sm:$0xff] %vm2684_vm2, %v2857_v28 }
 0x23f   :  { %3210 = vst.msk [vmem:[%s5074_s8 + $0x31] sm:$0xff] %vm2684_vm2, %v2858_v29  ;;  %3211 = vst.msk [vmem:[%s5074_s8 + $0x41] sm:$0xff] %vm2684_vm2, %v2859_v30  ;;  %v2868_v46 = vmax.f32 %v2852_v20, 0.0  ;;  %v2869_v47 = vmax.f32 %v2853_v21, 0.0  ;;  %v2870_v48 = vmax.f32 %v2854_v23, 0.0  ;;  %v2871_v49 = vmax.f32 %v2855_v25, 0.0 }
 0x240   :  { %3212 = vst.msk [vmem:[%s5074_s8 + $0x51] sm:$0xff] %vm2684_vm2, %v2860_v31  ;;  %3213 = vst.msk [vmem:[%s5074_s8 + $0x61] sm:$0xff] %vm2684_vm2, %v2861_v32 }
 0x241   :  { %3214 = vst.msk [vmem:[%s5074_s8 + $0x71] sm:$0xff] %vm2684_vm2, %v2862_v22  ;;  %3215 = vst.msk [vmem:[%s5074_s8 + $0x81] sm:$0xff] %vm2684_vm2, %v2863_v27 }
 0x242   :  { %3216 = vst.msk [vmem:[%s5074_s8 + $0xb1] sm:$0xff] %vm2684_vm2, %v2864_v42  ;;  %3217 = vst.msk [vmem:[%s5074_s8 + $0xc1] sm:$0xff] %vm2684_vm2, %v2865_v43 }
 0x243   :  { %3218 = vst.msk [vmem:[%s5074_s8 + $0xd1] sm:$0xff] %vm2684_vm2, %v2866_v44  ;;  %3219 = vst.msk [vmem:[%s5074_s8 + $0xe1] sm:$0xff] %vm2684_vm2, %v2867_v45 }
 0x244   :  { %3220 = vst.msk [vmem:[%s5074_s8 + $0xf1] sm:$0xff] %vm2684_vm2, %v2868_v46  ;;  %3221 = vst.msk [vmem:[%s5074_s8 + $0x101] sm:$0xff] %vm2684_vm2, %v2869_v47 }
 0x245   :  { %3222 = vst.msk [vmem:[%s5074_s8 + $0x111] sm:$0xff] %vm2684_vm2, %v2870_v48  ;;  %3223 = vst.msk [vmem:[%s5074_s8 + $0x121] sm:$0xff] %vm2684_vm2, %v2871_v49 }

// kernel: vae_encoder_pallas.3
= control target key start
LH: loop header
LB: loop body
LE: loop exit
PB: predicated region body
PF: predicated region fallthrough
CT: control target
= control target key end

     0   :  { %s10037_s0 = inlined_call_operand.vmem [shape: f32[2,10,10,16], index: 0, kind: input, shape index: {}]   ;;  %s10038_s1 = inlined_call_operand.vmem [shape: bf16[9,16,32], index: 1, kind: input, shape index: {}]   ;;  %s10039_s2 = inlined_call_operand.vmem [shape: f32[1,32], index: 2, kind: input, shape index: {}]   ;;  %s10040_s3 = inlined_call_operand.vmem [shape: bf16[9,32,32], index: 3, kind: input, shape index: {}]   ;;  %s10041_s4 = inlined_call_operand.vmem [shape: f32[1,32], index: 4, kind: input, shape index: {}]   ;;  %s10042_s5 = inlined_call_operand.vmem [shape: f32[1,32], index: 5, kind: input, shape index: {}]   ;;  %s10043_s6 = inlined_call_operand.vmem [shape: f32[1,32], index: 6, kind: input, shape index: {}]   ;;  %s10044_s7 = inlined_call_operand.vmem [shape: bf16[32,32], index: 7, kind: input, shape index: {}]   ;;  %s10045_s8 = inlined_call_operand.vmem [shape: f32[1,32], index: 8, kind: input, shape index: {}]   ;;  %s10046_s9 = inlined_call_operand.vmem [shape: f32[1,32], index: 9, kind: input, shape index: {}]   ;;  %s10047_s10 = inlined_call_operand.vmem [shape: f32[1,32], index: 10, kind: input, shape index: {}]   ;;  %s10048_s11 = inlined_call_operand.vmem [shape: bf16[9,32,32], index: 11, kind: input, shape index: {}]   ;;  %s10049_s12 = inlined_call_operand.vmem [shape: f32[1,32], index: 12, kind: input, shape index: {}]   ;;  %s10050_s13 = inlined_call_operand.vmem [shape: f32[1,32], index: 13, kind: input, shape index: {}]   ;;  %s10051_s14 = inlined_call_operand.vmem [shape: f32[1,32], index: 14, kind: input, shape index: {}]   ;;  %s10052_s15 = inlined_call_operand.vmem [shape: bf16[32,32], index: 15, kind: input, shape index: {}]   ;;  %s10053_s16 = inlined_call_operand.vmem [shape: f32[1,32], index: 16, kind: input, shape index: {}]   ;;  %s10054_s17 = inlined_call_operand.vmem [shape: f32[1,32], index: 17, kind: input, shape index: {}]   ;;  %s10055_s18 = inlined_call_operand.vmem [shape: f32[1,32], index: 18, kind: input, shape index: {}]   ;;  %s10056_s19 = inlined_call_operand.hbm [shape: f32[2,8,8,32], index: 19, kind: output, shape index: {}]  }
   0x1   :  { %10078 = sst [smem:[#allocation23_spill]] %s10037_s0 }
   0x2   :  { %10079 = sst [smem:[#allocation24_spill]] %s10038_s1 }
   0x3   :  { %10080 = sst [smem:[#allocation25_spill]] %s10039_s2 }
   0x4   :  { %10081 = sst [smem:[#allocation26_spill]] %s10040_s3 }
   0x5   :  { %10082 = sst [smem:[#allocation27_spill]] %s10051_s14 }
   0x6   :  { %s10083_s20 = sld [smem:[#allocation24_spill]]  ;;  %s10084_s14 = sld [smem:[#allocation23_spill]]  ;;  %vm123_vm0 = vcmask 130048  }
   0xc   :  { %v7673_v0 = vld [vmem:[%s10083_s20 + $0x8] sm:$0xff]   ;;  %v7867_v2 = vld [vmem:[%s10084_s14 + $0x11] sm:$0xff]  ;;  %v7674_v8 = vld [vmem:[%s10083_s20] sm:$0xff]  }
   0xd   :  { %v90_v1 = vld [vmem:[%s10084_s14 + $0x1] sm:$0xff]  ;;  %6719 = vmatprep.subr.bf16.mxu0 %v7673_v0  ;;  %v7878_v5 = vld [vmem:[%s10084_s14 + $0x31] sm:$0xff] }
   0xe   :  { %v7872_v3 = vld [vmem:[%s10084_s14 + $0x21] sm:$0xff]  ;;  %v106_v4 = vpack.c.bf16 %v7867_v2, %v90_v1  ;;  %6720 = vmatpush3.bf16.msra.mxu0 %v7673_v0  ;;  %v7897_v10 = vld [vmem:[%s10084_s14 + $0x51] sm:$0xff] }
   0xf   :  { %v7884_v7 = vpack.c.bf16 %v7878_v5, %v7872_v3  ;;  %v7892_v9 = vld [vmem:[%s10084_s14 + $0x41] sm:$0xff]  ;;  %6737 = vmatprep.subr.bf16.mxu0 %v7674_v8  ;;  %v7918_v14 = vld [vmem:[%s10084_s14 + $0x71] sm:$0xff] }
  0x10   :  { %6721 = vmatprep.mubr.msk.bf16.mxu0 %vm123_vm0, %v106_v4  ;;  %v7902_v11 = vpack.c.bf16 %v7897_v10, %v7892_v9  ;;  %v7911_v13 = vld [vmem:[%s10084_s14 + $0x61] sm:$0xff]  ;;  %v7928_v17 = vld [vmem:[%s10084_s14 + $0xb1] sm:$0xff] }
  0x11   :  { %6722 = vmatmul.mubr.msk.bf16.vlgmr.msra.gmra.mrb[0].mxu0 %vm123_vm0, %v7884_v7  ;;  %v98_v16 = vld [vmem:[%s10084_s14 + $0xa1] sm:$0xff]  ;;  %v7675_v18 = vld [vmem:[%s10083_s20 + $0x10] sm:$0xff]   ;;  %v7935_v19 = vpack.c.bf16 %v7918_v14, %v7911_v13  ;;  %v7676_v47 = vld [vmem:[%s10083_s20 + $0x18] sm:$0xff]  }
  0x12   :  { %6738 = vmatpush3.bf16.msra.mxu0 %v7674_v8  ;;  %6725 = vmatprep.mubr.msk.bf16.mxu0 %vm123_vm0, %v7902_v11  ;;  %v110_v20 = vpack.c.bf16 %v7928_v17, %v98_v16  ;;  %v7941_v21 = vld [vmem:[%s10084_s14 + $0xc1] sm:$0xff]  ;;  %v7948_v22 = vld [vmem:[%s10084_s14 + $0xd1] sm:$0xff] }
  0x13   :  { %6755 = vmatprep.subr.bf16.mxu0 %v7675_v18  ;;  %v7953_v23 = vld [vmem:[%s10084_s14 + $0xe1] sm:$0xff]  ;;  %v7963_v26 = vld [vmem:[%s10084_s14 + $0xf1] sm:$0xff]  ;;  %v7967_v27 = vpack.c.bf16 %v7948_v22, %v7941_v21 }
  0x14   :  { %v7971_v28 = vpack.c.bf16 %v7963_v26, %v7953_v23  ;;  %v7976_v29 = vld [vmem:[%s10084_s14 + $0x101] sm:$0xff]  ;;  %v7983_v30 = vld [vmem:[%s10084_s14 + $0x111] sm:$0xff] }
  0x15   :  { %v64_v31 = vld [vmem:[%s10084_s14] sm:$0xff]  ;;  %v7995_v33 = vld [vmem:[%s10084_s14 + $0x10] sm:$0xff]  ;;  %v7999_v34 = vpack.c.bf16 %v7983_v30, %v7976_v29 }
  0x16   :  { %v80_v35 = vpack.c.bf16 %v7995_v33, %v64_v31  ;;  %v8005_v36 = vld [vmem:[%s10084_s14 + $0x12] sm:$0xff]  ;;  %v8010_v37 = vld [vmem:[%s10084_s14 + $0x22] sm:$0xff] }
  0x17   :  { %v8015_v38 = vld [vmem:[%s10084_s14 + $0x32] sm:$0xff]  ;;  %v8020_v39 = vld [vmem:[%s10084_s14 + $0x42] sm:$0xff] }
  0x18   :  { %v8025_v40 = vld [vmem:[%s10084_s14 + $0x20] sm:$0xff]  ;;  %v8030_v41 = vld [vmem:[%s10084_s14 + $0x30] sm:$0xff] }
  0x19   :  { %6726 = vmatmul.mubr.msk.bf16.gmra.mrb[4].mxu0 %vm123_vm0, %v7935_v19  ;;  %v8037_v42 = vld [vmem:[%s10084_s14 + $0x40] sm:$0xff]  ;;  %v8042_v43 = vld [vmem:[%s10084_s14 + $0x50] sm:$0xff]  ;;  %v8051_v46 = vpack.c.bf16 %v8030_v41, %v8025_v40 }
  0x1a   :  { %6729 = vmatprep.mubr.msk.bf16.mxu0 %vm123_vm0, %v110_v20  ;;  %v8058_v48 = vpack.c.bf16 %v8042_v43, %v8037_v42  ;;  %v8063_v49 = vld [vmem:[%s10084_s14 + $0x52] sm:$0xff]  ;;  %v8068_v50 = vld [vmem:[%s10084_s14 + $0x60] sm:$0xff] }
  0x1b   :  { %v8073_v51 = vld [vmem:[%s10084_s14 + $0x70] sm:$0xff]  ;;  %v72_v52 = vld [vmem:[%s10084_s14 + $0xa0] sm:$0xff] }
  0x1c   :  { %v8083_v53 = vld [vmem:[%s10084_s14 + $0x62] sm:$0xff]  ;;  %v8090_v54 = vld [vmem:[%s10084_s14 + $0xb0] sm:$0xff]  ;;  %v8096_v56 = vpack.c.bf16 %v8073_v51, %v8068_v50 }
  0x1d   :  { %v84_v57 = vpack.c.bf16 %v8090_v54, %v72_v52  ;;  %v8102_v58 = vld [vmem:[%s10084_s14 + $0xb2] sm:$0xff]  ;;  %v8107_v59 = vld [vmem:[%s10084_s14 + $0xc2] sm:$0xff] }
  0x1e   :  { %v8112_v60 = vld [vmem:[%s10084_s14 + $0xd2] sm:$0xff]  ;;  %v8117_v61 = vld [vmem:[%s10084_s14 + $0xe2] sm:$0xff] }
  0x1f   :  { %v74_v62 = vld [vmem:[%s10084_s14 + $0xc0] sm:$0xff]  ;;  %v75_v63 = vld [vmem:[%s10084_s14 + $0xd0] sm:$0xff] }
  0x20   :  { %v76_v0 = vld [vmem:[%s10084_s14 + $0xe0] sm:$0xff]  ;;  %v77_v1 = vld [vmem:[%s10084_s14 + $0xf0] sm:$0xff]  ;;  %v8138_v16 = vpack.c.bf16 %v75_v63, %v74_v62 }
  0x21   :  { %6730 = vmatmul.mubr.msk.bf16.gmra.mrb[8].mxu0 %vm123_vm0, %v7967_v27 }
  0x22   :  { %6733 = vmatprep.mubr.msk.bf16.mxu0 %vm123_vm0, %v7971_v28 }
  0x29   :  { %6734 = vmatmul.mubr.msk.bf16.gmra.mrb[12].mxu0 %vm123_vm0, %v7999_v34 }
  0x2a   :  { %6739 = vmatprep.mubr.msk.bf16.mxu0 %vm123_vm0, %v80_v35 }
  0x31   :  { %6740 = vmatmul.mubr.msk.bf16.vlgmr.msra.gmra.mrb[0].mxu0 %vm123_vm0, %v8051_v46 }
  0x32   :  { %6756 = vmatpush3.bf16.msra.mxu0 %v7675_v18  ;;  %6743 = vmatprep.mubr.msk.bf16.mxu0 %vm123_vm0, %v8058_v48  ;;  %v8140_v18 = vpack.c.bf16 %v77_v1, %v76_v0 }
  0x33   :  { %6773 = vmatprep.subr.bf16.mxu0 %v7676_v47 }
  0x39   :  { %6744 = vmatmul.mubr.msk.bf16.gmra.mrb[4].mxu0 %vm123_vm0, %v8096_v56 }
  0x3a   :  { %6747 = vmatprep.mubr.msk.bf16.mxu0 %vm123_vm0, %v84_v57 }
  0x3b   :  { %24 = vsyncpa [#allocation4], 0  ;;  %v8145_v20 = vld [vmem:[%s10084_s14 + $0xf2] sm:$0xff]  ;;  %v8150_v31 = vld [vmem:[%s10084_s14 + $0x102] sm:$0xff]  ;;  %v8175_v35 = vpack.c.bf16 %v8015_v38, %v8010_v37  ;;  %v8179_v45 = vpack.c.bf16 %v8063_v49, %v8020_v39  ;;  %v559_v15 = vpack.c.bf16 %v8025_v40, %v7995_v33  ;;  %v560_v12 = vpack.c.bf16 %v8037_v42, %v8030_v41  ;;  %s10099_s28 = sld [smem:[#allocation26_spill]]  ;;  %s10100_s26 = sld [smem:[#allocation25_spill]] }
  0x3c   :  { %v78_v52 = vld [vmem:[%s10084_s14 + $0x100] sm:$0xff]  ;;  %v79_v57 = vld [vmem:[%s10084_s14 + $0x110] sm:$0xff]  ;;  %v8207_v24 = vpack.c.bf16 %v8145_v20, %v8117_v61  ;;  %v561_v6 = vpack.c.bf16 %v8068_v50, %v8042_v43  ;;  %v563_v40 = vpack.c.bf16 %v74_v62, %v8090_v54  ;;  %v564_v41 = vpack.c.bf16 %v76_v0, %v75_v63  ;;  %s10131_s27 = sld [smem:[#allocation27_spill]] }
  0x3d   :  { %v372_v8 = vld [vmem:[%s10084_s14 + $0x2] sm:$0xff]  ;;  %v8167_v4 = vpack.c.bf16 %v79_v57, %v78_v52  ;;  %v565_v42 = vpack.c.bf16 %v78_v52, %v77_v1  ;;  %v10086_v43 = vpack.c.bf16 %v7872_v3, %v7867_v2  ;;  %v10087_v50 = vpack.c.bf16 %v7892_v9, %v7878_v5  ;;  %v6114_v54 = vld [vmem:[%s10084_s14 + $0x91] sm:$0xff] }
  0x3e   :  { %v388_v55 = vpack.c.bf16 %v8005_v36, %v372_v8  ;;  %v7677_v44 = vld [vmem:[%s10083_s20 + $0x20] sm:$0xff]   ;;  %10085 = vst [vmem:[#allocation6_spill] sm:$0xff] %v8207_v24  ;;  %v10089_v5 = vpack.c.bf16 %v7941_v21, %v7928_v17  ;;  %v10090_v9 = vpack.c.bf16 %v7953_v23, %v7948_v22  ;;  %v10092_v17 = vpack.c.bf16 %v8010_v37, %v8005_v36  ;;  %v7680_v21 = vld [vmem:[%s10083_s20 + $0x38] sm:$0xff]  }
  0x3f   :  { %v380_v8 = vld [vmem:[%s10084_s14 + $0xa2] sm:$0xff]  ;;  %v10093_v22 = vpack.c.bf16 %v8020_v39, %v8015_v38  ;;  %v10094_v23 = vpack.c.bf16 %v8083_v53, %v8063_v49  ;;  %v10097_v36 = vpack.c.bf16 %v8150_v31, %v8145_v20  ;;  %v6087_v49 = vld [vmem:[%s10084_s14 + $0x90] sm:$0xff]  ;;  %vm1587_vm1 = vcmask 261120  }
  0x40   :  { %v392_v25 = vpack.c.bf16 %v8102_v58, %v380_v8  ;;  %v387_v8 = vld [vmem:[%s10084_s14 + $0x112] sm:$0xff]  ;;  %v6006_v33 = vld [vmem:[%s10084_s14 + $0x80] sm:$0xff]  ;;  %vm1589_vm2 = vcmask 254976  }
  0x41   :  { %6748 = vmatmul.mubr.msk.bf16.gmra.mrb[8].mxu0 %vm123_vm0, %v8138_v16  ;;  %v6033_v2 = vld [vmem:[%s10084_s14 + $0x81] sm:$0xff]  ;;  %v8453_v0 = vld [vmem:[%s10100_s26] ss:$0 sm:$0xff] }
  0x42   :  { %6751 = vmatprep.mubr.msk.bf16.mxu0 %vm123_vm0, %v8140_v18  ;;  %v732_v3 = vpack.c.bf16 %v6033_v2, %v7918_v14  ;;  %v6068_v37 = vld [vmem:[%s10084_s14 + $0x122] sm:$0xff] }
  0x43   :  { %v906_v38 = vpack.c.bf16 %v6068_v37, %v387_v8  ;;  %v7681_v39 = vld [vmem:[%s10083_s20 + $0x40] sm:$0xff]  }
  0x44   :  { %v8444_v62 = vld [vmem:[%s10099_s28 + $0x40] sm:$0xff]  }
  0x45   :  { %v7687_v63 = vld [vmem:[%s10099_s28] sm:$0xff]  }
  0x49   :  { %6752 = vmatmul.mubr.msk.bf16.gmra.mrb[12].mxu0 %vm123_vm0, %v8167_v4 }
  0x4a   :  { %6757 = vmatprep.mubr.msk.bf16.mxu0 %vm123_vm0, %v388_v55  ;;  %v379_v55 = vld [vmem:[%s10084_s14 + $0x72] sm:$0xff] }
  0x4b   :  { %v8195_v32 = vpack.c.bf16 %v379_v55, %v8083_v53  ;;  %v1073_v53 = vpack.c.bf16 %v6087_v49, %v6006_v33 }
  0x51   :  { %6758 = vmatmul.mubr.msk.bf16.vlgmr.msra.gmra.mrb[0].mxu0 %vm123_vm0, %v8175_v35 }
  0x52   :  { %6774 = vmatpush3.bf16.msra.mxu0 %v7676_v47  ;;  %6761 = vmatprep.mubr.msk.bf16.mxu0 %vm123_vm0, %v8179_v45  ;;  %v8203_v47 = vpack.c.bf16 %v8112_v60, %v8107_v59 }
  0x53   :  { %6791 = vmatprep.subr.bf16.mxu0 %v7677_v44 }
  0x59   :  { %6762 = vmatmul.mubr.msk.bf16.gmra.mrb[4].mxu0 %vm123_vm0, %v8195_v32 }
  0x5a   :  { %6765 = vmatprep.mubr.msk.bf16.mxu0 %vm123_vm0, %v392_v25  ;;  %v8217_v25 = vpack.c.bf16 %v387_v8, %v8150_v31 }
  0x61   :  { %6766 = vmatmul.mubr.msk.bf16.gmra.mrb[8].mxu0 %vm123_vm0, %v8203_v47 }
  0x62   :  { %6769 = vmatprep.mubr.msk.bf16.mxu0 %vm123_vm0, %v8207_v24  ;;  %v7678_v24 = vld [vmem:[%s10083_s20 + $0x28] sm:$0xff]  }
  0x69   :  { %6770 = vmatmul.mubr.msk.bf16.gmra.mrb[12].mxu0 %vm123_vm0, %v8217_v25 }
  0x6a   :  { %6775 = vmatprep.mubr.msk.bf16.mxu0 %vm123_vm0, %v559_v15  ;;  %v562_v15 = vpack.c.bf16 %v6006_v33, %v8073_v51  ;;  %v10088_v51 = vpack.c.bf16 %v7911_v13, %v7897_v10  ;;  %v10091_v10 = vpack.c.bf16 %v7976_v29, %v7963_v26  ;;  %v6041_v13 = vld [vmem:[%s10084_s14 + $0x121] sm:$0xff]  ;;  %v10095_v29 = vpack.c.bf16 %v8107_v59, %v8102_v58  ;;  %v7682_v58 = vld [vmem:[%s10099_s28 + $0x10] sm:$0xff]   ;;  %v7683_v59 = vld [vmem:[%s10099_s28 + $0x18] sm:$0xff]  }
  0x6b   :  { %v736_v14 = vpack.c.bf16 %v6041_v13, %v7983_v30  ;;  %v10096_v30 = vpack.c.bf16 %v8117_v61, %v8112_v60  ;;  %v8430_v60 = vld [vmem:[%s10099_s28 + $0x30] sm:$0xff]   ;;  %v8437_v61 = vld [vmem:[%s10099_s28 + $0x38] sm:$0xff]  }
  0x6c   :  { %7281 = vmatprep.subr.bf16.mxu1 %v8430_v60 }
  0x6d   :  { %7283 = vmatpush3.bf16.msra.mxu1 %v8430_v60 }
  0x6e   :  { %7282 = vmatprep.subr.bf16.mxu1 %v8437_v61 }
  0x71   :  { %6776 = vmatmul.mubr.msk.bf16.vlgmr.msra.gmra.mrb[0].mxu0 %vm123_vm0, %v560_v12  ;;  %7284 = vmatpush3.bf16.msra.mxu1 %v8437_v61 }
  0x72   :  { %6792 = vmatpush3.bf16.msra.mxu0 %v7677_v44  ;;  %6779 = vmatprep.mubr.msk.bf16.mxu0 %vm123_vm0, %v561_v6  ;;  %v6014_v6 = vld [vmem:[%s10084_s14 + $0x120] sm:$0xff]  ;;  %v7679_v44 = vld [vmem:[%s10083_s20 + $0x30] sm:$0xff]  }
  0x73   :  { %6809 = vmatprep.subr.bf16.mxu0 %v7678_v24  ;;  %v566_v12 = vpack.c.bf16 %v6014_v6, %v79_v57  ;;  %6961 = vmatprep.subr.bf16.mxu1 %v8444_v62 }
  0x79   :  { %6780 = vmatmul.mubr.msk.bf16.gmra.mrb[4].mxu0 %vm123_vm0, %v562_v15 }
  0x7a   :  { %6783 = vmatprep.mubr.msk.bf16.mxu0 %vm123_vm0, %v563_v40 }
  0x81   :  { %6784 = vmatmul.mubr.msk.bf16.gmra.mrb[8].mxu0 %vm123_vm0, %v564_v41 }
  0x82   :  { %6787 = vmatprep.mubr.msk.bf16.mxu0 %vm123_vm0, %v565_v42 }
  0x89   :  { %6788 = vmatmul.mubr.msk.bf16.gmra.mrb[12].mxu0 %vm123_vm0, %v566_v12 }
  0x8a   :  { %6793 = vmatprep.mubr.msk.bf16.mxu0 %vm123_vm0, %v10086_v43 }
  0x91   :  { %6794 = vmatmul.mubr.msk.bf16.vlgmr.msra.gmra.mrb[0].mxu0 %vm123_vm0, %v10087_v50 }
  0x92   :  { %6810 = vmatpush3.bf16.msra.mxu0 %v7678_v24  ;;  %6797 = vmatprep.mubr.msk.bf16.mxu0 %vm123_vm0, %v10088_v51  ;;  %v6060_v24 = vld [vmem:[%s10084_s14 + $0x82] sm:$0xff] }
  0x93   :  { %6827 = vmatprep.subr.bf16.mxu0 %v7679_v44  ;;  %v902_v26 = vpack.c.bf16 %v6060_v24, %v379_v55 }
  0x99   :  { %6798 = vmatmul.mubr.msk.bf16.gmra.mrb[4].mxu0 %vm123_vm0, %v732_v3 }
  0x9a   :  { %6801 = vmatprep.mubr.msk.bf16.mxu0 %vm123_vm0, %v10089_v5 }
  0xa1   :  { %6802 = vmatmul.mubr.msk.bf16.gmra.mrb[8].mxu0 %vm123_vm0, %v10090_v9 }
  0xa2   :  { %6805 = vmatprep.mubr.msk.bf16.mxu0 %vm123_vm0, %v10091_v10 }
  0xa9   :  { %6806 = vmatmul.mubr.msk.bf16.gmra.mrb[12].mxu0 %vm123_vm0, %v736_v14 }
  0xaa   :  { %6811 = vmatprep.mubr.msk.bf16.mxu0 %vm123_vm0, %v10092_v17  ;;  %v7689_v17 = vld [vmem:[%s10099_s28 + $0x8] sm:$0xff]  }
  0xb1   :  { %6812 = vmatmul.mubr.msk.bf16.vlgmr.msra.gmra.mrb[0].mxu0 %vm123_vm0, %v10093_v22 }
  0xb2   :  { %6828 = vmatpush3.bf16.msra.mxu0 %v7679_v44  ;;  %6815 = vmatprep.mubr.msk.bf16.mxu0 %vm123_vm0, %v10094_v23 }
  0xb3   :  { %6845 = vmatprep.subr.bf16.mxu0 %v7680_v21 }
  0xb9   :  { %6816 = vmatmul.mubr.msk.bf16.gmra.mrb[4].mxu0 %vm123_vm0, %v902_v26 }
  0xba   :  { %6819 = vmatprep.mubr.msk.bf16.mxu0 %vm123_vm0, %v10095_v29 }
  0xc1   :  { %6820 = vmatmul.mubr.msk.bf16.gmra.mrb[8].mxu0 %vm123_vm0, %v10096_v30 }
  0xc2   :  { %6823 = vmatprep.mubr.msk.bf16.mxu0 %vm123_vm0, %v10097_v36 }
  0xc9   :  { %6824 = vmatmul.mubr.msk.bf16.gmra.mrb[12].mxu0 %vm123_vm0, %v906_v38  ;;  %v8529_v38 = vld [vmem:[%s10099_s28 + $0x20] sm:$0xff]  }
  0xca   :  { %6829 = vmatprep.mubr.msk.bf16.mxu0 %vm123_vm0, %v8051_v46  ;;  %v6095_v46 = vld [vmem:[%s10084_s14 + $0x130] sm:$0xff] }
  0xd1   :  { %6830 = vmatmul.mubr.msk.bf16.vlgmr.msra.gmra.mrb[0].mxu0 %vm123_vm0, %v8058_v48  ;;  %v1077_v48 = vpack.c.bf16 %v6095_v46, %v6014_v6 }
  0xd2   :  { %6846 = vmatpush3.bf16.msra.mxu0 %v7680_v21  ;;  %6833 = vmatprep.mubr.msk.bf16.mxu0 %vm123_vm0, %v8096_v56  ;;  %v1243_v56 = vpack.c.bf16 %v6114_v54, %v6033_v2 }
  0xd3   :  { %6863 = vmatprep.subr.bf16.mxu0 %v7681_v39 }
  0xd9   :  { %6834 = vmatmul.mubr.msk.bf16.gmra.mrb[4].mxu0 %vm123_vm0, %v1073_v53 }
  0xda   :  { %6837 = vmatprep.mubr.msk.bf16.mxu0 %vm123_vm0, %v8138_v16 }
  0xe1   :  { %6838 = vmatmul.mubr.msk.bf16.gmra.mrb[8].mxu0 %vm123_vm0, %v8140_v18 }
  0xe2   :  { %6841 = vmatprep.mubr.msk.bf16.mxu0 %vm123_vm0, %v8167_v4 }
  0xe9   :  { %6842 = vmatmul.mubr.msk.bf16.gmra.mrb[12].mxu0 %vm123_vm0, %v1077_v48 }
  0xea   :  { %6847 = vmatprep.mubr.msk.bf16.mxu0 %vm123_vm0, %v7884_v7  ;;  %v6122_v7 = vld [vmem:[%s10084_s14 + $0x131] sm:$0xff] }
  0xf1   :  { %6848 = vmatmul.mubr.msk.bf16.vlgmr.msra.gmra.mrb[0].mxu0 %vm123_vm0, %v7902_v11  ;;  %v1247_v11 = vpack.c.bf16 %v6122_v7, %v6041_v13 }
  0xf2   :  { %6864 = vmatpush3.bf16.msra.mxu0 %v7681_v39  ;;  %6851 = vmatprep.mubr.msk.bf16.mxu0 %vm123_vm0, %v7935_v19  ;;  %v6141_v19 = vld [vmem:[%s10084_s14 + $0x92] sm:$0xff] }
  0xf3   :  { %6881 = vmatprep.subr.bf16.mxu0 %v7682_v58 }
  0xf9   :  { %6852 = vmatmul.mubr.msk.bf16.gmra.mrb[4].mxu0 %vm123_vm0, %v1243_v56 }
  0xfa   :  { %6855 = vmatprep.mubr.msk.bf16.mxu0 %vm123_vm0, %v7967_v27  ;;  %v1413_v27 = vpack.c.bf16 %v6141_v19, %v6060_v24 }
 0x101   :  { %6856 = vmatmul.mubr.msk.bf16.gmra.mrb[8].mxu0 %vm123_vm0, %v7971_v28  ;;  %v10098_v28 = vld [vmem:[#allocation6_spill] sm:$0xff] }
 0x102   :  { %6859 = vmatprep.mubr.msk.bf16.mxu0 %vm123_vm0, %v7999_v34 }
 0x109   :  { %6860 = vmatmul.mubr.msk.bf16.gmra.mrb[12].mxu0 %vm123_vm0, %v1247_v11 }
 0x10a   :  { %6865 = vmatprep.mubr.msk.bf16.mxu0 %vm123_vm0, %v8175_v35 }
 0x111   :  { %6866 = vmatmul.mubr.msk.bf16.vlgmr.msra.gmra.mrb[0].mxu0 %vm123_vm0, %v8179_v45  ;;  %v7754_v45 = vmov 0.0  }
 0x112   :  { %6869 = vmatprep.mubr.msk.bf16.mxu0 %vm123_vm0, %v8195_v32  ;;  %v6149_v32 = vld [vmem:[%s10084_s14 + $0x132] sm:$0xff]  ;;  %1595 = vst.msk [vmem:[#allocation2 + $0x30] sm:$0xff] %vm1587_vm1, %v7754_v45  ;;  %1588 = vst.msk [vmem:[#allocation2] sm:$0xff] %vm1587_vm1, %v7754_v45  ;;  %6882 = vmatpush3.bf16.msra.mxu0 %v7682_v58 }
 0x113   :  { %v1417_v34 = vpack.c.bf16 %v6149_v32, %v6068_v37  ;;  %1596 = vst.msk [vmem:[#allocation2 + $0x38] sm:$0x3] %vm1589_vm2, %v7754_v45  ;;  %1590 = vst.msk [vmem:[#allocation2 + $0x8] sm:$0x3] %vm1589_vm2, %v7754_v45  ;;  %6883 = vmatprep.subr.bf16.mxu0 %v7683_v59 }
 0x114   :  { %1591 = vst.msk [vmem:[#allocation2 + $0x10] sm:$0xff] %vm1587_vm1, %v7754_v45  ;;  %1593 = vst.msk [vmem:[#allocation2 + $0x20] sm:$0xff] %vm1587_vm1, %v7754_v45 }
 0x115   :  { %1592 = vst.msk [vmem:[#allocation2 + $0x18] sm:$0x3] %vm1589_vm2, %v7754_v45  ;;  %1594 = vst.msk [vmem:[#allocation2 + $0x28] sm:$0x3] %vm1589_vm2, %v7754_v45 }
 0x116   :  { %1597 = vst.msk [vmem:[#allocation2 + $0x40] sm:$0xff] %vm1587_vm1, %v7754_v45  ;;  %1599 = vst.msk [vmem:[#allocation2 + $0x50] sm:$0xff] %vm1587_vm1, %v7754_v45  ;;  %6884 = vmatpush3.bf16.msra.mxu0 %v7683_v59 }
 0x117   :  { %1598 = vst.msk [vmem:[#allocation2 + $0x48] sm:$0x3] %vm1589_vm2, %v7754_v45  ;;  %1600 = vst.msk [vmem:[#allocation2 + $0x58] sm:$0x3] %vm1589_vm2, %v7754_v45  ;;  %6901 = vmatprep.subr.bf16.mxu0 %v7687_v63 }
 0x118   :  { %1601 = vst.msk [vmem:[#allocation2 + $0x60] sm:$0xff] %vm1587_vm1, %v7754_v45  ;;  %1603 = vst.msk [vmem:[#allocation2 + $0x70] sm:$0xff] %vm1587_vm1, %v7754_v45 }
 0x119   :  { %6870 = vmatmul.mubr.msk.bf16.gmra.mrb[4].mxu0 %vm123_vm0, %v1413_v27  ;;  %1602 = vst.msk [vmem:[#allocation2 + $0x68] sm:$0x3] %vm1589_vm2, %v7754_v45  ;;  %1604 = vst.msk [vmem:[#allocation2 + $0x78] sm:$0x3] %vm1589_vm2, %v7754_v45 }
 0x11a   :  { %6873 = vmatprep.mubr.msk.bf16.mxu0 %vm123_vm0, %v8203_v47  ;;  %1605 = vst.msk [vmem:[#allocation2 + $0x80] sm:$0xff] %vm1587_vm1, %v7754_v45  ;;  %1607 = vst.msk [vmem:[#allocation2 + $0x90] sm:$0xff] %vm1587_vm1, %v7754_v45  ;;  %v1690_v43 = vld [vmem:[#allocation2 + $0x1] sm:$0xff] }
 0x11b   :  { %1606 = vst.msk [vmem:[#allocation2 + $0x88] sm:$0x3] %vm1589_vm2, %v7754_v45  ;;  %1608 = vst.msk [vmem:[#allocation2 + $0x98] sm:$0x3] %vm1589_vm2, %v7754_v45 }
 0x11c   :  { %1609 = vst.msk [vmem:[#allocation2 + $0xa0] sm:$0xff] %vm1587_vm1, %v7754_v45  ;;  %1611 = vst.msk [vmem:[#allocation2 + $0xb0] sm:$0xff] %vm1587_vm1, %v7754_v45 }
 0x11d   :  { %1610 = vst.msk [vmem:[#allocation2 + $0xa8] sm:$0x3] %vm1589_vm2, %v7754_v45  ;;  %1612 = vst.msk [vmem:[#allocation2 + $0xb8] sm:$0x3] %vm1589_vm2, %v7754_v45 }
 0x11e   :  { %1613 = vst.msk [vmem:[#allocation2 + $0xc0] sm:$0xff] %vm1587_vm1, %v7754_v45  ;;  %1615 = vst.msk [vmem:[#allocation2 + $0xd0] sm:$0xff] %vm1587_vm1, %v7754_v45 }
 0x11f   :  { %1614 = vst.msk [vmem:[#allocation2 + $0xc8] sm:$0x3] %vm1589_vm2, %v7754_v45  ;;  %1616 = vst.msk [vmem:[#allocation2 + $0xd8] sm:$0x3] %vm1589_vm2, %v7754_v45 }
 0x120   :  { %1617 = vst.msk [vmem:[#allocation2 + $0xe0] sm:$0xff] %vm1587_vm1, %v7754_v45  ;;  %1619 = vst.msk [vmem:[#allocation2 + $0xf0] sm:$0xff] %vm1587_vm1, %v7754_v45 }
 0x121   :  { %6874 = vmatmul.mubr.msk.bf16.gmra.mrb[8].mxu0 %vm123_vm0, %v10098_v28  ;;  %1618 = vst.msk [vmem:[#allocation2 + $0xe8] sm:$0x3] %vm1589_vm2, %v7754_v45  ;;  %1620 = vst.msk [vmem:[#allocation2 + $0xf8] sm:$0x3] %vm1589_vm2, %v7754_v45 }
 0x122   :  { %6877 = vmatprep.mubr.msk.bf16.mxu0 %vm123_vm0, %v8217_v25  ;;  %1621 = vst.msk [vmem:[#allocation2 + $0x100] sm:$0xff] %vm1587_vm1, %v7754_v45  ;;  %1623 = vst.msk [vmem:[#allocation2 + $0x110] sm:$0xff] %vm1587_vm1, %v7754_v45 }
 0x123   :  { %1622 = vst.msk [vmem:[#allocation2 + $0x108] sm:$0x3] %vm1589_vm2, %v7754_v45  ;;  %1624 = vst.msk [vmem:[#allocation2 + $0x118] sm:$0x3] %vm1589_vm2, %v7754_v45 }
 0x124   :  { %1625 = vst.msk [vmem:[#allocation2 + $0x120] sm:$0xff] %vm1587_vm1, %v7754_v45  ;;  %1627 = vst.msk [vmem:[#allocation2 + $0x130] sm:$0xff] %vm1587_vm1, %v7754_v45  ;;  %v1698_v59 = vld [vmem:[#allocation2 + $0xa1] sm:$0xff] }
 0x125   :  { %1626 = vst.msk [vmem:[#allocation2 + $0x128] sm:$0x3] %vm1589_vm2, %v7754_v45  ;;  %1628 = vst.msk [vmem:[#allocation2 + $0x138] sm:$0x3] %vm1589_vm2, %v7754_v45 }
 0x129   :  { %6878 = vmatmul.mubr.msk.bf16.gmra.mrb[12].mxu0 %vm123_vm0, %v1417_v34 }
 0x1e4   :  { %v6867_v1 = vpop.f32.mrb[0].mxu0 }
 0x1e5   :  { %v8456_v4 = vadd.f32 %v6867_v1, %v8453_v0  ;;  %v1485_v16 = vpop.f32.mrb[1].mxu0 }
 0x1e6   :  { %v8459_v18 = vadd.f32 %v8453_v0, %v1485_v16  ;;  %v6868_v20 = vpop.f32.mrb[2].mxu0 }
 0x1e7   :  { %v1631_v31 = vmax.f32 %v8456_v4, 0.0  ;;  %v8463_v35 = vadd.f32 %v6868_v20, %v8453_v0  ;;  %v1488_v52 = vpop.f32.mrb[3].mxu0 }
 0x1e8   :  { %v1629_v57 = vmax.f32 %v8459_v18, 0.0  ;;  %v8467_v55 = vadd.f32 %v8453_v0, %v1488_v52 }
 0x1e9   :  { %1648 = vst.msk [vmem:[#allocation2 + $0x31] sm:$0xff] %vm1587_vm1, %v1631_v31  ;;  %v1632_v47 = vmax.f32 %v8463_v35, 0.0 }
 0x1ea   :  { %1646 = vst.msk [vmem:[#allocation2 + $0x11] sm:$0xff] %vm1587_vm1, %v1629_v57  ;;  %v1630_v8 = vmax.f32 %v8467_v55, 0.0 }
 0x1eb   :  { %1649 = vst.msk [vmem:[#allocation2 + $0x41] sm:$0xff] %vm1587_vm1, %v1632_v47 }
 0x1ec   :  { %1647 = vst.msk [vmem:[#allocation2 + $0x21] sm:$0xff] %vm1587_vm1, %v1630_v8  ;;  %v6871_v25 = vpop.f32.mrb[4].mxu0 }
 0x1ed   :  { %v8476_v33 = vadd.f32 %v6871_v25, %v8453_v0  ;;  %v1501_v15 = vpop.f32.mrb[5].mxu0 }
 0x1ee   :  { %v8479_v40 = vadd.f32 %v8453_v0, %v1501_v15  ;;  %v6872_v41 = vpop.f32.mrb[6].mxu0 }
 0x1ef   :  { %v1635_v42 = vmax.f32 %v8476_v33, 0.0  ;;  %v8483_v6 = vadd.f32 %v6872_v41, %v8453_v0  ;;  %v1504_v12 = vpop.f32.mrb[7].mxu0 }
 0x1f0   :  { %v1633_v44 = vmax.f32 %v8479_v40, 0.0  ;;  %v8487_v50 = vadd.f32 %v8453_v0, %v1504_v12  ;;  %v8499_v10 = vld [vmem:[#allocation2 + $0x31] sm:$0xff] }
 0x1f1   :  { %1652 = vst.msk [vmem:[#allocation2 + $0x71] sm:$0xff] %vm1587_vm1, %v1635_v42  ;;  %v1636_v51 = vmax.f32 %v8483_v6, 0.0  ;;  %v8491_v2 = vld [vmem:[#allocation2 + $0x11] sm:$0xff] }
 0x1f2   :  { %1650 = vst.msk [vmem:[#allocation2 + $0x51] sm:$0xff] %vm1587_vm1, %v1633_v44  ;;  %v1634_v3 = vmax.f32 %v8487_v50, 0.0  ;;  %v1706_v5 = vpack.c.bf16 %v8491_v2, %v1690_v43  ;;  %v8533_v49 = vld [vmem:[#allocation2 + $0x41] sm:$0xff] }
 0x1f3   :  { %1653 = vst.msk [vmem:[#allocation2 + $0x81] sm:$0xff] %vm1587_vm1, %v1636_v51  ;;  %v8497_v9 = vld [vmem:[#allocation2 + $0x21] sm:$0xff] }
 0x1f4   :  { %1651 = vst.msk [vmem:[#allocation2 + $0x61] sm:$0xff] %vm1587_vm1, %v1634_v3  ;;  %v6875_v13 = vpop.f32.mrb[8].mxu0  ;;  %6885 = vmatprep.mubr.msk.bf16.mxu0 %vm1587_vm1, %v1706_v5  ;;  %v8505_v14 = vpack.c.bf16 %v8499_v10, %v8497_v9  ;;  %v7688_v43 = vld [vmem:[%s10099_s28 + $0x48] sm:$0xff]   ;;  %v1662_v44 = vld [vmem:[#allocation2] sm:$0xff]  ;;  %v7690_v5 = vld [vmem:[%s10099_s28 + $0x50] sm:$0xff]  }
 0x1f5   :  { %v8511_v21 = vadd.f32 %v6875_v13, %v8453_v0  ;;  %v1517_v22 = vpop.f32.mrb[9].mxu0 }
 0x1f6   :  { %v8514_v23 = vadd.f32 %v8453_v0, %v1517_v22  ;;  %v6876_v24 = vpop.f32.mrb[10].mxu0  ;;  %6886 = vmatmul.mubr.msk.bf16.vlgmr.msra.gmra.mrb[16].mxu0 %vm1587_vm1, %v8505_v14  ;;  %v8623_v22 = vld [vmem:[#allocation2 + $0x10] sm:$0xff] }
 0x1f7   :  { %v1639_v26 = vmax.f32 %v8511_v21, 0.0  ;;  %v8520_v29 = vadd.f32 %v6876_v24, %v8453_v0  ;;  %v1520_v30 = vpop.f32.mrb[11].mxu0  ;;  %6902 = vmatpush3.bf16.msra.mxu0 %v7687_v63 }
 0x1f8   :  { %v1637_v36 = vmax.f32 %v8514_v23, 0.0  ;;  %v8524_v37 = vadd.f32 %v8453_v0, %v1520_v30  ;;  %6903 = vmatprep.subr.bf16.mxu0 %v7689_v17  ;;  %v8546_v56 = vld [vmem:[#allocation2 + $0x71] sm:$0xff] }
 0x1f9   :  { %1656 = vst.msk [vmem:[#allocation2 + $0xd1] sm:$0xff] %vm1587_vm1, %v1639_v26  ;;  %v1640_v39 = vmax.f32 %v8520_v29, 0.0  ;;  %v8535_v53 = vld [vmem:[#allocation2 + $0x51] sm:$0xff] }
 0x1fa   :  { %1654 = vst.msk [vmem:[#allocation2 + $0xb1] sm:$0xff] %vm1587_vm1, %v1637_v36  ;;  %v1638_v46 = vmax.f32 %v8524_v37, 0.0  ;;  %v8541_v48 = vpack.c.bf16 %v8535_v53, %v8533_v49 }
 0x1fb   :  { %1657 = vst.msk [vmem:[#allocation2 + $0xe1] sm:$0xff] %vm1587_vm1, %v1640_v39  ;;  %v8544_v54 = vld [vmem:[#allocation2 + $0x61] sm:$0xff]  ;;  %6904 = vmatpush3.bf16.msra.mxu0 %v7689_v17 }
 0x1fc   :  { %1655 = vst.msk [vmem:[#allocation2 + $0xc1] sm:$0xff] %vm1587_vm1, %v1638_v46  ;;  %v6879_v7 = vpop.f32.mrb[12].mxu0  ;;  %6889 = vmatprep.mubr.msk.bf16.mxu0 %vm1587_vm1, %v8541_v48  ;;  %v8553_v11 = vpack.c.bf16 %v8546_v56, %v8544_v54  ;;  %6921 = vmatprep.subr.bf16.mxu0 %v8529_v38 }
 0x1fd   :  { %v8557_v19 = vadd.f32 %v6879_v7, %v8453_v0  ;;  %v1533_v27 = vpop.f32.mrb[13].mxu0  ;;  %v1678_v7 = vpack.c.bf16 %v8623_v22, %v1662_v44 }
 0x1fe   :  { %v8560_v28 = vadd.f32 %v8453_v0, %v1533_v27  ;;  %v6880_v32 = vpop.f32.mrb[14].mxu0  ;;  %6890 = vmatmul.mubr.msk.bf16.gmra.mrb[20].mxu0 %vm1587_vm1, %v8553_v11 }
 0x1ff   :  { %v1643_v34 = vmax.f32 %v8557_v19, 0.0  ;;  %v8566_v45 = vadd.f32 %v6880_v32, %v8453_v0  ;;  %v1536_v58 = vpop.f32.mrb[15].mxu0  ;;  %v2357_v32 = vpack.c.bf16 %v8497_v9, %v8491_v2  ;;  %v2358_v9 = vpack.c.bf16 %v8533_v49, %v8499_v10  ;;  %v8674_v10 = vld [vmem:[#allocation2 + $0x60] sm:$0xff] }
 0x200   :  { %v1641_v63 = vmax.f32 %v8560_v28, 0.0  ;;  %v8570_v1 = vadd.f32 %v8453_v0, %v1536_v58  ;;  %v8579_v57 = vld [vmem:[#allocation2 + $0xd1] sm:$0xff]  ;;  %v7694_v49 = vld [vmem:[%s10099_s28 + $0x60] sm:$0xff]  }
 0x201   :  { %1660 = vst.msk [vmem:[#allocation2 + $0x111] sm:$0xff] %vm1587_vm1, %v1643_v34  ;;  %v1644_v16 = vmax.f32 %v8566_v45, 0.0  ;;  %v8574_v20 = vld [vmem:[#allocation2 + $0xb1] sm:$0xff]  ;;  %v8642_v34 = vld [vmem:[#allocation2 + $0x20] sm:$0xff] }
 0x202   :  { %1658 = vst.msk [vmem:[#allocation2 + $0xf1] sm:$0xff] %vm1587_vm1, %v1641_v63  ;;  %v1642_v31 = vmax.f32 %v8570_v1, 0.0  ;;  %v1710_v52 = vpack.c.bf16 %v8574_v20, %v1698_v59  ;;  %v8581_v47 = vld [vmem:[#allocation2 + $0xe0] sm:$0xff]  ;;  %v8586_v8 = vld [vmem:[#allocation2 + $0xb0] sm:$0xff] }
 0x203   :  { %1661 = vst.msk [vmem:[#allocation2 + $0x121] sm:$0xff] %vm1587_vm1, %v1644_v16  ;;  %v8584_v0 = vld [vmem:[#allocation2 + $0xc1] sm:$0xff]  ;;  %v8598_v42 = vld [vmem:[#allocation2 + $0xd0] sm:$0xff] }
 0x204   :  { %v8588_v25 = vld [vmem:[#allocation2 + $0xc0] sm:$0xff]  ;;  %1659 = vst.msk [vmem:[#allocation2 + $0x101] sm:$0xff] %vm1587_vm1, %v1642_v31  ;;  %6893 = vmatprep.mubr.msk.bf16.mxu0 %vm1587_vm1, %v1710_v52  ;;  %v8594_v15 = vpack.c.bf16 %v8579_v57, %v8584_v0  ;;  %v2184_v12 = vpack.c.bf16 %v8581_v47, %v8598_v42  ;;  %v8644_v58 = vld [vmem:[#allocation2 + $0x50] sm:$0xff]  ;;  %v7691_v31 = vld [vmem:[%s10099_s28 + $0x58] sm:$0xff]   ;;  %v2359_v52 = vpack.c.bf16 %v8544_v54, %v8535_v53 }
 0x205   :  { %v2183_v41 = vpack.c.bf16 %v8588_v25, %v8586_v8  ;;  %v8610_v51 = vld [vmem:[#allocation2 + $0xe1] sm:$0xff]  ;;  %v8646_v59 = vld [vmem:[#allocation2 + $0x30] sm:$0xff] }
 0x206   :  { %6894 = vmatmul.mubr.msk.bf16.gmra.mrb[24].mxu0 %vm1587_vm1, %v8594_v15  ;;  %v8650_v63 = vpack.c.bf16 %v8646_v59, %v8642_v34  ;;  %v8652_v16 = vld [vmem:[#allocation2 + $0x40] sm:$0xff] }
 0x207   :  { %6953 = vmatprep.mubr.msk.bf16.mxu1 %vm1587_vm1, %v2183_v41  ;;  %v8656_v2 = vpack.c.bf16 %v8644_v58, %v8652_v16  ;;  %v7693_v41 = vld [vmem:[%s10099_s28 + $0x28] sm:$0xff]   ;;  %v1670_v53 = vld [vmem:[#allocation2 + $0xa0] sm:$0xff] }
 0x208   :  { %6954 = vmatmul.mubr.msk.bf16.vlgmr.msra.gmra.mrb[0].mxu1 %vm1587_vm1, %v2184_v12  ;;  %v8621_v17 = vld [vmem:[#allocation2 + $0x111] sm:$0xff]  ;;  %v8680_v54 = vld [vmem:[#allocation2 + $0x81] sm:$0xff]  ;;  %v1682_v44 = vpack.c.bf16 %v8586_v8, %v1670_v53  ;;  %v8701_v8 = vpack.c.bf16 %v8598_v42, %v8588_v25 }
 0x209   :  { %6962 = vmatpush3.bf16.msra.mxu1 %v8444_v62  ;;  %v8612_v3 = vld [vmem:[#allocation2 + $0xf1] sm:$0xff] }
 0x20a   :  { %6963 = vmatprep.subr.bf16.mxu1 %v7688_v43  ;;  %v8619_v13 = vpack.c.bf16 %v8612_v3, %v8610_v51  ;;  %v8625_v24 = vld [vmem:[#allocation2 + $0x120] sm:$0xff]  ;;  %v2175_v26 = vld [vmem:[#allocation2 + $0xf0] sm:$0xff] }
 0x20b   :  { %v1704_v62 = vld [vmem:[#allocation2 + $0x101] sm:$0xff]  ;;  %v2177_v46 = vld [vmem:[#allocation2 + $0x110] sm:$0xff] }
 0x20c   :  { %v2176_v30 = vld [vmem:[#allocation2 + $0x100] sm:$0xff]  ;;  %6897 = vmatprep.mubr.msk.bf16.mxu0 %vm1587_vm1, %v8619_v13  ;;  %v8630_v36 = vpack.c.bf16 %v8621_v17, %v1704_v62  ;;  %v2186_v27 = vpack.c.bf16 %v8625_v24, %v2177_v46  ;;  %v8682_v12 = vld [vmem:[#allocation2 + $0x70] sm:$0xff] }
 0x20d   :  { %v2185_v39 = vpack.c.bf16 %v2176_v30, %v2175_v26  ;;  %6964 = vmatpush3.bf16.msra.mxu1 %v7688_v43  ;;  %v8686_v43 = vpack.c.bf16 %v8682_v12, %v8674_v10  ;;  %v1986_v25 = vld [vmem:[#allocation2 + $0x12] sm:$0xff]  ;;  %v8715_v42 = vld [vmem:[#allocation2 + $0x121] sm:$0xff] }
 0x20e   :  { %6981 = vmatprep.subr.bf16.mxu1 %v7690_v5  ;;  %6898 = vmatmul.mubr.msk.bf16.gmra.mrb[28].mxu0 %vm1587_vm1, %v8630_v36  ;;  %v1994_v53 = vld [vmem:[#allocation2 + $0xb2] sm:$0xff] }
 0x20f   :  { %6957 = vmatprep.mubr.msk.bf16.mxu1 %vm1587_vm1, %v2185_v39  ;;  %6905 = vmatprep.mubr.msk.bf16.mxu0 %vm1587_vm1, %v1678_v7  ;;  %v2362_v39 = vpack.c.bf16 %v8610_v51, %v8579_v57  ;;  %v2364_v51 = vpack.c.bf16 %v8715_v42, %v8621_v17  ;;  %v1990_v7 = vld [vmem:[#allocation2 + $0x52] sm:$0xff]  ;;  %v7695_v17 = vld [vmem:[%s10099_s28 + $0x68] sm:$0xff]  }
 0x210   :  { %6958 = vmatmul.mubr.msk.bf16.gmra.mrb[4].mxu1 %vm1587_vm1, %v2186_v27  ;;  %v1988_v27 = vld [vmem:[#allocation2 + $0x32] sm:$0xff] }
 0x211   :  { %6965 = vmatprep.mubr.msk.bf16.mxu1 %vm1587_vm1, %v2357_v32  ;;  %v2524_v32 = vld [vmem:[#allocation2 + $0x62] sm:$0xff] }
 0x216   :  { %6906 = vmatmul.mubr.msk.bf16.vlgmr.msra.gmra.mrb[16].mxu0 %vm1587_vm1, %v8650_v63 }
 0x217   :  { %6909 = vmatprep.mubr.msk.bf16.mxu0 %vm1587_vm1, %v8656_v2  ;;  %6922 = vmatpush3.bf16.msra.mxu0 %v8529_v38  ;;  %v2360_v38 = vpack.c.bf16 %v8680_v54, %v8546_v56  ;;  %v8704_v56 = vpack.c.bf16 %v2175_v26, %v8581_v47  ;;  %v2520_v47 = vld [vmem:[#allocation2 + $0x22] sm:$0xff]  ;;  %v8717_v26 = vpack.c.bf16 %v2177_v46, %v2176_v30 }
 0x218   :  { %6966 = vmatmul.mubr.msk.bf16.vlgmr.msra.gmra.mrb[8].mxu1 %vm1587_vm1, %v2358_v9  ;;  %6923 = vmatprep.subr.bf16.mxu0 %v7693_v41  ;;  %v8726_v30 = vpack.c.bf16 %v1988_v27, %v2520_v47 }
 0x219   :  { %6969 = vmatprep.mubr.msk.bf16.mxu1 %vm1587_vm1, %v2359_v52  ;;  %6982 = vmatpush3.bf16.msra.mxu1 %v7690_v5  ;;  %v2361_v5 = vpack.c.bf16 %v8584_v0, %v8574_v20  ;;  %v2363_v20 = vpack.c.bf16 %v1704_v62, %v8612_v3  ;;  %v1985_v0 = vld [vmem:[#allocation2 + $0x2] sm:$0xff]  ;;  %v2535_v3 = vpack.c.bf16 %v2520_v47, %v1986_v25  ;;  %v7696_v52 = vld [vmem:[%s10099_s28 + $0x70] sm:$0xff]  }
 0x21a   :  { %6983 = vmatprep.subr.bf16.mxu1 %v7691_v31  ;;  %v2001_v57 = vpack.c.bf16 %v1986_v25, %v1985_v0  ;;  %v1989_v62 = vld [vmem:[#allocation2 + $0x42] sm:$0xff]  ;;  %v1998_v25 = vld [vmem:[#allocation2 + $0xf2] sm:$0xff] }
 0x21b   :  { %6924 = vmatpush3.bf16.msra.mxu0 %v7693_v41  ;;  %v8728_v46 = vpack.c.bf16 %v1990_v7, %v1989_v62  ;;  %v2536_v9 = vpack.c.bf16 %v1989_v62, %v1988_v27  ;;  %v1993_v41 = vld [vmem:[#allocation2 + $0xa2] sm:$0xff]  ;;  %v1996_v47 = vld [vmem:[#allocation2 + $0xd2] sm:$0xff] }
 0x21c   :  { %6941 = vmatprep.subr.bf16.mxu0 %v8430_v60  ;;  %v1997_v0 = vld [vmem:[#allocation2 + $0xe2] sm:$0xff]  ;;  %v2000_v27 = vld [vmem:[#allocation2 + $0x112] sm:$0xff] }
 0x21d   :  { %6984 = vmatpush3.bf16.msra.mxu1 %v7691_v31  ;;  %v2537_v31 = vpack.c.bf16 %v2524_v32, %v1990_v7  ;;  %v2534_v7 = vld [vmem:[#allocation2 + $0x122] sm:$0xff] }
 0x21e   :  { %7001 = vmatprep.subr.bf16.mxu1 %v7694_v49  ;;  %6910 = vmatmul.mubr.msk.bf16.gmra.mrb[20].mxu0 %vm1587_vm1, %v8686_v43 }
 0x21f   :  { %6913 = vmatprep.mubr.msk.bf16.mxu0 %vm1587_vm1, %v1682_v44  ;;  %v8743_v44 = vld [vmem:[#allocation2 + $0x82] sm:$0xff] }
 0x220   :  { %6970 = vmatmul.mubr.msk.bf16.gmra.mrb[12].mxu1 %vm1587_vm1, %v2360_v38  ;;  %v1992_v38 = vld [vmem:[#allocation2 + $0x72] sm:$0xff] }
 0x221   :  { %6973 = vmatprep.mubr.msk.bf16.mxu1 %vm1587_vm1, %v2361_v5  ;;  %v2528_v5 = vld [vmem:[#allocation2 + $0xc2] sm:$0xff] }
 0x226   :  { %6914 = vmatmul.mubr.msk.bf16.gmra.mrb[24].mxu0 %vm1587_vm1, %v8701_v8 }
 0x227   :  { %6917 = vmatprep.mubr.msk.bf16.mxu0 %vm1587_vm1, %v8704_v56 }
 0x228   :  { %6974 = vmatmul.mubr.msk.bf16.gmra.mrb[0].mxu1 %vm1587_vm1, %v2362_v39  ;;  %v8746_v39 = vpack.c.bf16 %v1992_v38, %v2524_v32 }
 0x229   :  { %6977 = vmatprep.mubr.msk.bf16.mxu1 %vm1587_vm1, %v2363_v20  ;;  %v2005_v20 = vpack.c.bf16 %v1994_v53, %v1993_v41  ;;  %v2181_v41 = vpack.c.bf16 %v8674_v10, %v8644_v58  ;;  %v7698_v58 = vld [vmem:[%s10099_s28 + $0x80] sm:$0xff]  }
 0x22e   :  { %6918 = vmatmul.mubr.msk.bf16.gmra.mrb[28].mxu0 %vm1587_vm1, %v8717_v26 }
 0x22f   :  { %6925 = vmatprep.mubr.msk.bf16.mxu0 %vm1587_vm1, %v2001_v57  ;;  %v2532_v57 = vld [vmem:[#allocation2 + $0x102] sm:$0xff] }
 0x230   :  { %6978 = vmatmul.mubr.msk.bf16.gmra.mrb[4].mxu1 %vm1587_vm1, %v2364_v51  ;;  %v8755_v51 = vpack.c.bf16 %v1996_v47, %v2528_v5  ;;  %v2541_v62 = vpack.c.bf16 %v2532_v57, %v1998_v25  ;;  %v2008_v32 = vpack.c.bf16 %v2000_v27, %v2532_v57 }
 0x231   :  { %6985 = vmatprep.mubr.msk.bf16.mxu1 %vm1587_vm1, %v2535_v3  ;;  %v8757_v3 = vpack.c.bf16 %v1998_v25, %v1997_v0  ;;  %v7701_v25 = vld [vmem:[%s10044_s7 + $0x8] sm:$0xff]  }
 0x236   :  { %6926 = vmatmul.mubr.msk.bf16.vlgmr.msra.gmra.mrb[16].mxu0 %vm1587_vm1, %v8726_v30 }
 0x237   :  { %6929 = vmatprep.mubr.msk.bf16.mxu0 %vm1587_vm1, %v8728_v46  ;;  %6942 = vmatpush3.bf16.msra.mxu0 %v8430_v60  ;;  %v2539_v60 = vpack.c.bf16 %v2528_v5, %v1994_v53 }
 0x238   :  { %6986 = vmatmul.mubr.msk.bf16.vlgmr.msra.gmra.mrb[8].mxu1 %vm1587_vm1, %v2536_v9  ;;  %6943 = vmatprep.subr.bf16.mxu0 %v8437_v61  ;;  %v2179_v9 = vpack.c.bf16 %v8642_v34, %v8623_v22  ;;  %v7697_v22 = vld [vmem:[%s10099_s28 + $0x78] sm:$0xff]   ;;  %v2170_v34 = vld [vmem:[#allocation2 + $0x80] sm:$0xff] }
 0x239   :  { %6989 = vmatprep.mubr.msk.bf16.mxu1 %vm1587_vm1, %v2537_v31  ;;  %7002 = vmatpush3.bf16.msra.mxu1 %v7694_v49  ;;  %v2538_v49 = vpack.c.bf16 %v8743_v44, %v1992_v38  ;;  %v2180_v31 = vpack.c.bf16 %v8652_v16, %v8646_v59  ;;  %v2705_v59 = vld [vmem:[#allocation2 + $0x90] sm:$0xff] }
 0x23a   :  { %7003 = vmatprep.subr.bf16.mxu1 %v7695_v17  ;;  %v2717_v16 = vpack.c.bf16 %v2705_v59, %v2170_v34 }
 0x23b   :  { %6944 = vmatpush3.bf16.msra.mxu0 %v8437_v61  ;;  %v2540_v61 = vpack.c.bf16 %v1997_v0, %v1996_v47  ;;  %v7700_v0 = vld [vmem:[%s10044_s7] sm:$0xff]  }
 0x23c   :  { %7061 = vmatprep.subr.bf16.mxu0 %v7700_v0 }
 0x23d   :  { %7004 = vmatpush3.bf16.msra.mxu1 %v7695_v17  ;;  %v2542_v17 = vpack.c.bf16 %v2534_v7, %v2000_v27 }
 0x23e   :  { %7021 = vmatprep.subr.bf16.mxu1 %v7696_v52  ;;  %6930 = vmatmul.mubr.msk.bf16.gmra.mrb[20].mxu0 %vm1587_vm1, %v8746_v39 }
 0x23f   :  { %6933 = vmatprep.mubr.msk.bf16.mxu0 %vm1587_vm1, %v2005_v20 }
 0x240   :  { %6990 = vmatmul.mubr.msk.bf16.gmra.mrb[12].mxu1 %vm1587_vm1, %v2538_v49 }
 0x241   :  { %6993 = vmatprep.mubr.msk.bf16.mxu1 %vm1587_vm1, %v2539_v60 }
 0x246   :  { %6934 = vmatmul.mubr.msk.bf16.gmra.mrb[24].mxu0 %vm1587_vm1, %v8755_v51 }
 0x247   :  { %6937 = vmatprep.mubr.msk.bf16.mxu0 %vm1587_vm1, %v8757_v3 }
 0x248   :  { %6994 = vmatmul.mubr.msk.bf16.gmra.mrb[0].mxu1 %vm1587_vm1, %v2540_v61 }
 0x249   :  { %6997 = vmatprep.mubr.msk.bf16.mxu1 %vm1587_vm1, %v2541_v62 }
 0x24e   :  { %6938 = vmatmul.mubr.msk.bf16.gmra.mrb[28].mxu0 %vm1587_vm1, %v2008_v32 }
 0x24f   :  { %6945 = vmatprep.mubr.msk.bf16.mxu0 %vm1587_vm1, %v2179_v9 }
 0x250   :  { %6998 = vmatmul.mubr.msk.bf16.gmra.mrb[4].mxu1 %vm1587_vm1, %v2542_v17 }
 0x251   :  { %7005 = vmatprep.mubr.msk.bf16.mxu1 %vm1587_vm1, %v8650_v63  ;;  %v2182_v63 = vpack.c.bf16 %v2170_v34, %v8682_v12  ;;  %v7699_v12 = vld [vmem:[%s10099_s28 + $0x88] sm:$0xff]  }
 0x256   :  { %6946 = vmatmul.mubr.msk.bf16.vlgmr.msra.gmra.mrb[16].mxu0 %vm1587_vm1, %v2180_v31 }
 0x257   :  { %6949 = vmatprep.mubr.msk.bf16.mxu0 %vm1587_vm1, %v2181_v41  ;;  %7062 = vmatpush3.bf16.msra.mxu0 %v7700_v0 }
 0x258   :  { %7006 = vmatmul.mubr.msk.bf16.vlgmr.msra.gmra.mrb[8].mxu1 %vm1587_vm1, %v8656_v2  ;;  %v2713_v2 = vld [vmem:[#allocation2 + $0x130] sm:$0xff]  ;;  %7063 = vmatprep.subr.bf16.mxu0 %v7701_v25 }
 0x259   :  { %7009 = vmatprep.mubr.msk.bf16.mxu1 %vm1587_vm1, %v8686_v43  ;;  %7022 = vmatpush3.bf16.msra.mxu1 %v7696_v52  ;;  %v2721_v10 = vpack.c.bf16 %v2713_v2, %v8625_v24  ;;  %v2883_v43 = vld [vmem:[#allocation2 + $0x91] sm:$0xff] }
 0x25a   :  { %7023 = vmatprep.subr.bf16.mxu1 %v7697_v22  ;;  %v2895_v24 = vpack.c.bf16 %v2883_v43, %v8680_v54 }
 0x25b   :  { %7064 = vmatpush3.bf16.msra.mxu0 %v7701_v25 }
 0x25d   :  { %7024 = vmatpush3.bf16.msra.mxu1 %v7697_v22 }
 0x25e   :  { %7041 = vmatprep.subr.bf16.mxu1 %v7698_v58  ;;  %6950 = vmatmul.mubr.msk.bf16.gmra.mrb[20].mxu0 %vm1587_vm1, %v2182_v63 }
 0x260   :  { %7010 = vmatmul.mubr.msk.bf16.gmra.mrb[12].mxu1 %vm1587_vm1, %v2717_v16 }
 0x261   :  { %7013 = vmatprep.mubr.msk.bf16.mxu1 %vm1587_vm1, %v8701_v8 }
 0x268   :  { %7014 = vmatmul.mubr.msk.bf16.gmra.mrb[0].mxu1 %vm1587_vm1, %v8704_v56 }
 0x269   :  { %7017 = vmatprep.mubr.msk.bf16.mxu1 %vm1587_vm1, %v8717_v26 }
 0x270   :  { %7018 = vmatmul.mubr.msk.bf16.gmra.mrb[4].mxu1 %vm1587_vm1, %v2721_v10 }
 0x271   :  { %7025 = vmatprep.mubr.msk.bf16.mxu1 %vm1587_vm1, %v8505_v14  ;;  %v2891_v14 = vld [vmem:[#allocation2 + $0x131] sm:$0xff] }
 0x278   :  { %7026 = vmatmul.mubr.msk.bf16.vlgmr.msra.gmra.mrb[8].mxu1 %vm1587_vm1, %v8541_v48  ;;  %v2899_v48 = vpack.c.bf16 %v2891_v14, %v8715_v42 }
 0x279   :  { %7029 = vmatprep.mubr.msk.bf16.mxu1 %vm1587_vm1, %v8553_v11  ;;  %7042 = vmatpush3.bf16.msra.mxu1 %v7698_v58  ;;  %v3061_v11 = vld [vmem:[#allocation2 + $0x92] sm:$0xff] }
 0x27a   :  { %7043 = vmatprep.subr.bf16.mxu1 %v7699_v12 }
 0x27d   :  { %7044 = vmatpush3.bf16.msra.mxu1 %v7699_v12 }
 0x280   :  { %7030 = vmatmul.mubr.msk.bf16.gmra.mrb[12].mxu1 %vm1587_vm1, %v2895_v24 }
 0x281   :  { %7033 = vmatprep.mubr.msk.bf16.mxu1 %vm1587_vm1, %v8594_v15  ;;  %v3073_v15 = vpack.c.bf16 %v3061_v11, %v8743_v44 }
 0x288   :  { %7034 = vmatmul.mubr.msk.bf16.gmra.mrb[0].mxu1 %vm1587_vm1, %v8619_v13  ;;  %v3069_v13 = vld [vmem:[#allocation2 + $0x132] sm:$0xff] }
 0x289   :  { %7037 = vmatprep.mubr.msk.bf16.mxu1 %vm1587_vm1, %v8630_v36  ;;  %v3077_v36 = vpack.c.bf16 %v3069_v13, %v2534_v7 }
 0x290   :  { %7038 = vmatmul.mubr.msk.bf16.gmra.mrb[4].mxu1 %vm1587_vm1, %v2899_v48 }
 0x291   :  { %7045 = vmatprep.mubr.msk.bf16.mxu1 %vm1587_vm1, %v8726_v30 }
 0x298   :  { %7046 = vmatmul.mubr.msk.bf16.vlgmr.msra.gmra.mrb[8].mxu1 %vm1587_vm1, %v8728_v46 }
 0x299   :  { %7049 = vmatprep.mubr.msk.bf16.mxu1 %vm1587_vm1, %v8746_v39 }
 0x2a0   :  { %7050 = vmatmul.mubr.msk.bf16.gmra.mrb[12].mxu1 %vm1587_vm1, %v3073_v15 }
 0x2a1   :  { %7053 = vmatprep.mubr.msk.bf16.mxu1 %vm1587_vm1, %v8755_v51  ;;  %v8853_v51 = vld [vmem:[%s10041_s4] ss:$0 sm:$0xff] }
 0x2a8   :  { %7054 = vmatmul.mubr.msk.bf16.gmra.mrb[0].mxu1 %vm1587_vm1, %v8757_v3 }
 0x2a9   :  { %7057 = vmatprep.mubr.msk.bf16.mxu1 %vm1587_vm1, %v2008_v32 }
 0x2b0   :  { %7058 = vmatmul.mubr.msk.bf16.gmra.mrb[4].mxu1 %vm1587_vm1, %v3077_v36 }
 0x319   :  { %v6935_v54 = vpop.f32.mrb[24].mxu0 }
 0x31a   :  { %v2116_v8 = vpop.f32.mrb[25].mxu0 }
 0x31b   :  { %v8832_v56 = vpop.f32.mrb[26].mxu0 }
 0x31c   :  { %v8834_v42 = vpop.f32.mrb[27].mxu0 }
 0x321   :  { %v8836_v26 = vpop.f32.mrb[28].mxu0 }
 0x322   :  { %v8838_v30 = vpop.f32.mrb[29].mxu0 }
 0x323   :  { %v8840_v46 = vpop.f32.mrb[30].mxu0 }
 0x324   :  { %v8842_v52 = vpop.f32.mrb[31].mxu0 }
 0x329   :  { %v6947_v53 = vpop.f32.mrb[16].mxu0 }
 0x32a   :  { %v2262_v44 = vpop.f32.mrb[17].mxu0 }
 0x32b   :  { %v6948_v38 = vpop.f32.mrb[18].mxu0 }
 0x32c   :  { %v2265_v5 = vpop.f32.mrb[19].mxu0 }
 0x331   :  { %v6951_v39 = vpop.f32.mrb[20].mxu0 }
 0x332   :  { %v2278_v20 = vpop.f32.mrb[21].mxu0 }
 0x333   :  { %v6952_v49 = vpop.f32.mrb[22].mxu0 }
 0x334   :  { %v2281_v60 = vpop.f32.mrb[23].mxu0 }
 0x36b   :  { %v7047_v47 = vpop.f32.mrb[8].mxu1 }
 0x36c   :  { %v7285_v57 = vadd.f32 %v7047_v47, %v6947_v53  ;;  %v3153_v3 = vpop.f32.mrb[9].mxu1 }
 0x36d   :  { %v7286_v61 = vadd.f32 %v3153_v3, %v2262_v44  ;;  %v7048_v62 = vpop.f32.mrb[10].mxu1 }
 0x36e   :  { %v7287_v7 = vadd.f32 %v7048_v62, %v6948_v38  ;;  %v3156_v27 = vpop.f32.mrb[11].mxu1  ;;  %v8859_v17 = vadd.f32 %v7285_v57, %v8853_v51 }
 0x36f   :  { %v8856_v32 = vadd.f32 %v7286_v61, %v8853_v51  ;;  %v7288_v9 = vadd.f32 %v3156_v27, %v2265_v5 }
 0x370   :  { %v8867_v22 = vadd.f32 %v7287_v7, %v8853_v51  ;;  %v3260_v2 = vsel %vm1587_vm1, %v8859_v17, 0.0 }
 0x371   :  { %v8862_v31 = vadd.f32 %v7288_v9, %v8853_v51  ;;  %v3257_v41 = vsel %vm1587_vm1, %v8856_v32, 0.0 }
 0x372   :  { %v3262_v48 = vsel %vm1587_vm1, %v8867_v22, 0.0 }
 0x373   :  { %v3258_v34 = vsel %vm1587_vm1, %v8862_v31, 0.0  ;;  %v7051_v58 = vpop.f32.mrb[12].mxu1 }
 0x374   :  { %v3259_v59 = vadd.f32 %v3258_v34, %v3257_v41  ;;  %v7289_v63 = vadd.f32 %v7051_v58, %v6951_v39  ;;  %v3169_v16 = vpop.f32.mrb[13].mxu1 }
 0x375   :  { %v7290_v10 = vadd.f32 %v3169_v16, %v2278_v20  ;;  %v7052_v12 = vpop.f32.mrb[14].mxu1 }
 0x376   :  { %v3261_v43 = vadd.f32 %v3260_v2, %v3259_v59  ;;  %v7291_v24 = vadd.f32 %v7052_v12, %v6952_v49  ;;  %v3172_v14 = vpop.f32.mrb[15].mxu1  ;;  %v8879_v36 = vadd.f32 %v7289_v63, %v8853_v51 }
 0x377   :  { %v8876_v11 = vadd.f32 %v7290_v10, %v8853_v51  ;;  %v7292_v15 = vadd.f32 %v3172_v14, %v2281_v60 }
 0x378   :  { %v3263_v13 = vadd.f32 %v3262_v48, %v3261_v43  ;;  %v3246_v5 = vadd.f32 %v7291_v24, %v8853_v51  ;;  %v3268_v60 = vsel %vm1587_vm1, %v8879_v36, 0.0 }
 0x379   :  { %v3264_v53 = vsel %vm1587_vm1, %v8876_v11, 0.0  ;;  %v3244_v44 = vadd.f32 %v7292_v15, %v8853_v51 }
 0x37a   :  { %v3265_v38 = vadd.f32 %v3264_v53, %v3263_v13  ;;  %v3270_v7 = vsel %vm1587_vm1, %v3246_v5, 0.0 }
 0x37b   :  { %v3266_v39 = vsel %vm1587_vm1, %v3244_v44, 0.0  ;;  %v7055_v20 = vpop.f32.mrb[0].mxu1 }
 0x37c   :  { %v3267_v49 = vadd.f32 %v3266_v39, %v3265_v38  ;;  %v7293_v0 = vadd.f32 %v7055_v20, %v6935_v54  ;;  %v3185_v25 = vpop.f32.mrb[1].mxu1 }
 0x37d   :  { %v7294_v47 = vadd.f32 %v3185_v25, %v2116_v8  ;;  %v7056_v57 = vpop.f32.mrb[2].mxu1 }
 0x37e   :  { %v3269_v3 = vadd.f32 %v3268_v60, %v3267_v49  ;;  %v7295_v61 = vadd.f32 %v7056_v57, %v8832_v56  ;;  %v3188_v62 = vpop.f32.mrb[3].mxu1  ;;  %v3249_v34 = vadd.f32 %v7293_v0, %v8853_v51 }
 0x37f   :  { %v3247_v27 = vadd.f32 %v7294_v47, %v8853_v51  ;;  %v7296_v9 = vadd.f32 %v3188_v62, %v8834_v42 }
 0x380   :  { %v3271_v41 = vadd.f32 %v3270_v7, %v3269_v3  ;;  %v3250_v8 = vadd.f32 %v7295_v61, %v8853_v51  ;;  %v3276_v12 = vsel %vm1587_vm1, %v3249_v34, 0.0 }
 0x381   :  { %v3272_v54 = vsel %vm1587_vm1, %v3247_v27, 0.0  ;;  %v3248_v58 = vadd.f32 %v7296_v9, %v8853_v51 }
 0x382   :  { %v3273_v59 = vadd.f32 %v3272_v54, %v3271_v41  ;;  %v3278_v15 = vsel %vm1587_vm1, %v3250_v8, 0.0 }
 0x383   :  { %v3274_v63 = vsel %vm1587_vm1, %v3248_v58, 0.0  ;;  %v7059_v56 = vpop.f32.mrb[4].mxu1 }
 0x384   :  { %v3275_v16 = vadd.f32 %v3274_v63, %v3273_v59  ;;  %v7297_v2 = vadd.f32 %v7059_v56, %v8836_v26  ;;  %v3201_v10 = vpop.f32.mrb[5].mxu1 }
 0x385   :  { %v7298_v42 = vadd.f32 %v3201_v10, %v8838_v30  ;;  %v7060_v43 = vpop.f32.mrb[6].mxu1 }
 0x386   :  { %v3277_v24 = vadd.f32 %v3276_v12, %v3275_v16  ;;  %v7299_v14 = vadd.f32 %v7060_v43, %v8840_v46  ;;  %v3204_v48 = vpop.f32.mrb[7].mxu1  ;;  %v3253_v39 = vadd.f32 %v7297_v2, %v8853_v51 }
 0x387   :  { %v3251_v13 = vadd.f32 %v7298_v42, %v8853_v51  ;;  %v7300_v53 = vadd.f32 %v3204_v48, %v8842_v52 }
 0x388   :  { %v3279_v38 = vadd.f32 %v3278_v15, %v3277_v24  ;;  %v3254_v30 = vadd.f32 %v7299_v14, %v8853_v51  ;;  %v3284_v25 = vsel %vm1587_vm1, %v3253_v39, 0.0 }
 0x389   :  { %v3280_v26 = vsel %vm1587_vm1, %v3251_v13, 0.0  ;;  %v3252_v20 = vadd.f32 %v7300_v53, %v8853_v51 }
 0x38a   :  { %v3281_v49 = vadd.f32 %v3280_v26, %v3279_v38  ;;  %v3286_v47 = vsel %vm1587_vm1, %v3254_v30, 0.0 }
 0x38b   :  { %v3282_v0 = vsel %vm1587_vm1, %v3252_v20, 0.0 }
 0x38c   :  { %v3283_v46 = vadd.f32 %v3282_v0, %v3281_v49 }
 0x38e   :  { %v3285_v60 = vadd.f32 %v3284_v25, %v3283_v46 }
 0x390   :  { %v3287_v57 = vadd.f32 %v3286_v47, %v3285_v60 }
 0x392   :  { %v3288_v52 = vrot.slane %v3287_v57, 4 }
 0x394   :  { %v3289_v3 = vadd.f32 %v3288_v52, %v3287_v57 }
 0x396   :  { %v3290_v61 = vrot.slane %v3289_v3, 2 }
 0x398   :  { %v3291_v62 = vadd.f32 %v3290_v61, %v3289_v3 }
 0x39a   :  { %v3292_v7 = vrot.slane %v3291_v62, 1 }
 0x39c   :  { %v3293_v9 = vadd.f32 %v3292_v7, %v3291_v62 }
 0x39e   :  { %v3295_v41 = vmul.f32 0.0078125, %v3293_v9 }
 0x3a0   :  { %v8912_v54 = vsub.f32 %v8856_v32, %v3295_v41  ;;  %v8915_v51 = vsub.f32 %v8862_v31, %v3295_v41  ;;  %v8918_v59 = vsub.f32 %v8859_v17, %v3295_v41  ;;  %v8921_v63 = vsub.f32 %v8867_v22, %v3295_v41 }
 0x3a1   :  { %v8924_v56 = vsub.f32 %v8876_v11, %v3295_v41  ;;  %v8926_v16 = vsub.f32 %v3244_v44, %v3295_v41  ;;  %v8929_v2 = vsub.f32 %v8879_v36, %v3295_v41  ;;  %v8931_v10 = vsub.f32 %v3246_v5, %v3295_v41 }
 0x3a2   :  { %v8933_v32 = vsub.f32 %v3247_v27, %v3295_v41  ;;  %v8935_v31 = vsub.f32 %v3248_v58, %v3295_v41  ;;  %v8937_v12 = vsub.f32 %v3249_v34, %v3295_v41  ;;  %v8939_v17 = vsub.f32 %v3250_v8, %v3295_v41 }
 0x3a3   :  { %v8941_v22 = vsub.f32 %v3251_v13, %v3295_v41  ;;  %v3309_v42 = vsub.f32 %v3252_v20, %v3295_v41  ;;  %v8943_v11 = vsub.f32 %v3253_v39, %v3295_v41  ;;  %v8945_v44 = vsub.f32 %v3254_v30, %v3295_v41 }
 0x3a4   :  { %v3312_v36 = vmul.f32 %v8912_v54, %v8912_v54  ;;  %v3313_v5 = vmul.f32 %v8915_v51, %v8915_v51  ;;  %v3314_v27 = vmul.f32 %v8918_v59, %v8918_v59  ;;  %v3315_v34 = vmul.f32 %v8921_v63, %v8921_v63 }
 0x3a5   :  { %v3316_v24 = vmul.f32 %v8924_v56, %v8924_v56  ;;  %v3317_v15 = vmul.f32 %v8926_v16, %v8926_v16  ;;  %v3318_v38 = vmul.f32 %v8929_v2, %v8929_v2  ;;  %v3319_v20 = vmul.f32 %v8931_v10, %v8931_v10 }
 0x3a6   :  { %v3328_v58 = vsel %vm1587_vm1, %v3312_v36, 0.0  ;;  %v3329_v8 = vsel %vm1587_vm1, %v3313_v5, 0.0  ;;  %v3331_v14 = vsel %vm1587_vm1, %v3314_v27, 0.0  ;;  %v3333_v13 = vsel %vm1587_vm1, %v3315_v34, 0.0 }
 0x3a7   :  { %v3330_v43 = vadd.f32 %v3329_v8, %v3328_v58  ;;  %v3335_v39 = vsel %vm1587_vm1, %v3316_v24, 0.0  ;;  %v3337_v49 = vsel %vm1587_vm1, %v3317_v15, 0.0  ;;  %v3320_v0 = vmul.f32 %v8933_v32, %v8933_v32 }
 0x3a8   :  { %v3339_v46 = vsel %vm1587_vm1, %v3318_v38, 0.0  ;;  %v3321_v60 = vmul.f32 %v8935_v31, %v8935_v31  ;;  %v3341_v47 = vsel %vm1587_vm1, %v3319_v20, 0.0  ;;  %v3322_v52 = vmul.f32 %v8937_v12, %v8937_v12 }
 0x3a9   :  { %v3332_v48 = vadd.f32 %v3331_v14, %v3330_v43  ;;  %v3343_v3 = vsel %vm1587_vm1, %v3320_v0, 0.0  ;;  %v3323_v62 = vmul.f32 %v8939_v17, %v8939_v17  ;;  %v3324_v41 = vmul.f32 %v8941_v22, %v8941_v22 }
 0x3aa   :  { %v3345_v7 = vsel %vm1587_vm1, %v3321_v60, 0.0  ;;  %v3347_v36 = vsel %vm1587_vm1, %v3322_v52, 0.0  ;;  %v3325_v27 = vmul.f32 %v3309_v42, %v3309_v42  ;;  %v3326_v8 = vmul.f32 %v8943_v11, %v8943_v11 }
 0x3ab   :  { %v3334_v53 = vadd.f32 %v3333_v13, %v3332_v48  ;;  %v3349_v34 = vsel %vm1587_vm1, %v3323_v62, 0.0  ;;  %v3351_v43 = vsel %vm1587_vm1, %v3324_v41, 0.0  ;;  %v3327_v14 = vmul.f32 %v8945_v44, %v8945_v44 }
 0x3ac   :  { %v3353_v48 = vsel %vm1587_vm1, %v3325_v27, 0.0  ;;  %v3355_v13 = vsel %vm1587_vm1, %v3326_v8, 0.0 }
 0x3ad   :  { %v3336_v26 = vadd.f32 %v3335_v39, %v3334_v53  ;;  %v3357_v38 = vsel %vm1587_vm1, %v3327_v14, 0.0 }
 0x3af   :  { %v3338_v30 = vadd.f32 %v3337_v49, %v3336_v26 }
 0x3b1   :  { %v3340_v25 = vadd.f32 %v3339_v46, %v3338_v30 }
 0x3b3   :  { %v3342_v57 = vadd.f32 %v3341_v47, %v3340_v25 }
 0x3b5   :  { %v3344_v61 = vadd.f32 %v3343_v3, %v3342_v57  ;;  %v8996_v57 = vld [vmem:[%s10042_s5] ss:$0 sm:$0xff] }
 0x3b7   :  { %v3346_v9 = vadd.f32 %v3345_v7, %v3344_v61  ;;  %v9004_v7 = vld [vmem:[%s10043_s6] ss:$0 sm:$0xff] }
 0x3b9   :  { %v3348_v5 = vadd.f32 %v3347_v36, %v3346_v9 }
 0x3bb   :  { %v3350_v58 = vadd.f32 %v3349_v34, %v3348_v5 }
 0x3bd   :  { %v3352_v24 = vadd.f32 %v3351_v43, %v3350_v58 }
 0x3bf   :  { %v3354_v15 = vadd.f32 %v3353_v48, %v3352_v24 }
 0x3c1   :  { %v3356_v53 = vadd.f32 %v3355_v13, %v3354_v15 }
 0x3c3   :  { %v3358_v39 = vadd.f32 %v3357_v38, %v3356_v53 }
 0x3c5   :  { %v3359_v26 = vrot.slane %v3358_v39, 4 }
 0x3c7   :  { %v3360_v20 = vadd.f32 %v3359_v26, %v3358_v39 }
 0x3c9   :  { %v3361_v49 = vrot.slane %v3360_v20, 2 }
 0x3cb   :  { %v3362_v30 = vadd.f32 %v3361_v49, %v3360_v20 }
 0x3cd   :  { %v3363_v0 = vrot.slane %v3362_v30, 1 }
 0x3cf   :  { %v3364_v46 = vadd.f32 %v3363_v0, %v3362_v30 }
 0x3d1   :  { %v3365_v25 = vmul.f32 0.0078125, %v3364_v46 }
 0x3d3   :  { %v3366_v60 = vadd.f32 1e-06, %v3365_v25 }
 0x3d5   :  { %7722 = vrsqrt.f32 %v3366_v60 }
 0x3df   :  { %v7723_v47 = vpop.eup %7722 }
 0x3e0   :  { %v3381_v52 = vmul.f32 %v7723_v47, %v3309_v42  ;;  %v3368_v3 = vmul.f32 %v7723_v47, %v8912_v54  ;;  %v3369_v61 = vmul.f32 %v7723_v47, %v8915_v51  ;;  %v3370_v62 = vmul.f32 %v7723_v47, %v8918_v59 }
 0x3e1   :  { %v3371_v9 = vmul.f32 %v7723_v47, %v8921_v63  ;;  %v3372_v41 = vmul.f32 %v7723_v47, %v8924_v56  ;;  %v3373_v36 = vmul.f32 %v7723_v47, %v8926_v16  ;;  %v3374_v5 = vmul.f32 %v7723_v47, %v8929_v2 }
 0x3e2   :  { %v3403_v42 = vmul.f32 %v8996_v57, %v3381_v52  ;;  %v3390_v54 = vmul.f32 %v8996_v57, %v3368_v3  ;;  %v3391_v51 = vmul.f32 %v8996_v57, %v3369_v61  ;;  %v3392_v59 = vmul.f32 %v8996_v57, %v3370_v62 }
 0x3e3   :  { %v3393_v27 = vmul.f32 %v8996_v57, %v3371_v9  ;;  %v3394_v34 = vmul.f32 %v8996_v57, %v3372_v41  ;;  %v3395_v63 = vmul.f32 %v8996_v57, %v3373_v36  ;;  %v3375_v56 = vmul.f32 %v7723_v47, %v8931_v10 }
 0x3e4   :  { %v3412_v16 = vadd.f32 %v9004_v7, %v3390_v54  ;;  %v3413_v2 = vadd.f32 %v9004_v7, %v3391_v51  ;;  %v3414_v58 = vadd.f32 %v9004_v7, %v3392_v59  ;;  %v3396_v8 = vmul.f32 %v8996_v57, %v3374_v5 }
 0x3e5   :  { %v3415_v43 = vadd.f32 %v9004_v7, %v3393_v27  ;;  %v3416_v24 = vadd.f32 %v9004_v7, %v3394_v34  ;;  %v3417_v14 = vadd.f32 %v9004_v7, %v3395_v63  ;;  %v3397_v48 = vmul.f32 %v8996_v57, %v3375_v56 }
 0x3e6   :  { %v3428_v15 = vmax.f32 %v3412_v16, 0.0  ;;  %v3429_v13 = vmax.f32 %v3413_v2, 0.0  ;;  %v3430_v53 = vmax.f32 %v3414_v58, 0.0  ;;  %v3418_v10 = vadd.f32 %v9004_v7, %v3396_v8 }
 0x3e7   :  { %v3431_v38 = vmax.f32 %v3415_v43, 0.0  ;;  %v3432_v39 = vmax.f32 %v3416_v24, 0.0  ;;  %v3433_v26 = vmax.f32 %v3417_v14, 0.0  ;;  %v3419_v20 = vadd.f32 %v9004_v7, %v3397_v48 }
 0x3e8   :  { %v3444_v49 = vpack.c.bf16 %v3429_v13, %v3428_v15  ;;  %v3434_v30 = vmax.f32 %v3418_v10, 0.0  ;;  %v3376_v0 = vmul.f32 %v7723_v47, %v8933_v32  ;;  %v3377_v46 = vmul.f32 %v7723_v47, %v8935_v31 }
 0x3e9   :  { %v3445_v25 = vpack.c.bf16 %v3431_v38, %v3430_v53  ;;  %v3446_v60 = vpack.c.bf16 %v3433_v26, %v3432_v39  ;;  %v3435_v52 = vmax.f32 %v3419_v20, 0.0  ;;  %v3378_v3 = vmul.f32 %v7723_v47, %v8937_v12 }
 0x3ea   :  { %7065 = vmatprep.mubr.msk.bf16.mxu0 %vm1587_vm1, %v3444_v49  ;;  %v3398_v61 = vmul.f32 %v8996_v57, %v3376_v0  ;;  %v3399_v62 = vmul.f32 %v8996_v57, %v3377_v46  ;;  %v3379_v9 = vmul.f32 %v7723_v47, %v8939_v17  ;;  %v3380_v41 = vmul.f32 %v7723_v47, %v8941_v22 }
 0x3eb   :  { %7066 = vmatmul.mubr.msk.bf16.vlgmr.msra.gmra.mrb[32].mxu0 %vm1587_vm1, %v3445_v25  ;;  %v3447_v32 = vpack.c.bf16 %v3435_v52, %v3434_v30  ;;  %v3400_v31 = vmul.f32 %v8996_v57, %v3378_v3  ;;  %v3425_v36 = vadd.f32 %v9004_v7, %v3403_v42  ;;  %v3382_v5 = vmul.f32 %v7723_v47, %v8943_v11 }
 0x3ec   :  { %7069 = vmatprep.mubr.msk.bf16.mxu0 %vm1587_vm1, %v3446_v60  ;;  %v3420_v12 = vadd.f32 %v9004_v7, %v3398_v61  ;;  %v3421_v54 = vadd.f32 %v9004_v7, %v3399_v62  ;;  %v3401_v51 = vmul.f32 %v8996_v57, %v3379_v9  ;;  %v3402_v17 = vmul.f32 %v8996_v57, %v3380_v41  ;;  %v7702_v41 = vld [vmem:[%s10048_s11 + $0x10] sm:$0xff]  }
 0x3ed   :  { %v3422_v22 = vadd.f32 %v9004_v7, %v3400_v31  ;;  %v3441_v59 = vmax.f32 %v3425_v36, 0.0  ;;  %v3383_v27 = vmul.f32 %v7723_v47, %v8945_v44  ;;  %v3404_v34 = vmul.f32 %v8996_v57, %v3382_v5  ;;  %7081 = vmatprep.subr.bf16.mxu1 %v7702_v41 }
 0x3ee   :  { %v3436_v42 = vmax.f32 %v3420_v12, 0.0  ;;  %v3437_v63 = vmax.f32 %v3421_v54, 0.0  ;;  %v3423_v11 = vadd.f32 %v9004_v7, %v3401_v51  ;;  %v3424_v56 = vadd.f32 %v9004_v7, %v3402_v17  ;;  %7082 = vmatpush3.bf16.msra.mxu1 %v7702_v41 }
 0x3ef   :  { %v3438_v16 = vmax.f32 %v3422_v22, 0.0  ;;  %v3405_v2 = vmul.f32 %v8996_v57, %v3383_v27  ;;  %v3426_v58 = vadd.f32 %v9004_v7, %v3404_v34  ;;  %v9061_v57 = vld [vmem:[%s10045_s8] ss:$0 sm:$0xff] }
 0x3f0   :  { %v3448_v8 = vpack.c.bf16 %v3437_v63, %v3436_v42  ;;  %v3439_v43 = vmax.f32 %v3423_v11, 0.0  ;;  %v3440_v24 = vmax.f32 %v3424_v56, 0.0 }
 0x3f1   :  { %v3427_v14 = vadd.f32 %v9004_v7, %v3405_v2  ;;  %v3442_v48 = vmax.f32 %v3426_v58, 0.0  ;;  %v9104_v2 = vld [vmem:[%s10048_s11] sm:$0xff]  }
 0x3f2   :  { %v3449_v44 = vpack.c.bf16 %v3439_v43, %v3438_v16  ;;  %v3450_v47 = vpack.c.bf16 %v3441_v59, %v3440_v24 }
 0x3f3   :  { %7070 = vmatmul.mubr.msk.bf16.gmra.mrb[36].mxu0 %vm1587_vm1, %v3447_v32  ;;  %v3443_v15 = vmax.f32 %v3427_v14, 0.0  ;;  %v7703_v32 = vld [vmem:[%s10048_s11 + $0x18] sm:$0xff]  }
 0x3f4   :  { %7073 = vmatprep.mubr.msk.bf16.mxu0 %vm1587_vm1, %v3448_v8  ;;  %7083 = vmatprep.subr.bf16.mxu1 %v7703_v32 }
 0x3f5   :  { %v3451_v13 = vpack.c.bf16 %v3443_v15, %v3442_v48  ;;  %7084 = vmatpush3.bf16.msra.mxu1 %v7703_v32 }
 0x3f6   :  { %7101 = vmatprep.subr.bf16.mxu1 %v9104_v2 }
 0x3fb   :  { %7074 = vmatmul.mubr.msk.bf16.gmra.mrb[40].mxu0 %vm1587_vm1, %v3449_v44 }
 0x3fc   :  { %7077 = vmatprep.mubr.msk.bf16.mxu0 %vm1587_vm1, %v3450_v47 }
 0x403   :  { %7078 = vmatmul.mubr.msk.bf16.gmra.mrb[44].mxu0 %vm1587_vm1, %v3451_v13 }
 0x4be   :  { %v7067_v7 = vpop.f32.mrb[32].mxu0 }
 0x4bf   :  { %v3533_v53 = vpop.f32.mrb[33].mxu0  ;;  %v9067_v26 = vadd.f32 %v7067_v7, %v9061_v57 }
 0x4c0   :  { %v9064_v10 = vadd.f32 %v9061_v57, %v3533_v53  ;;  %v7068_v38 = vpop.f32.mrb[34].mxu0 }
 0x4c1   :  { %v3536_v39 = vpop.f32.mrb[35].mxu0  ;;  %v9075_v30 = vadd.f32 %v7068_v38, %v9061_v57  ;;  %v3601_v25 = vsel %vm1587_vm1, %v9067_v26, 0.0 }
 0x4c2   :  { %v9070_v20 = vadd.f32 %v9061_v57, %v3536_v39  ;;  %v3598_v49 = vsel %vm1587_vm1, %v9064_v10, 0.0 }
 0x4c3   :  { %v3603_v61 = vsel %vm1587_vm1, %v9075_v30, 0.0 }
 0x4c4   :  { %v3599_v0 = vsel %vm1587_vm1, %v9070_v20, 0.0 }
 0x4c5   :  { %v3600_v46 = vadd.f32 %v3599_v0, %v3598_v49 }
 0x4c6   :  { %v7071_v60 = vpop.f32.mrb[36].mxu0 }
 0x4c7   :  { %v3602_v52 = vadd.f32 %v3601_v25, %v3600_v46  ;;  %v3549_v3 = vpop.f32.mrb[37].mxu0  ;;  %v3558_v5 = vadd.f32 %v7071_v60, %v9061_v57 }
 0x4c8   :  { %v9084_v62 = vadd.f32 %v9061_v57, %v3549_v3  ;;  %v7072_v9 = vpop.f32.mrb[38].mxu0 }
 0x4c9   :  { %v3604_v31 = vadd.f32 %v3603_v61, %v3602_v52  ;;  %v3552_v36 = vpop.f32.mrb[39].mxu0  ;;  %v3561_v17 = vadd.f32 %v7072_v9, %v9061_v57  ;;  %v3609_v27 = vsel %vm1587_vm1, %v3558_v5, 0.0 }
 0x4ca   :  { %v3605_v12 = vsel %vm1587_vm1, %v9084_v62, 0.0  ;;  %v3553_v54 = vadd.f32 %v9061_v57, %v3552_v36 }
 0x4cb   :  { %v3606_v51 = vadd.f32 %v3605_v12, %v3604_v31  ;;  %v3611_v11 = vsel %vm1587_vm1, %v3561_v17, 0.0 }
 0x4cc   :  { %v3607_v22 = vsel %vm1587_vm1, %v3553_v54, 0.0 }
 0x4cd   :  { %v3608_v59 = vadd.f32 %v3607_v22, %v3606_v51 }
 0x4ce   :  { %v7075_v34 = vpop.f32.mrb[40].mxu0 }
 0x4cf   :  { %v3610_v42 = vadd.f32 %v3609_v27, %v3608_v59  ;;  %v3565_v63 = vpop.f32.mrb[41].mxu0  ;;  %v3574_v43 = vadd.f32 %v7075_v34, %v9061_v57 }
 0x4d0   :  { %v3566_v56 = vadd.f32 %v9061_v57, %v3565_v63  ;;  %v7076_v16 = vpop.f32.mrb[42].mxu0 }
 0x4d1   :  { %v3612_v58 = vadd.f32 %v3611_v11, %v3610_v42  ;;  %v3568_v8 = vpop.f32.mrb[43].mxu0  ;;  %v3577_v44 = vadd.f32 %v7076_v16, %v9061_v57  ;;  %v3617_v13 = vsel %vm1587_vm1, %v3574_v43, 0.0 }
 0x4d2   :  { %v3613_v24 = vsel %vm1587_vm1, %v3566_v56, 0.0  ;;  %v3569_v14 = vadd.f32 %v9061_v57, %v3568_v8 }
 0x4d3   :  { %v3614_v48 = vadd.f32 %v3613_v24, %v3612_v58  ;;  %v3619_v39 = vsel %vm1587_vm1, %v3577_v44, 0.0 }
 0x4d4   :  { %v3615_v47 = vsel %vm1587_vm1, %v3569_v14, 0.0 }
 0x4d5   :  { %v3616_v15 = vadd.f32 %v3615_v47, %v3614_v48 }
 0x4d6   :  { %v7079_v7 = vpop.f32.mrb[44].mxu0 }
 0x4d7   :  { %v3618_v53 = vadd.f32 %v3617_v13, %v3616_v15  ;;  %v3581_v38 = vpop.f32.mrb[45].mxu0  ;;  %v3590_v60 = vadd.f32 %v7079_v7, %v9061_v57 }
 0x4d8   :  { %v3582_v49 = vadd.f32 %v9061_v57, %v3581_v38  ;;  %v7080_v0 = vpop.f32.mrb[46].mxu0 }
 0x4d9   :  { %v3620_v46 = vadd.f32 %v3619_v39, %v3618_v53  ;;  %v3584_v25 = vpop.f32.mrb[47].mxu0  ;;  %v3593_v9 = vadd.f32 %v7080_v0, %v9061_v57  ;;  %v3625_v31 = vsel %vm1587_vm1, %v3590_v60, 0.0 }
 0x4da   :  { %v3621_v52 = vsel %vm1587_vm1, %v3582_v49, 0.0  ;;  %v3585_v3 = vadd.f32 %v9061_v57, %v3584_v25 }
 0x4db   :  { %v3622_v61 = vadd.f32 %v3621_v52, %v3620_v46  ;;  %v3627_v12 = vsel %vm1587_vm1, %v3593_v9, 0.0 }
 0x4dc   :  { %v3623_v41 = vsel %vm1587_vm1, %v3585_v3, 0.0 }
 0x4dd   :  { %v3624_v32 = vadd.f32 %v3623_v41, %v3622_v61 }
 0x4df   :  { %v3626_v36 = vadd.f32 %v3625_v31, %v3624_v32 }
 0x4e1   :  { %v3628_v51 = vadd.f32 %v3627_v12, %v3626_v36 }
 0x4e3   :  { %v3629_v22 = vrot.slane %v3628_v51, 4 }
 0x4e5   :  { %v3630_v59 = vadd.f32 %v3629_v22, %v3628_v51 }
 0x4e7   :  { %v3631_v27 = vrot.slane %v3630_v59, 2 }
 0x4e9   :  { %v3632_v34 = vadd.f32 %v3631_v27, %v3630_v59 }
 0x4eb   :  { %v3633_v42 = vrot.slane %v3632_v34, 1 }
 0x4ed   :  { %v3634_v63 = vadd.f32 %v3633_v42, %v3632_v34 }
 0x4ef   :  { %v3635_v11 = vmul.f32 0.0078125, %v3634_v63 }
 0x4f1   :  { %v9123_v16 = vsub.f32 %v9064_v10, %v3635_v11  ;;  %v9126_v57 = vsub.f32 %v9070_v20, %v3635_v11  ;;  %v9129_v58 = vsub.f32 %v9067_v26, %v3635_v11  ;;  %v9132_v8 = vsub.f32 %v9075_v30, %v3635_v11 }
 0x4f2   :  { %v9135_v24 = vsub.f32 %v9084_v62, %v3635_v11  ;;  %v9137_v48 = vsub.f32 %v3553_v54, %v3635_v11  ;;  %v9139_v47 = vsub.f32 %v3558_v5, %v3635_v11  ;;  %v9141_v15 = vsub.f32 %v3561_v17, %v3635_v11 }
 0x4f3   :  { %v9143_v10 = vsub.f32 %v3566_v56, %v3635_v11  ;;  %v9145_v13 = vsub.f32 %v3569_v14, %v3635_v11  ;;  %v9147_v20 = vsub.f32 %v3574_v43, %v3635_v11  ;;  %v9149_v26 = vsub.f32 %v3577_v44, %v3635_v11 }
 0x4f4   :  { %v9151_v7 = vsub.f32 %v3582_v49, %v3635_v11  ;;  %v9153_v30 = vsub.f32 %v3585_v3, %v3635_v11  ;;  %v9155_v62 = vsub.f32 %v3590_v60, %v3635_v11  ;;  %v9157_v54 = vsub.f32 %v3593_v9, %v3635_v11 }
 0x4f5   :  { %v3652_v5 = vmul.f32 %v9123_v16, %v9123_v16  ;;  %v3653_v17 = vmul.f32 %v9126_v57, %v9126_v57  ;;  %v3654_v56 = vmul.f32 %v9129_v58, %v9129_v58  ;;  %v3655_v43 = vmul.f32 %v9132_v8, %v9132_v8 }
 0x4f6   :  { %v3656_v38 = vmul.f32 %v9135_v24, %v9135_v24  ;;  %v3657_v0 = vmul.f32 %v9137_v48, %v9137_v48  ;;  %v3658_v60 = vmul.f32 %v9139_v47, %v9139_v47  ;;  %v3659_v61 = vmul.f32 %v9141_v15, %v9141_v15 }
 0x4f7   :  { %v3668_v14 = vsel %vm1587_vm1, %v3652_v5, 0.0  ;;  %v3669_v44 = vsel %vm1587_vm1, %v3653_v17, 0.0  ;;  %v3671_v39 = vsel %vm1587_vm1, %v3654_v56, 0.0  ;;  %v3673_v46 = vsel %vm1587_vm1, %v3655_v43, 0.0 }
 0x4f8   :  { %v3670_v53 = vadd.f32 %v3669_v44, %v3668_v14  ;;  %v3675_v52 = vsel %vm1587_vm1, %v3656_v38, 0.0  ;;  %v3677_v9 = vsel %vm1587_vm1, %v3657_v0, 0.0  ;;  %v3660_v32 = vmul.f32 %v9143_v10, %v9143_v10 }
 0x4f9   :  { %v3679_v31 = vsel %vm1587_vm1, %v3658_v60, 0.0  ;;  %v3661_v12 = vmul.f32 %v9145_v13, %v9145_v13  ;;  %v3681_v51 = vsel %vm1587_vm1, %v3659_v61, 0.0  ;;  %v3662_v59 = vmul.f32 %v9147_v20, %v9147_v20 }
 0x4fa   :  { %v3672_v49 = vadd.f32 %v3671_v39, %v3670_v53  ;;  %v3683_v27 = vsel %vm1587_vm1, %v3660_v32, 0.0  ;;  %v3663_v42 = vmul.f32 %v9149_v26, %v9149_v26  ;;  %v3664_v5 = vmul.f32 %v9151_v7, %v9151_v7 }
 0x4fb   :  { %v3685_v63 = vsel %vm1587_vm1, %v3661_v12, 0.0  ;;  %v3687_v17 = vsel %vm1587_vm1, %v3662_v59, 0.0  ;;  %v3665_v43 = vmul.f32 %v9153_v30, %v9153_v30  ;;  %v3666_v53 = vmul.f32 %v9155_v62, %v9155_v62 }
 0x4fc   :  { %v3674_v25 = vadd.f32 %v3673_v46, %v3672_v49  ;;  %v3689_v14 = vsel %vm1587_vm1, %v3663_v42, 0.0  ;;  %v3691_v38 = vsel %vm1587_vm1, %v3664_v5, 0.0  ;;  %v3667_v49 = vmul.f32 %v9157_v54, %v9157_v54 }
 0x4fd   :  { %v3693_v0 = vsel %vm1587_vm1, %v3665_v43, 0.0 }
 0x4fe   :  { %v3676_v3 = vadd.f32 %v3675_v52, %v3674_v25  ;;  %v3695_v25 = vsel %vm1587_vm1, %v3666_v53, 0.0  ;;  %v3697_v52 = vsel %vm1587_vm1, %v3667_v49, 0.0 }
 0x500   :  { %v3678_v41 = vadd.f32 %v3677_v9, %v3676_v3 }
 0x502   :  { %v3680_v36 = vadd.f32 %v3679_v31, %v3678_v41 }
 0x504   :  { %v3682_v22 = vadd.f32 %v3681_v51, %v3680_v36 }
 0x506   :  { %v3684_v34 = vadd.f32 %v3683_v27, %v3682_v22 }
 0x508   :  { %v3686_v11 = vadd.f32 %v3685_v63, %v3684_v34  ;;  %v6298_v63 = vld [vmem:[%s10046_s9] ss:$0 sm:$0xff] }
 0x50a   :  { %v3688_v56 = vadd.f32 %v3687_v17, %v3686_v11 }
 0x50c   :  { %v3690_v44 = vadd.f32 %v3689_v14, %v3688_v56 }
 0x50e   :  { %v3692_v39 = vadd.f32 %v3691_v38, %v3690_v44 }
 0x510   :  { %v3694_v46 = vadd.f32 %v3693_v0, %v3692_v39 }
 0x512   :  { %v3696_v60 = vadd.f32 %v3695_v25, %v3694_v46 }
 0x514   :  { %v3698_v3 = vadd.f32 %v3697_v52, %v3696_v60 }
 0x516   :  { %v3699_v61 = vrot.slane %v3698_v3, 4 }
 0x518   :  { %v3700_v9 = vadd.f32 %v3699_v61, %v3698_v3 }
 0x51a   :  { %v3701_v41 = vrot.slane %v3700_v9, 2 }
 0x51c   :  { %v3702_v32 = vadd.f32 %v3701_v41, %v3700_v9 }
 0x51e   :  { %v3703_v31 = vrot.slane %v3702_v32, 1 }
 0x520   :  { %v3704_v36 = vadd.f32 %v3703_v31, %v3702_v32 }
 0x522   :  { %v3705_v12 = vmul.f32 0.0078125, %v3704_v36 }
 0x524   :  { %v3706_v51 = vadd.f32 1e-06, %v3705_v12 }
 0x526   :  { %7724 = vrsqrt.f32 %v3706_v51 }
 0x530   :  { %v7725_v22 = vpop.eup %7724 }
 0x531   :  { %v3708_v59 = vmul.f32 %v7725_v22, %v9123_v16  ;;  %v3709_v27 = vmul.f32 %v7725_v22, %v9126_v57  ;;  %v3710_v34 = vmul.f32 %v7725_v22, %v9129_v58  ;;  %v3711_v42 = vmul.f32 %v7725_v22, %v9132_v8 }
 0x532   :  { %v3712_v11 = vmul.f32 %v7725_v22, %v9135_v24  ;;  %v3713_v5 = vmul.f32 %v7725_v22, %v9137_v48  ;;  %v3714_v17 = vmul.f32 %v7725_v22, %v9139_v47  ;;  %v3715_v56 = vmul.f32 %v7725_v22, %v9141_v15 }
 0x533   :  { %v3716_v16 = vmul.f32 %v7725_v22, %v9143_v10  ;;  %v3717_v57 = vmul.f32 %v7725_v22, %v9145_v13  ;;  %v3718_v58 = vmul.f32 %v7725_v22, %v9147_v20  ;;  %v3719_v8 = vmul.f32 %v7725_v22, %v9149_v26  ;;  %v6299_v10 = vld [vmem:[%s10047_s10] ss:$0 sm:$0xff] }
 0x534   :  { %v3720_v43 = vmul.f32 %v7725_v22, %v9151_v7  ;;  %v3721_v14 = vmul.f32 %v7725_v22, %v9153_v30  ;;  %v3722_v24 = vmul.f32 %v7725_v22, %v9155_v62  ;;  %v3723_v48 = vmul.f32 %v7725_v22, %v9157_v54 }
 0x535   :  { %v3730_v44 = vmul.f32 %v6298_v63, %v3708_v59  ;;  %v3731_v47 = vmul.f32 %v6298_v63, %v3709_v27  ;;  %v3732_v53 = vmul.f32 %v6298_v63, %v3710_v34  ;;  %v3733_v15 = vmul.f32 %v6298_v63, %v3711_v42 }
 0x536   :  { %v3734_v13 = vmul.f32 %v6298_v63, %v3712_v11  ;;  %v3735_v20 = vmul.f32 %v6298_v63, %v3713_v5  ;;  %v3736_v38 = vmul.f32 %v6298_v63, %v3714_v17  ;;  %v3737_v26 = vmul.f32 %v6298_v63, %v3715_v56 }
 0x537   :  { %v3738_v39 = vmul.f32 %v6298_v63, %v3716_v16  ;;  %v3739_v7 = vmul.f32 %v6298_v63, %v3717_v57  ;;  %v3740_v49 = vmul.f32 %v6298_v63, %v3718_v58  ;;  %v3741_v30 = vmul.f32 %v6298_v63, %v3719_v8 }
 0x538   :  { %v3742_v0 = vmul.f32 %v6298_v63, %v3720_v43  ;;  %v3743_v62 = vmul.f32 %v6298_v63, %v3721_v14  ;;  %v3744_v46 = vmul.f32 %v6298_v63, %v3722_v24  ;;  %v3745_v54 = vmul.f32 %v6298_v63, %v3723_v48 }
 0x539   :  { %v3752_v25 = vadd.f32 %v6299_v10, %v3730_v44  ;;  %v3753_v60 = vadd.f32 %v6299_v10, %v3731_v47  ;;  %v3754_v52 = vadd.f32 %v6299_v10, %v3732_v53  ;;  %v3755_v3 = vadd.f32 %v6299_v10, %v3733_v15  ;;  %v3844_v53 = vld [vmem:[#allocation2 + $0x1] sm:$0xff] }
 0x53a   :  { %v3756_v61 = vadd.f32 %v6299_v10, %v3734_v13  ;;  %v3757_v9 = vadd.f32 %v6299_v10, %v3735_v20  ;;  %v3758_v41 = vadd.f32 %v6299_v10, %v3736_v38  ;;  %v3759_v32 = vadd.f32 %v6299_v10, %v3737_v26 }
 0x53b   :  { %v3760_v31 = vadd.f32 %v6299_v10, %v3738_v39  ;;  %v3761_v36 = vadd.f32 %v6299_v10, %v3739_v7  ;;  %v3762_v12 = vadd.f32 %v6299_v10, %v3740_v49  ;;  %v3763_v51 = vadd.f32 %v6299_v10, %v3741_v30 }
 0x53c   :  { %v3764_v22 = vadd.f32 %v6299_v10, %v3742_v0  ;;  %v3765_v59 = vadd.f32 %v6299_v10, %v3743_v62  ;;  %v3766_v27 = vadd.f32 %v6299_v10, %v3744_v46  ;;  %v3767_v34 = vadd.f32 %v6299_v10, %v3745_v54  ;;  %v7705_v62 = vld [vmem:[%s10048_s11 + $0x8] sm:$0xff]  }
 0x53d   :  { %v9230_v42 = vadd.f32 %v3752_v25, %v8459_v18  ;;  %v9233_v63 = vadd.f32 %v3753_v60, %v8467_v55  ;;  %v9236_v11 = vadd.f32 %v3754_v52, %v8456_v4  ;;  %v9239_v5 = vadd.f32 %v3755_v3, %v8463_v35 }
 0x53e   :  { %v9242_v17 = vadd.f32 %v3756_v61, %v8479_v40  ;;  %v9245_v56 = vadd.f32 %v3757_v9, %v8487_v50  ;;  %v9248_v16 = vadd.f32 %v3758_v41, %v8476_v33  ;;  %v9251_v18 = vadd.f32 %v3759_v32, %v8483_v6  ;;  %v3824_v61 = vld [vmem:[#allocation2 + $0xa0] sm:$0xff] }
 0x53f   :  { %10101 = vst [vmem:[#allocation6_spill] sm:$0xff] %v9230_v42  ;;  %10102 = vst [vmem:[#allocation7_spill] sm:$0xff] %v9233_v63  ;;  %v9254_v55 = vadd.f32 %v3760_v31, %v8514_v23  ;;  %v9257_v4 = vadd.f32 %v3761_v36, %v8524_v37  ;;  %v9260_v35 = vadd.f32 %v3762_v12, %v8511_v21  ;;  %v3784_v37 = vmax.f32 %v9230_v42, 0.0  ;;  %v7706_v31 = vld [vmem:[%s10048_s11 + $0x20] sm:$0xff]   ;;  %v7711_v42 = vld [vmem:[%s10048_s11 + $0x48] sm:$0xff]  }
 0x540   :  { %10103 = vst [vmem:[#allocation8_spill] sm:$0xff] %v9236_v11  ;;  %10104 = vst [vmem:[#allocation9_spill] sm:$0xff] %v9239_v5  ;;  %v9263_v40 = vadd.f32 %v3763_v51, %v8520_v29  ;;  %v9266_v50 = vadd.f32 %v3764_v22, %v8560_v28  ;;  %v9269_v33 = vadd.f32 %v3765_v59, %v8570_v1  ;;  %v3785_v21 = vmax.f32 %v9233_v63, 0.0  ;;  %v3852_v12 = vld [vmem:[#allocation2 + $0xa1] sm:$0xff] }
 0x541   :  { %10105 = vst [vmem:[#allocation10_spill] sm:$0xff] %v9242_v17  ;;  %10106 = vst [vmem:[#allocation11_spill] sm:$0xff] %v9245_v56  ;;  %v9272_v6 = vadd.f32 %v3766_v27, %v8557_v19  ;;  %v9275_v23 = vadd.f32 %v3767_v34, %v8566_v45  ;;  %v3786_v57 = vmax.f32 %v9236_v11, 0.0  ;;  %v3787_v29 = vmax.f32 %v9239_v5, 0.0 }
 0x542   :  { %10107 = vst [vmem:[#allocation12_spill] sm:$0xff] %v9248_v16  ;;  %10108 = vst [vmem:[#allocation13_spill] sm:$0xff] %v9251_v18  ;;  %v3788_v28 = vmax.f32 %v9242_v17, 0.0  ;;  %v3789_v58 = vmax.f32 %v9245_v56, 0.0  ;;  %v3790_v1 = vmax.f32 %v9248_v16, 0.0  ;;  %v3791_v19 = vmax.f32 %v9251_v18, 0.0 }
 0x543   :  { %10109 = vst [vmem:[#allocation14_spill] sm:$0xff] %v9254_v55  ;;  %10110 = vst [vmem:[#allocation15_spill] sm:$0xff] %v9257_v4  ;;  %v3792_v8 = vmax.f32 %v9254_v55, 0.0  ;;  %v3793_v45 = vmax.f32 %v9257_v4, 0.0  ;;  %v3794_v43 = vmax.f32 %v9260_v35, 0.0  ;;  %v3795_v14 = vmax.f32 %v9263_v40, 0.0 }
 0x544   :  { %10111 = vst [vmem:[#allocation16_spill] sm:$0xff] %v9260_v35  ;;  %10112 = vst [vmem:[#allocation17_spill] sm:$0xff] %v9263_v40  ;;  %v3796_v24 = vmax.f32 %v9266_v50, 0.0  ;;  %v3797_v48 = vmax.f32 %v9269_v33, 0.0  ;;  %v3798_v44 = vmax.f32 %v9272_v6, 0.0  ;;  %v3799_v47 = vmax.f32 %v9275_v23, 0.0 }
 0x545   :  { %10113 = vst [vmem:[#allocation18_spill] sm:$0xff] %v9266_v50  ;;  %10114 = vst [vmem:[#allocation19_spill] sm:$0xff] %v9269_v33  ;;  %v4139_v35 = vld [vmem:[#allocation2 + $0x2] sm:$0xff]  ;;  %v7709_v18 = vld [vmem:[%s10048_s11 + $0x38] sm:$0xff]  }
 0x546   :  { %10115 = vst [vmem:[#allocation20_spill] sm:$0xff] %v9272_v6  ;;  %10116 = vst [vmem:[#allocation21_spill] sm:$0xff] %v9275_v23  ;;  %v4147_v56 = vld [vmem:[#allocation2 + $0xa2] sm:$0xff] }
 0x547   :  { %3800 = vst.msk [vmem:[#allocation2 + $0x11] sm:$0xff] %vm1587_vm1, %v3784_v37  ;;  %3801 = vst.msk [vmem:[#allocation2 + $0x21] sm:$0xff] %vm1587_vm1, %v3785_v21  ;;  %v7707_v37 = vld [vmem:[%s10048_s11 + $0x28] sm:$0xff]  }
 0x548   :  { %3802 = vst.msk [vmem:[#allocation2 + $0x31] sm:$0xff] %vm1587_vm1, %v3786_v57  ;;  %3803 = vst.msk [vmem:[#allocation2 + $0x41] sm:$0xff] %vm1587_vm1, %v3787_v29 }
 0x549   :  { %3804 = vst.msk [vmem:[#allocation2 + $0x51] sm:$0xff] %vm1587_vm1, %v3788_v28  ;;  %3805 = vst.msk [vmem:[#allocation2 + $0x61] sm:$0xff] %vm1587_vm1, %v3789_v58 }
 0x54a   :  { %3806 = vst.msk [vmem:[#allocation2 + $0x71] sm:$0xff] %vm1587_vm1, %v3790_v1  ;;  %3807 = vst.msk [vmem:[#allocation2 + $0x81] sm:$0xff] %vm1587_vm1, %v3791_v19 }
 0x54b   :  { %3808 = vst.msk [vmem:[#allocation2 + $0xb1] sm:$0xff] %vm1587_vm1, %v3792_v8  ;;  %3809 = vst.msk [vmem:[#allocation2 + $0xc1] sm:$0xff] %vm1587_vm1, %v3793_v45 }
 0x54c   :  { %3810 = vst.msk [vmem:[#allocation2 + $0xd1] sm:$0xff] %vm1587_vm1, %v3794_v43  ;;  %3811 = vst.msk [vmem:[#allocation2 + $0xe1] sm:$0xff] %vm1587_vm1, %v3795_v14 }
 0x54d   :  { %3812 = vst.msk [vmem:[#allocation2 + $0xf1] sm:$0xff] %vm1587_vm1, %v3796_v24  ;;  %3813 = vst.msk [vmem:[#allocation2 + $0x101] sm:$0xff] %vm1587_vm1, %v3797_v48 }
 0x54e   :  { %3814 = vst.msk [vmem:[#allocation2 + $0x111] sm:$0xff] %vm1587_vm1, %v3798_v44  ;;  %3815 = vst.msk [vmem:[#allocation2 + $0x121] sm:$0xff] %vm1587_vm1, %v3799_v47  ;;  %v9309_v15 = vld [vmem:[#allocation2 + $0x11] sm:$0xff]  ;;  %v9311_v10 = vld [vmem:[#allocation2 + $0x21] sm:$0xff] }
 0x54f   :  { %v9313_v13 = vld [vmem:[#allocation2 + $0x31] sm:$0xff]  ;;  %v3860_v20 = vpack.c.bf16 %v9309_v15, %v3844_v53  ;;  %v9320_v26 = vld [vmem:[#allocation2 + $0x41] sm:$0xff] }
 0x550   :  { %v9318_v38 = vpack.c.bf16 %v9313_v13, %v9311_v10  ;;  %v9322_v39 = vld [vmem:[#allocation2 + $0x51] sm:$0xff]  ;;  %v9324_v7 = vld [vmem:[#allocation2 + $0x61] sm:$0xff] }
 0x551   :  { %7085 = vmatprep.mubr.msk.bf16.mxu1 %vm1587_vm1, %v3860_v20  ;;  %v9342_v25 = vpack.c.bf16 %v9322_v39, %v9320_v26  ;;  %v9366_v36 = vld [vmem:[#allocation2 + $0x71] sm:$0xff]  ;;  %v9370_v22 = vld [vmem:[#allocation2 + $0x22] sm:$0xff] }
 0x552   :  { %v9328_v30 = vld [vmem:[#allocation2 + $0xb1] sm:$0xff]  ;;  %v9330_v0 = vld [vmem:[#allocation2 + $0xc1] sm:$0xff]  ;;  %7086 = vmatmul.mubr.msk.bf16.vlgmr.msra.gmra.mrb[16].mxu1 %vm1587_vm1, %v9318_v38  ;;  %v9374_v59 = vpack.c.bf16 %v9366_v36, %v9324_v7 }
 0x553   :  { %v9344_v60 = vld [vmem:[#allocation2 + $0xd1] sm:$0xff]  ;;  %v9346_v52 = vld [vmem:[#allocation2 + $0xe1] sm:$0xff]  ;;  %7089 = vmatprep.mubr.msk.bf16.mxu1 %vm1587_vm1, %v9342_v25  ;;  %7102 = vmatpush3.bf16.msra.mxu1 %v9104_v2  ;;  %v3864_v21 = vpack.c.bf16 %v9328_v30, %v3852_v12 }
 0x554   :  { %v9348_v3 = vld [vmem:[#allocation2 + $0xf1] sm:$0xff]  ;;  %v9354_v9 = vld [vmem:[#allocation2 + $0x101] sm:$0xff]  ;;  %7103 = vmatprep.subr.bf16.mxu1 %v7705_v62  ;;  %v9414_v44 = vpack.c.bf16 %v9344_v60, %v9330_v0 }
 0x555   :  { %v9368_v51 = vld [vmem:[#allocation2 + $0x12] sm:$0xff]  ;;  %v9378_v27 = vld [vmem:[#allocation2 + $0x42] sm:$0xff]  ;;  %v9418_v47 = vpack.c.bf16 %v9348_v3, %v9346_v52 }
 0x556   :  { %v9376_v2 = vld [vmem:[#allocation2 + $0x32] sm:$0xff]  ;;  %v9385_v57 = vld [vmem:[#allocation2 + $0x62] sm:$0xff] }
 0x557   :  { %7104 = vmatpush3.bf16.msra.mxu1 %v7705_v62  ;;  %v9380_v34 = vld [vmem:[#allocation2 + $0x52] sm:$0xff]  ;;  %v9393_v58 = vld [vmem:[#allocation2 + $0xc2] sm:$0xff]  ;;  %v9483_v55 = vpack.c.bf16 %v9376_v2, %v9370_v22 }
 0x558   :  { %7121 = vmatprep.subr.bf16.mxu1 %v7706_v31  ;;  %v9387_v29 = vld [vmem:[#allocation2 + $0xb2] sm:$0xff]  ;;  %v9397_v19 = vld [vmem:[#allocation2 + $0xe2] sm:$0xff]  ;;  %v9490_v16 = vpack.c.bf16 %v9380_v34, %v9378_v27 }
 0x559   :  { %v9395_v1 = vld [vmem:[#allocation2 + $0xd2] sm:$0xff]  ;;  %v9404_v43 = vld [vmem:[#allocation2 + $0x102] sm:$0xff]  ;;  %v4159_v5 = vpack.c.bf16 %v9387_v29, %v4147_v56 }
 0x55a   :  { %7090 = vmatmul.mubr.msk.bf16.gmra.mrb[20].mxu1 %vm1587_vm1, %v9374_v59  ;;  %v9402_v45 = vld [vmem:[#allocation2 + $0xf2] sm:$0xff]  ;;  %v3816_v20 = vld [vmem:[#allocation2] sm:$0xff] }
 0x55b   :  { %7093 = vmatprep.mubr.msk.bf16.mxu1 %vm1587_vm1, %v3864_v21  ;;  %v9424_v53 = vld [vmem:[#allocation2 + $0x111] sm:$0xff]  ;;  %v3818_v48 = vld [vmem:[#allocation2 + $0x20] sm:$0xff]  ;;  %v9515_v11 = vpack.c.bf16 %v9402_v45, %v9397_v19 }
 0x55c   :  { %v9426_v62 = vld [vmem:[#allocation2 + $0x10] sm:$0xff]  ;;  %v9430_v12 = vpack.c.bf16 %v9424_v53, %v9354_v9  ;;  %v9438_v14 = vld [vmem:[#allocation2 + $0x40] sm:$0xff] }
 0x55d   :  { %v3832_v21 = vpack.c.bf16 %v9426_v62, %v3816_v20  ;;  %v9436_v24 = vld [vmem:[#allocation2 + $0x30] sm:$0xff]  ;;  %v3822_v32 = vld [vmem:[#allocation2 + $0x60] sm:$0xff]  ;;  %10117 = vst [vmem:[#allocation22_spill] sm:$0xff] %v9515_v11 }
 0x55e   :  { %v9440_v8 = vld [vmem:[#allocation2 + $0x50] sm:$0xff]  ;;  %v9443_v28 = vpack.c.bf16 %v9436_v24, %v3818_v48  ;;  %v3828_v6 = vld [vmem:[#allocation2 + $0xe0] sm:$0xff]  ;;  %v4334_v63 = vpack.c.bf16 %v9438_v14, %v9436_v24 }
 0x55f   :  { %v9450_v20 = vpack.c.bf16 %v9440_v8, %v9438_v14  ;;  %v9459_v41 = vld [vmem:[#allocation2 + $0x70] sm:$0xff] }
 0x560   :  { %v3825_v54 = vld [vmem:[#allocation2 + $0xb0] sm:$0xff]  ;;  %v9462_v46 = vpack.c.bf16 %v9459_v41, %v3822_v32 }
 0x561   :  { %v3836_v49 = vpack.c.bf16 %v3825_v54, %v3824_v61  ;;  %v3827_v23 = vld [vmem:[#allocation2 + $0xd0] sm:$0xff]  ;;  %v3830_v61 = vld [vmem:[#allocation2 + $0x100] sm:$0xff] }
 0x562   :  { %7094 = vmatmul.mubr.msk.bf16.gmra.mrb[24].mxu1 %vm1587_vm1, %v9414_v44  ;;  %v3829_v33 = vld [vmem:[#allocation2 + $0xf0] sm:$0xff] }
 0x563   :  { %7097 = vmatprep.mubr.msk.bf16.mxu1 %vm1587_vm1, %v9418_v47  ;;  %v9469_v40 = vpack.c.bf16 %v3829_v33, %v3828_v6  ;;  %v9521_v56 = vld [vmem:[#allocation2 + $0x112] sm:$0xff] }
 0x56a   :  { %7098 = vmatmul.mubr.msk.bf16.gmra.mrb[28].mxu1 %vm1587_vm1, %v9430_v12 }
 0x56b   :  { %7105 = vmatprep.mubr.msk.bf16.mxu1 %vm1587_vm1, %v3832_v21  ;;  %v7708_v21 = vld [vmem:[%s10048_s11 + $0x30] sm:$0xff]  }
 0x572   :  { %7106 = vmatmul.mubr.msk.bf16.vlgmr.msra.gmra.mrb[16].mxu1 %vm1587_vm1, %v9443_v28 }
 0x573   :  { %7109 = vmatprep.mubr.msk.bf16.mxu1 %vm1587_vm1, %v9450_v20  ;;  %7122 = vmatpush3.bf16.msra.mxu1 %v7706_v31  ;;  %v3826_v31 = vld [vmem:[#allocation2 + $0xc0] sm:$0xff] }
 0x574   :  { %7123 = vmatprep.subr.bf16.mxu1 %v7707_v37  ;;  %v9467_v50 = vpack.c.bf16 %v3827_v23, %v3826_v31  ;;  %v4337_v24 = vpack.c.bf16 %v3826_v31, %v3825_v54  ;;  %v7713_v54 = vld [vmem:[%s10048_s11 + $0x58] sm:$0xff]  }
 0x577   :  { %7124 = vmatpush3.bf16.msra.mxu1 %v7707_v37  ;;  %v3831_v37 = vld [vmem:[#allocation2 + $0x110] sm:$0xff] }
 0x578   :  { %7141 = vmatprep.subr.bf16.mxu1 %v7708_v21  ;;  %v9475_v4 = vpack.c.bf16 %v3831_v37, %v3830_v61 }
 0x57a   :  { %7110 = vmatmul.mubr.msk.bf16.gmra.mrb[20].mxu1 %vm1587_vm1, %v9462_v46 }
 0x57b   :  { %7113 = vmatprep.mubr.msk.bf16.mxu1 %vm1587_vm1, %v3836_v49  ;;  %v4155_v49 = vpack.c.bf16 %v9368_v51, %v4139_v35  ;;  %v7710_v35 = vld [vmem:[%s10048_s11 + $0x40] sm:$0xff]  }
 0x582   :  { %7114 = vmatmul.mubr.msk.bf16.gmra.mrb[24].mxu1 %vm1587_vm1, %v9467_v50 }
 0x583   :  { %7117 = vmatprep.mubr.msk.bf16.mxu1 %vm1587_vm1, %v9469_v40 }
 0x58a   :  { %7118 = vmatmul.mubr.msk.bf16.gmra.mrb[28].mxu1 %vm1587_vm1, %v9475_v4 }
 0x58b   :  { %7125 = vmatprep.mubr.msk.bf16.mxu1 %vm1587_vm1, %v4155_v49  ;;  %v9499_v49 = vld [vmem:[#allocation2 + $0x72] sm:$0xff] }
 0x58c   :  { %v9503_v17 = vpack.c.bf16 %v9499_v49, %v9385_v57 }
 0x592   :  { %7126 = vmatmul.mubr.msk.bf16.vlgmr.msra.gmra.mrb[16].mxu1 %vm1587_vm1, %v9483_v55 }
 0x593   :  { %7129 = vmatprep.mubr.msk.bf16.mxu1 %vm1587_vm1, %v9490_v16  ;;  %7142 = vmatpush3.bf16.msra.mxu1 %v7708_v21  ;;  %v9511_v21 = vpack.c.bf16 %v9395_v1, %v9393_v58 }
 0x594   :  { %7143 = vmatprep.subr.bf16.mxu1 %v7709_v18 }
 0x597   :  { %7144 = vmatpush3.bf16.msra.mxu1 %v7709_v18  ;;  %v9525_v18 = vpack.c.bf16 %v9521_v56, %v9404_v43 }
 0x598   :  { %7161 = vmatprep.subr.bf16.mxu1 %v7710_v35 }
 0x59a   :  { %7130 = vmatmul.mubr.msk.bf16.gmra.mrb[20].mxu1 %vm1587_vm1, %v9503_v17 }
 0x59b   :  { %7133 = vmatprep.mubr.msk.bf16.mxu1 %vm1587_vm1, %v4159_v5  ;;  %v4333_v5 = vpack.c.bf16 %v3818_v48, %v9426_v62  ;;  %v7712_v48 = vld [vmem:[%s10048_s11 + $0x50] sm:$0xff]   ;;  %v4324_v62 = vld [vmem:[#allocation2 + $0x80] sm:$0xff] }
 0x59c   :  { %v4336_v14 = vpack.c.bf16 %v4324_v62, %v9459_v41 }
 0x5a2   :  { %7134 = vmatmul.mubr.msk.bf16.gmra.mrb[24].mxu1 %vm1587_vm1, %v9511_v21 }
 0x5a3   :  { %7137 = vmatprep.mubr.msk.bf16.mxu1 %vm1587_vm1, %v9515_v11  ;;  %v4335_v11 = vpack.c.bf16 %v3822_v32, %v9440_v8  ;;  %v4338_v32 = vpack.c.bf16 %v3828_v6, %v3827_v23  ;;  %v10120_v6 = vpack.c.bf16 %v9324_v7, %v9322_v39  ;;  %v7714_v23 = vld [vmem:[%s10048_s11 + $0x60] sm:$0xff]   ;;  %v10123_v39 = vpack.c.bf16 %v9354_v9, %v9348_v3  ;;  %v7716_v3 = vld [vmem:[%s10048_s11 + $0x70] sm:$0xff]  }
 0x5a4   :  { %v4510_v7 = vld [vmem:[#allocation2 + $0x121] sm:$0xff] }
 0x5a5   :  { %v4518_v41 = vpack.c.bf16 %v4510_v7, %v9424_v53  ;;  %v4680_v9 = vld [vmem:[#allocation2 + $0x82] sm:$0xff] }
 0x5aa   :  { %7138 = vmatmul.mubr.msk.bf16.gmra.mrb[28].mxu1 %vm1587_vm1, %v9525_v18 }
 0x5ab   :  { %7145 = vmatprep.mubr.msk.bf16.mxu1 %vm1587_vm1, %v4333_v5 }
 0x5b2   :  { %7146 = vmatmul.mubr.msk.bf16.vlgmr.msra.gmra.mrb[16].mxu1 %vm1587_vm1, %v4334_v63  ;;  %v4339_v63 = vpack.c.bf16 %v3830_v61, %v3829_v33  ;;  %v10119_v33 = vpack.c.bf16 %v9320_v26, %v9313_v13  ;;  %v10121_v13 = vpack.c.bf16 %v9330_v0, %v9328_v30  ;;  %v10122_v26 = vpack.c.bf16 %v9346_v52, %v9344_v60  ;;  %v7715_v0 = vld [vmem:[%s10048_s11 + $0x68] sm:$0xff]  }
 0x5b3   :  { %7149 = vmatprep.mubr.msk.bf16.mxu1 %vm1587_vm1, %v4335_v11  ;;  %7162 = vmatpush3.bf16.msra.mxu1 %v7710_v35  ;;  %v4332_v11 = vld [vmem:[#allocation2 + $0x120] sm:$0xff]  ;;  %v10124_v30 = vpack.c.bf16 %v9370_v22, %v9368_v51  ;;  %v10125_v60 = vpack.c.bf16 %v9378_v27, %v9376_v2  ;;  %v10126_v52 = vpack.c.bf16 %v9385_v57, %v9380_v34  ;;  %v7717_v57 = vld [vmem:[%s10048_s11 + $0x78] sm:$0xff]  }
 0x5b4   :  { %7163 = vmatprep.subr.bf16.mxu1 %v7711_v42  ;;  %v4340_v8 = vpack.c.bf16 %v4332_v11, %v3831_v37  ;;  %v10127_v51 = vpack.c.bf16 %v9393_v58, %v9387_v29  ;;  %v10128_v22 = vpack.c.bf16 %v9397_v19, %v9395_v1  ;;  %v10129_v2 = vpack.c.bf16 %v9404_v43, %v9402_v45  ;;  %v4688_v27 = vld [vmem:[#allocation2 + $0x122] sm:$0xff]  ;;  %v4858_v58 = vld [vmem:[#allocation2 + $0x90] sm:$0xff] }
 0x5b5   :  { %v4696_v34 = vpack.c.bf16 %v4688_v27, %v9521_v56  ;;  %v7718_v29 = vld [vmem:[%s10048_s11 + $0x80] sm:$0xff]   ;;  %v4870_v1 = vpack.c.bf16 %v4858_v58, %v4324_v62  ;;  %v7719_v19 = vld [vmem:[%s10048_s11 + $0x88] sm:$0xff]  }
 0x5b6   :  { %v10130_v45 = vld [vmem:[#allocation22_spill] sm:$0xff] }
 0x5b7   :  { %7164 = vmatpush3.bf16.msra.mxu1 %v7711_v42  ;;  %v10118_v42 = vpack.c.bf16 %v9311_v10, %v9309_v15  ;;  %v4502_v15 = vld [vmem:[#allocation2 + $0x81] sm:$0xff] }
 0x5b8   :  { %7181 = vmatprep.subr.bf16.mxu1 %v7712_v48  ;;  %v4514_v10 = vpack.c.bf16 %v4502_v15, %v9366_v36  ;;  %v4692_v36 = vpack.c.bf16 %v4680_v9, %v9499_v49 }
 0x5ba   :  { %7150 = vmatmul.mubr.msk.bf16.gmra.mrb[20].mxu1 %vm1587_vm1, %v4336_v14 }
 0x5bb   :  { %7153 = vmatprep.mubr.msk.bf16.mxu1 %vm1587_vm1, %v4337_v24 }
 0x5c2   :  { %7154 = vmatmul.mubr.msk.bf16.gmra.mrb[24].mxu1 %vm1587_vm1, %v4338_v32 }
 0x5c3   :  { %7157 = vmatprep.mubr.msk.bf16.mxu1 %vm1587_vm1, %v4339_v63 }
 0x5ca   :  { %7158 = vmatmul.mubr.msk.bf16.gmra.mrb[28].mxu1 %vm1587_vm1, %v4340_v8 }
 0x5cb   :  { %7165 = vmatprep.mubr.msk.bf16.mxu1 %vm1587_vm1, %v10118_v42 }
 0x5d2   :  { %7166 = vmatmul.mubr.msk.bf16.vlgmr.msra.gmra.mrb[16].mxu1 %vm1587_vm1, %v10119_v33 }
 0x5d3   :  { %7169 = vmatprep.mubr.msk.bf16.mxu1 %vm1587_vm1, %v10120_v6  ;;  %7182 = vmatpush3.bf16.msra.mxu1 %v7712_v48 }
 0x5d4   :  { %7183 = vmatprep.subr.bf16.mxu1 %v7713_v54 }
 0x5d7   :  { %7184 = vmatpush3.bf16.msra.mxu1 %v7713_v54 }
 0x5d8   :  { %7201 = vmatprep.subr.bf16.mxu1 %v7714_v23 }
 0x5da   :  { %7170 = vmatmul.mubr.msk.bf16.gmra.mrb[20].mxu1 %vm1587_vm1, %v4514_v10 }
 0x5db   :  { %7173 = vmatprep.mubr.msk.bf16.mxu1 %vm1587_vm1, %v10121_v13 }
 0x5e2   :  { %7174 = vmatmul.mubr.msk.bf16.gmra.mrb[24].mxu1 %vm1587_vm1, %v10122_v26 }
 0x5e3   :  { %7177 = vmatprep.mubr.msk.bf16.mxu1 %vm1587_vm1, %v10123_v39 }
 0x5ea   :  { %7178 = vmatmul.mubr.msk.bf16.gmra.mrb[28].mxu1 %vm1587_vm1, %v4518_v41 }
 0x5eb   :  { %7185 = vmatprep.mubr.msk.bf16.mxu1 %vm1587_vm1, %v10124_v30 }
 0x5f2   :  { %7186 = vmatmul.mubr.msk.bf16.vlgmr.msra.gmra.mrb[16].mxu1 %vm1587_vm1, %v10125_v60 }
 0x5f3   :  { %7189 = vmatprep.mubr.msk.bf16.mxu1 %vm1587_vm1, %v10126_v52  ;;  %7202 = vmatpush3.bf16.msra.mxu1 %v7714_v23 }
 0x5f4   :  { %7203 = vmatprep.subr.bf16.mxu1 %v7715_v0 }
 0x5f7   :  { %7204 = vmatpush3.bf16.msra.mxu1 %v7715_v0 }
 0x5f8   :  { %7221 = vmatprep.subr.bf16.mxu1 %v7716_v3 }
 0x5fa   :  { %7190 = vmatmul.mubr.msk.bf16.gmra.mrb[20].mxu1 %vm1587_vm1, %v4692_v36 }
 0x5fb   :  { %7193 = vmatprep.mubr.msk.bf16.mxu1 %vm1587_vm1, %v10127_v51 }
 0x602   :  { %7194 = vmatmul.mubr.msk.bf16.gmra.mrb[24].mxu1 %vm1587_vm1, %v10128_v22 }
 0x603   :  { %7197 = vmatprep.mubr.msk.bf16.mxu1 %vm1587_vm1, %v10129_v2 }
 0x60a   :  { %7198 = vmatmul.mubr.msk.bf16.gmra.mrb[28].mxu1 %vm1587_vm1, %v4696_v34 }
 0x60b   :  { %7205 = vmatprep.mubr.msk.bf16.mxu1 %vm1587_vm1, %v9443_v28 }
 0x612   :  { %7206 = vmatmul.mubr.msk.bf16.vlgmr.msra.gmra.mrb[16].mxu1 %vm1587_vm1, %v9450_v20 }
 0x613   :  { %7209 = vmatprep.mubr.msk.bf16.mxu1 %vm1587_vm1, %v9462_v46  ;;  %7222 = vmatpush3.bf16.msra.mxu1 %v7716_v3  ;;  %v4866_v46 = vld [vmem:[#allocation2 + $0x130] sm:$0xff] }
 0x614   :  { %7223 = vmatprep.subr.bf16.mxu1 %v7717_v57  ;;  %v4874_v28 = vpack.c.bf16 %v4866_v46, %v4332_v11 }
 0x617   :  { %7224 = vmatpush3.bf16.msra.mxu1 %v7717_v57 }
 0x618   :  { %7241 = vmatprep.subr.bf16.mxu1 %v7718_v29 }
 0x61a   :  { %7210 = vmatmul.mubr.msk.bf16.gmra.mrb[20].mxu1 %vm1587_vm1, %v4870_v1 }
 0x61b   :  { %7213 = vmatprep.mubr.msk.bf16.mxu1 %vm1587_vm1, %v9467_v50  ;;  %v5044_v50 = vld [vmem:[#allocation2 + $0x131] sm:$0xff] }
 0x622   :  { %7214 = vmatmul.mubr.msk.bf16.gmra.mrb[24].mxu1 %vm1587_vm1, %v9469_v40 }
 0x623   :  { %7217 = vmatprep.mubr.msk.bf16.mxu1 %vm1587_vm1, %v9475_v4  ;;  %v5036_v4 = vld [vmem:[#allocation2 + $0x91] sm:$0xff] }
 0x624   :  { %v5048_v40 = vpack.c.bf16 %v5036_v4, %v4502_v15 }
 0x62a   :  { %7218 = vmatmul.mubr.msk.bf16.gmra.mrb[28].mxu1 %vm1587_vm1, %v4874_v28 }
 0x62b   :  { %7225 = vmatprep.mubr.msk.bf16.mxu1 %vm1587_vm1, %v9318_v38  ;;  %v5052_v38 = vpack.c.bf16 %v5044_v50, %v4510_v7 }
 0x632   :  { %7226 = vmatmul.mubr.msk.bf16.vlgmr.msra.gmra.mrb[16].mxu1 %vm1587_vm1, %v9342_v25  ;;  %v5214_v25 = vld [vmem:[#allocation2 + $0x92] sm:$0xff] }
 0x633   :  { %7229 = vmatprep.mubr.msk.bf16.mxu1 %vm1587_vm1, %v9374_v59  ;;  %7242 = vmatpush3.bf16.msra.mxu1 %v7718_v29  ;;  %v5226_v59 = vpack.c.bf16 %v5214_v25, %v4680_v9 }
 0x634   :  { %7243 = vmatprep.subr.bf16.mxu1 %v7719_v19 }
 0x637   :  { %7244 = vmatpush3.bf16.msra.mxu1 %v7719_v19 }
 0x63a   :  { %7230 = vmatmul.mubr.msk.bf16.gmra.mrb[20].mxu1 %vm1587_vm1, %v5048_v40 }
 0x63b   :  { %7233 = vmatprep.mubr.msk.bf16.mxu1 %vm1587_vm1, %v9414_v44  ;;  %v6422_v44 = vld [vmem:[%s10049_s12] ss:$0 sm:$0xff] }
 0x642   :  { %7234 = vmatmul.mubr.msk.bf16.gmra.mrb[24].mxu1 %vm1587_vm1, %v9418_v47 }
 0x643   :  { %7237 = vmatprep.mubr.msk.bf16.mxu1 %vm1587_vm1, %v9430_v12 }
 0x64a   :  { %7238 = vmatmul.mubr.msk.bf16.gmra.mrb[28].mxu1 %vm1587_vm1, %v5052_v38 }
 0x64b   :  { %7245 = vmatprep.mubr.msk.bf16.mxu1 %vm1587_vm1, %v9483_v55  ;;  %v5222_v55 = vld [vmem:[#allocation2 + $0x132] sm:$0xff] }
 0x64c   :  { %v5230_v43 = vpack.c.bf16 %v5222_v55, %v4688_v27 }
 0x652   :  { %7246 = vmatmul.mubr.msk.bf16.vlgmr.msra.gmra.mrb[16].mxu1 %vm1587_vm1, %v9490_v16  ;;  %v7721_v16 = vld [vmem:[%s10052_s15 + $0x8] sm:$0xff]  }
 0x653   :  { %7249 = vmatprep.mubr.msk.bf16.mxu1 %vm1587_vm1, %v9503_v17  ;;  %v7720_v17 = vld [vmem:[%s10052_s15] sm:$0xff]  }
 0x654   :  { %7261 = vmatprep.subr.bf16.mxu0 %v7720_v17 }
 0x655   :  { %7262 = vmatpush3.bf16.msra.mxu0 %v7720_v17 }
 0x656   :  { %7263 = vmatprep.subr.bf16.mxu0 %v7721_v16 }
 0x659   :  { %7264 = vmatpush3.bf16.msra.mxu0 %v7721_v16 }
 0x65a   :  { %7250 = vmatmul.mubr.msk.bf16.gmra.mrb[20].mxu1 %vm1587_vm1, %v5226_v59 }
 0x65b   :  { %7253 = vmatprep.mubr.msk.bf16.mxu1 %vm1587_vm1, %v9511_v21 }
 0x662   :  { %7254 = vmatmul.mubr.msk.bf16.gmra.mrb[24].mxu1 %vm1587_vm1, %v10130_v45 }
 0x663   :  { %7257 = vmatprep.mubr.msk.bf16.mxu1 %vm1587_vm1, %v9525_v18 }
 0x66a   :  { %7258 = vmatmul.mubr.msk.bf16.gmra.mrb[28].mxu1 %vm1587_vm1, %v5230_v43 }
 0x725   :  { %v7247_v47 = vpop.f32.mrb[16].mxu1 }
 0x726   :  { %v5306_v53 = vpop.f32.mrb[17].mxu1  ;;  %v9678_v61 = vadd.f32 %v7247_v47, %v6422_v44 }
 0x727   :  { %v9676_v12 = vadd.f32 %v6422_v44, %v5306_v53  ;;  %v7248_v20 = vpop.f32.mrb[18].mxu1 }
 0x728   :  { %v5309_v31 = vpop.f32.mrb[19].mxu1  ;;  %v9684_v49 = vadd.f32 %v7248_v20, %v6422_v44  ;;  %v5413_v18 = vsel %vm1587_vm1, %v9678_v61, 0.0 }
 0x729   :  { %v9680_v37 = vadd.f32 %v6422_v44, %v5309_v31  ;;  %v5410_v35 = vsel %vm1587_vm1, %v9676_v12, 0.0 }
 0x72a   :  { %v5415_v14 = vsel %vm1587_vm1, %v9684_v49, 0.0 }
 0x72b   :  { %v5411_v21 = vsel %vm1587_vm1, %v9680_v37, 0.0 }
 0x72c   :  { %v5412_v56 = vadd.f32 %v5411_v21, %v5410_v35 }
 0x72d   :  { %v7251_v5 = vpop.f32.mrb[20].mxu1 }
 0x72e   :  { %v5414_v48 = vadd.f32 %v5413_v18, %v5412_v56  ;;  %v5322_v62 = vpop.f32.mrb[21].mxu1  ;;  %v5398_v8 = vadd.f32 %v7251_v5, %v6422_v44 }
 0x72f   :  { %v5396_v24 = vadd.f32 %v6422_v44, %v5322_v62  ;;  %v7252_v32 = vpop.f32.mrb[22].mxu1 }
 0x730   :  { %v5416_v63 = vadd.f32 %v5415_v14, %v5414_v48  ;;  %v5325_v11 = vpop.f32.mrb[23].mxu1  ;;  %v5399_v6 = vadd.f32 %v7252_v32, %v6422_v44  ;;  %v5421_v10 = vsel %vm1587_vm1, %v5398_v8, 0.0 }
 0x731   :  { %v5417_v42 = vsel %vm1587_vm1, %v5396_v24, 0.0  ;;  %v5397_v54 = vadd.f32 %v6422_v44, %v5325_v11 }
 0x732   :  { %v5418_v33 = vadd.f32 %v5417_v42, %v5416_v63  ;;  %v5423_v7 = vsel %vm1587_vm1, %v5399_v6, 0.0 }
 0x733   :  { %v5419_v23 = vsel %vm1587_vm1, %v5397_v54, 0.0 }
 0x734   :  { %v5420_v15 = vadd.f32 %v5419_v23, %v5418_v33 }
 0x735   :  { %v7255_v13 = vpop.f32.mrb[24].mxu1 }
 0x736   :  { %v5422_v26 = vadd.f32 %v5421_v10, %v5420_v15  ;;  %v5338_v39 = vpop.f32.mrb[25].mxu1  ;;  %v5402_v52 = vadd.f32 %v7255_v13, %v6422_v44 }
 0x737   :  { %v5400_v41 = vadd.f32 %v6422_v44, %v5338_v39  ;;  %v7256_v30 = vpop.f32.mrb[26].mxu1 }
 0x738   :  { %v5424_v0 = vadd.f32 %v5423_v7, %v5422_v26  ;;  %v5341_v60 = vpop.f32.mrb[27].mxu1  ;;  %v5403_v51 = vadd.f32 %v7256_v30, %v6422_v44  ;;  %v5429_v27 = vsel %vm1587_vm1, %v5402_v52, 0.0 }
 0x739   :  { %v5425_v3 = vsel %vm1587_vm1, %v5400_v41, 0.0  ;;  %v5401_v9 = vadd.f32 %v6422_v44, %v5341_v60 }
 0x73a   :  { %v5426_v36 = vadd.f32 %v5425_v3, %v5424_v0  ;;  %v5431_v58 = vsel %vm1587_vm1, %v5403_v51, 0.0 }
 0x73b   :  { %v5427_v22 = vsel %vm1587_vm1, %v5401_v9, 0.0 }
 0x73c   :  { %v5428_v2 = vadd.f32 %v5427_v22, %v5426_v36 }
 0x73d   :  { %v7259_v34 = vpop.f32.mrb[28].mxu1 }
 0x73e   :  { %v5430_v57 = vadd.f32 %v5429_v27, %v5428_v2  ;;  %v5354_v29 = vpop.f32.mrb[29].mxu1  ;;  %v5406_v4 = vadd.f32 %v7259_v34, %v6422_v44 }
 0x73f   :  { %v5404_v1 = vadd.f32 %v6422_v44, %v5354_v29  ;;  %v7260_v46 = vpop.f32.mrb[30].mxu1 }
 0x740   :  { %v5432_v28 = vadd.f32 %v5431_v58, %v5430_v57  ;;  %v5357_v19 = vpop.f32.mrb[31].mxu1  ;;  %v5407_v25 = vadd.f32 %v7260_v46, %v6422_v44  ;;  %v5437_v55 = vsel %vm1587_vm1, %v5406_v4, 0.0 }
 0x741   :  { %v5433_v40 = vsel %vm1587_vm1, %v5404_v1, 0.0  ;;  %v5405_v50 = vadd.f32 %v6422_v44, %v5357_v19 }
 0x742   :  { %v5434_v38 = vadd.f32 %v5433_v40, %v5432_v28  ;;  %v5439_v17 = vsel %vm1587_vm1, %v5407_v25, 0.0 }
 0x743   :  { %v5435_v59 = vsel %vm1587_vm1, %v5405_v50, 0.0 }
 0x744   :  { %v5436_v45 = vadd.f32 %v5435_v59, %v5434_v38 }
 0x746   :  { %v5438_v43 = vadd.f32 %v5437_v55, %v5436_v45 }
 0x748   :  { %v5440_v16 = vadd.f32 %v5439_v17, %v5438_v43 }
 0x74a   :  { %v5441_v47 = vrot.slane %v5440_v16, 4 }
 0x74c   :  { %v5442_v53 = vadd.f32 %v5441_v47, %v5440_v16 }
 0x74e   :  { %v5443_v20 = vrot.slane %v5442_v53, 2 }
 0x750   :  { %v5444_v31 = vadd.f32 %v5443_v20, %v5442_v53 }
 0x752   :  { %v5445_v35 = vrot.slane %v5444_v31, 1 }
 0x754   :  { %v5446_v21 = vadd.f32 %v5445_v35, %v5444_v31 }
 0x756   :  { %v5447_v56 = vmul.f32 0.0078125, %v5446_v21 }
 0x758   :  { %v9705_v18 = vsub.f32 %v9676_v12, %v5447_v56  ;;  %v9708_v44 = vsub.f32 %v9680_v37, %v5447_v56  ;;  %v9711_v5 = vsub.f32 %v9678_v61, %v5447_v56  ;;  %v9714_v48 = vsub.f32 %v9684_v49, %v5447_v56 }
 0x759   :  { %v9716_v62 = vsub.f32 %v5396_v24, %v5447_v56  ;;  %v9718_v14 = vsub.f32 %v5397_v54, %v5447_v56  ;;  %v9720_v32 = vsub.f32 %v5398_v8, %v5447_v56  ;;  %v9722_v63 = vsub.f32 %v5399_v6, %v5447_v56 }
 0x75a   :  { %v9724_v11 = vsub.f32 %v5400_v41, %v5447_v56  ;;  %v9726_v12 = vsub.f32 %v5401_v9, %v5447_v56  ;;  %v9728_v37 = vsub.f32 %v5402_v52, %v5447_v56  ;;  %v9730_v42 = vsub.f32 %v5403_v51, %v5447_v56 }
 0x75b   :  { %v9732_v61 = vsub.f32 %v5404_v1, %v5447_v56  ;;  %v5461_v49 = vsub.f32 %v5405_v50, %v5447_v56  ;;  %v9734_v33 = vsub.f32 %v5406_v4, %v5447_v56  ;;  %v9736_v24 = vsub.f32 %v5407_v25, %v5447_v56 }
 0x75c   :  { %v5464_v8 = vmul.f32 %v9705_v18, %v9705_v18  ;;  %v5465_v54 = vmul.f32 %v9708_v44, %v9708_v44  ;;  %v5466_v6 = vmul.f32 %v9711_v5, %v9711_v5  ;;  %v5467_v23 = vmul.f32 %v9714_v48, %v9714_v48 }
 0x75d   :  { %v5468_v26 = vmul.f32 %v9716_v62, %v9716_v62  ;;  %v5469_v41 = vmul.f32 %v9718_v14, %v9718_v14  ;;  %v5470_v60 = vmul.f32 %v9720_v32, %v9720_v32  ;;  %v5471_v9 = vmul.f32 %v9722_v63, %v9722_v63 }
 0x75e   :  { %v5480_v15 = vsel %vm1587_vm1, %v5464_v8, 0.0  ;;  %v5481_v10 = vsel %vm1587_vm1, %v5465_v54, 0.0  ;;  %v5483_v39 = vsel %vm1587_vm1, %v5466_v6, 0.0  ;;  %v5485_v30 = vsel %vm1587_vm1, %v5467_v23, 0.0 }
 0x75f   :  { %v5482_v13 = vadd.f32 %v5481_v10, %v5480_v15  ;;  %v5487_v52 = vsel %vm1587_vm1, %v5468_v26, 0.0  ;;  %v5489_v36 = vsel %vm1587_vm1, %v5469_v41, 0.0  ;;  %v5472_v22 = vmul.f32 %v9724_v11, %v9724_v11 }
 0x760   :  { %v5491_v2 = vsel %vm1587_vm1, %v5470_v60, 0.0  ;;  %v5473_v34 = vmul.f32 %v9726_v12, %v9726_v12  ;;  %v5493_v57 = vsel %vm1587_vm1, %v5471_v9, 0.0  ;;  %v5474_v58 = vmul.f32 %v9728_v37, %v9728_v37  ;;  %v9795_v60 = vld [vmem:[%s10131_s27] ss:$0 sm:$0xff] }
 0x761   :  { %v5484_v7 = vadd.f32 %v5483_v39, %v5482_v13  ;;  %v5495_v1 = vsel %vm1587_vm1, %v5472_v22, 0.0  ;;  %v5475_v28 = vmul.f32 %v9730_v42, %v9730_v42  ;;  %v5476_v40 = vmul.f32 %v9732_v61, %v9732_v61  ;;  %v9787_v39 = vld [vmem:[%s10050_s13] ss:$0 sm:$0xff] }
 0x762   :  { %v5497_v19 = vsel %vm1587_vm1, %v5473_v34, 0.0  ;;  %v5499_v50 = vsel %vm1587_vm1, %v5474_v58, 0.0  ;;  %v5477_v25 = vmul.f32 %v5461_v49, %v5461_v49  ;;  %v5478_v55 = vmul.f32 %v9734_v33, %v9734_v33 }
 0x763   :  { %v5486_v0 = vadd.f32 %v5485_v30, %v5484_v7  ;;  %v5501_v59 = vsel %vm1587_vm1, %v5475_v28, 0.0  ;;  %v5503_v43 = vsel %vm1587_vm1, %v5476_v40, 0.0  ;;  %v5479_v16 = vmul.f32 %v9736_v24, %v9736_v24 }
 0x764   :  { %v5505_v47 = vsel %vm1587_vm1, %v5477_v25, 0.0  ;;  %v5507_v20 = vsel %vm1587_vm1, %v5478_v55, 0.0 }
 0x765   :  { %v5488_v3 = vadd.f32 %v5487_v52, %v5486_v0  ;;  %v5509_v35 = vsel %vm1587_vm1, %v5479_v16, 0.0 }
 0x767   :  { %v5490_v51 = vadd.f32 %v5489_v36, %v5488_v3 }
 0x769   :  { %v5492_v27 = vadd.f32 %v5491_v2, %v5490_v51 }
 0x76b   :  { %v5494_v29 = vadd.f32 %v5493_v57, %v5492_v27 }
 0x76d   :  { %v5496_v46 = vadd.f32 %v5495_v1, %v5494_v29 }
 0x76f   :  { %v5498_v4 = vadd.f32 %v5497_v19, %v5496_v46 }
 0x771   :  { %v5500_v38 = vadd.f32 %v5499_v50, %v5498_v4 }
 0x773   :  { %v5502_v45 = vadd.f32 %v5501_v59, %v5500_v38 }
 0x775   :  { %v5504_v17 = vadd.f32 %v5503_v43, %v5502_v45 }
 0x777   :  { %v5506_v53 = vadd.f32 %v5505_v47, %v5504_v17 }
 0x779   :  { %v5508_v31 = vadd.f32 %v5507_v20, %v5506_v53 }
 0x77b   :  { %v5510_v21 = vadd.f32 %v5509_v35, %v5508_v31 }
 0x77d   :  { %v5511_v56 = vrot.slane %v5510_v21, 4 }
 0x77f   :  { %v5512_v8 = vadd.f32 %v5511_v56, %v5510_v21 }
 0x781   :  { %v5513_v54 = vrot.slane %v5512_v8, 2 }
 0x783   :  { %v5514_v6 = vadd.f32 %v5513_v54, %v5512_v8 }
 0x785   :  { %v5515_v23 = vrot.slane %v5514_v6, 1 }
 0x787   :  { %v5516_v15 = vadd.f32 %v5515_v23, %v5514_v6 }
 0x789   :  { %v5517_v10 = vmul.f32 0.0078125, %v5516_v15 }
 0x78b   :  { %v5518_v13 = vadd.f32 1e-06, %v5517_v10 }
 0x78d   :  { %7726 = vrsqrt.f32 %v5518_v13 }
 0x797   :  { %v7727_v26 = vpop.eup %7726 }
 0x798   :  { %v5533_v7 = vmul.f32 %v7727_v26, %v5461_v49  ;;  %v5520_v41 = vmul.f32 %v7727_v26, %v9705_v18  ;;  %v5521_v30 = vmul.f32 %v7727_v26, %v9708_v44  ;;  %v5522_v0 = vmul.f32 %v7727_v26, %v9711_v5 }
 0x799   :  { %v5523_v52 = vmul.f32 %v7727_v26, %v9714_v48  ;;  %v5524_v3 = vmul.f32 %v7727_v26, %v9716_v62  ;;  %v5525_v9 = vmul.f32 %v7727_v26, %v9718_v14  ;;  %v5526_v36 = vmul.f32 %v7727_v26, %v9720_v32 }
 0x79a   :  { %v5555_v49 = vmul.f32 %v9787_v39, %v5533_v7  ;;  %v5542_v18 = vmul.f32 %v9787_v39, %v5520_v41  ;;  %v5543_v44 = vmul.f32 %v9787_v39, %v5521_v30  ;;  %v5544_v5 = vmul.f32 %v9787_v39, %v5522_v0 }
 0x79b   :  { %v5545_v51 = vmul.f32 %v9787_v39, %v5523_v52  ;;  %v5546_v22 = vmul.f32 %v9787_v39, %v5524_v3  ;;  %v5547_v48 = vmul.f32 %v9787_v39, %v5525_v9  ;;  %v5527_v62 = vmul.f32 %v7727_v26, %v9722_v63 }
 0x79c   :  { %v5564_v14 = vadd.f32 %v9795_v60, %v5542_v18  ;;  %v5565_v32 = vadd.f32 %v9795_v60, %v5543_v44  ;;  %v5566_v2 = vadd.f32 %v9795_v60, %v5544_v5  ;;  %v5548_v29 = vmul.f32 %v9787_v39, %v5526_v36 }
 0x79d   :  { %v5567_v27 = vadd.f32 %v9795_v60, %v5545_v51  ;;  %v5568_v34 = vadd.f32 %v9795_v60, %v5546_v22  ;;  %v5569_v57 = vadd.f32 %v9795_v60, %v5547_v48  ;;  %v5577_v58 = vadd.f32 %v9795_v60, %v5555_v49 }
 0x79e   :  { %v5580_v1 = vmax.f32 %v5564_v14, 0.0  ;;  %v5581_v46 = vmax.f32 %v5565_v32, 0.0  ;;  %v5582_v28 = vmax.f32 %v5566_v2, 0.0  ;;  %v5549_v40 = vmul.f32 %v9787_v39, %v5527_v62 }
 0x79f   :  { %v5583_v63 = vmax.f32 %v5567_v27, 0.0  ;;  %v5584_v19 = vmax.f32 %v5568_v34, 0.0  ;;  %v5585_v4 = vmax.f32 %v5569_v57, 0.0  ;;  %v5570_v38 = vadd.f32 %v9795_v60, %v5548_v29 }
 0x7a0   :  { %v5596_v50 = vpack.c.bf16 %v5581_v46, %v5580_v1  ;;  %v5528_v25 = vmul.f32 %v7727_v26, %v9724_v11  ;;  %v5529_v59 = vmul.f32 %v7727_v26, %v9726_v12  ;;  %v5571_v43 = vadd.f32 %v9795_v60, %v5549_v40 }
 0x7a1   :  { %v5597_v45 = vpack.c.bf16 %v5583_v63, %v5582_v28  ;;  %v5598_v55 = vpack.c.bf16 %v5585_v4, %v5584_v19  ;;  %v5530_v17 = vmul.f32 %v7727_v26, %v9728_v37  ;;  %v5586_v16 = vmax.f32 %v5570_v38, 0.0 }
 0x7a2   :  { %7265 = vmatprep.mubr.msk.bf16.mxu0 %vm1587_vm1, %v5596_v50  ;;  %v5550_v47 = vmul.f32 %v9787_v39, %v5528_v25  ;;  %v5551_v53 = vmul.f32 %v9787_v39, %v5529_v59  ;;  %v5531_v20 = vmul.f32 %v7727_v26, %v9730_v42  ;;  %v5587_v11 = vmax.f32 %v5571_v43, 0.0 }
 0x7a3   :  { %7266 = vmatmul.mubr.msk.bf16.vlgmr.msra.gmra.mrb[48].mxu0 %vm1587_vm1, %v5597_v45  ;;  %v5552_v12 = vmul.f32 %v9787_v39, %v5530_v17  ;;  %v5532_v31 = vmul.f32 %v7727_v26, %v9732_v61  ;;  %v5534_v35 = vmul.f32 %v7727_v26, %v9734_v33  ;;  %v5535_v8 = vmul.f32 %v7727_v26, %v9736_v24 }
 0x7a4   :  { %7269 = vmatprep.mubr.msk.bf16.mxu0 %vm1587_vm1, %v5598_v55  ;;  %v5572_v37 = vadd.f32 %v9795_v60, %v5550_v47  ;;  %v5573_v21 = vadd.f32 %v9795_v60, %v5551_v53  ;;  %v5553_v56 = vmul.f32 %v9787_v39, %v5531_v20  ;;  %v5599_v42 = vpack.c.bf16 %v5587_v11, %v5586_v16 }
 0x7a5   :  { %v5574_v54 = vadd.f32 %v9795_v60, %v5552_v12  ;;  %v5554_v6 = vmul.f32 %v9787_v39, %v5532_v31  ;;  %v5556_v23 = vmul.f32 %v9787_v39, %v5534_v35  ;;  %v5557_v10 = vmul.f32 %v9787_v39, %v5535_v8 }
 0x7a6   :  { %v5588_v61 = vmax.f32 %v5572_v37, 0.0  ;;  %v5589_v15 = vmax.f32 %v5573_v21, 0.0  ;;  %v5575_v33 = vadd.f32 %v9795_v60, %v5553_v56  ;;  %v5593_v13 = vmax.f32 %v5577_v58, 0.0 }
 0x7a7   :  { %v5590_v7 = vmax.f32 %v5574_v54, 0.0  ;;  %v5576_v41 = vadd.f32 %v9795_v60, %v5554_v6  ;;  %v5578_v30 = vadd.f32 %v9795_v60, %v5556_v23  ;;  %v5579_v0 = vadd.f32 %v9795_v60, %v5557_v10  ;;  %v6425_v60 = vld [vmem:[%s10053_s16] ss:$0 sm:$0xff] }
 0x7a8   :  { %v5600_v24 = vpack.c.bf16 %v5589_v15, %v5588_v61  ;;  %v5591_v26 = vmax.f32 %v5575_v33, 0.0 }
 0x7a9   :  { %v5592_v52 = vmax.f32 %v5576_v41, 0.0  ;;  %v5594_v3 = vmax.f32 %v5578_v30, 0.0  ;;  %v5595_v36 = vmax.f32 %v5579_v0, 0.0 }
 0x7aa   :  { %v5601_v9 = vpack.c.bf16 %v5591_v26, %v5590_v7 }
 0x7ab   :  { %7270 = vmatmul.mubr.msk.bf16.gmra.mrb[52].mxu0 %vm1587_vm1, %v5599_v42  ;;  %v5602_v49 = vpack.c.bf16 %v5593_v13, %v5592_v52  ;;  %v5603_v39 = vpack.c.bf16 %v5595_v36, %v5594_v3 }
 0x7ac   :  { %7273 = vmatprep.mubr.msk.bf16.mxu0 %vm1587_vm1, %v5600_v24 }
 0x7b3   :  { %7274 = vmatmul.mubr.msk.bf16.gmra.mrb[56].mxu0 %vm1587_vm1, %v5601_v9 }
 0x7b4   :  { %7277 = vmatprep.mubr.msk.bf16.mxu0 %vm1587_vm1, %v5602_v49 }
 0x7bb   :  { %7278 = vmatmul.mubr.msk.bf16.gmra.mrb[60].mxu0 %vm1587_vm1, %v5603_v39 }
 0x876   :  { %v7267_v18 = vpop.f32.mrb[48].mxu0 }
 0x877   :  { %v5685_v44 = vpop.f32.mrb[49].mxu0  ;;  %v9854_v48 = vadd.f32 %v7267_v18, %v6425_v60 }
 0x878   :  { %v9852_v5 = vadd.f32 %v6425_v60, %v5685_v44  ;;  %v7268_v51 = vpop.f32.mrb[50].mxu0 }
 0x879   :  { %v5688_v22 = vpop.f32.mrb[51].mxu0  ;;  %v9860_v32 = vadd.f32 %v7268_v51, %v6425_v60  ;;  %v5753_v34 = vsel %vm1587_vm1, %v9854_v48, 0.0 }
 0x87a   :  { %v9856_v62 = vadd.f32 %v6425_v60, %v5688_v22  ;;  %v5750_v14 = vsel %vm1587_vm1, %v9852_v5, 0.0 }
 0x87b   :  { %v5755_v1 = vsel %vm1587_vm1, %v9860_v32, 0.0 }
 0x87c   :  { %v5751_v2 = vsel %vm1587_vm1, %v9856_v62, 0.0 }
 0x87d   :  { %v5752_v27 = vadd.f32 %v5751_v2, %v5750_v14 }
 0x87e   :  { %v7271_v57 = vpop.f32.mrb[52].mxu0 }
 0x87f   :  { %v5754_v29 = vadd.f32 %v5753_v34, %v5752_v27  ;;  %v5701_v58 = vpop.f32.mrb[53].mxu0  ;;  %v5710_v4 = vadd.f32 %v7271_v57, %v6425_v60 }
 0x880   :  { %v5702_v46 = vadd.f32 %v6425_v60, %v5701_v58  ;;  %v7272_v28 = vpop.f32.mrb[54].mxu0 }
 0x881   :  { %v5756_v63 = vadd.f32 %v5755_v1, %v5754_v29  ;;  %v5704_v19 = vpop.f32.mrb[55].mxu0  ;;  %v5713_v25 = vadd.f32 %v7272_v28, %v6425_v60  ;;  %v5761_v55 = vsel %vm1587_vm1, %v5710_v4, 0.0 }
 0x882   :  { %v5757_v40 = vsel %vm1587_vm1, %v5702_v46, 0.0  ;;  %v5705_v50 = vadd.f32 %v6425_v60, %v5704_v19 }
 0x883   :  { %v5758_v38 = vadd.f32 %v5757_v40, %v5756_v63  ;;  %v5763_v47 = vsel %vm1587_vm1, %v5713_v25, 0.0 }
 0x884   :  { %v5759_v59 = vsel %vm1587_vm1, %v5705_v50, 0.0 }
 0x885   :  { %v5760_v45 = vadd.f32 %v5759_v59, %v5758_v38 }
 0x886   :  { %v7275_v43 = vpop.f32.mrb[56].mxu0 }
 0x887   :  { %v5762_v17 = vadd.f32 %v5761_v55, %v5760_v45  ;;  %v5717_v16 = vpop.f32.mrb[57].mxu0  ;;  %v5726_v31 = vadd.f32 %v7275_v43, %v6425_v60 }
 0x888   :  { %v5718_v53 = vadd.f32 %v6425_v60, %v5717_v16  ;;  %v7276_v20 = vpop.f32.mrb[58].mxu0 }
 0x889   :  { %v5764_v11 = vadd.f32 %v5763_v47, %v5762_v17  ;;  %v5720_v12 = vpop.f32.mrb[59].mxu0  ;;  %v5729_v56 = vadd.f32 %v7276_v20, %v6425_v60  ;;  %v5769_v54 = vsel %vm1587_vm1, %v5726_v31, 0.0 }
 0x88a   :  { %v5765_v35 = vsel %vm1587_vm1, %v5718_v53, 0.0  ;;  %v5721_v37 = vadd.f32 %v6425_v60, %v5720_v12 }
 0x88b   :  { %v5766_v21 = vadd.f32 %v5765_v35, %v5764_v11  ;;  %v5771_v15 = vsel %vm1587_vm1, %v5729_v56, 0.0 }
 0x88c   :  { %v5767_v8 = vsel %vm1587_vm1, %v5721_v37, 0.0 }
 0x88d   :  { %v5768_v42 = vadd.f32 %v5767_v8, %v5766_v21 }
 0x88e   :  { %v7279_v6 = vpop.f32.mrb[60].mxu0 }
 0x88f   :  { %v5770_v23 = vadd.f32 %v5769_v54, %v5768_v42  ;;  %v5733_v61 = vpop.f32.mrb[61].mxu0  ;;  %v5742_v41 = vadd.f32 %v7279_v6, %v6425_v60 }
 0x890   :  { %v5734_v33 = vadd.f32 %v6425_v60, %v5733_v61  ;;  %v7280_v10 = vpop.f32.mrb[62].mxu0 }
 0x891   :  { %v5772_v13 = vadd.f32 %v5771_v15, %v5770_v23  ;;  %v5736_v7 = vpop.f32.mrb[63].mxu0  ;;  %v5745_v0 = vadd.f32 %v7280_v10, %v6425_v60  ;;  %v5777_v9 = vsel %vm1587_vm1, %v5742_v41, 0.0 }
 0x892   :  { %v5773_v30 = vsel %vm1587_vm1, %v5734_v33, 0.0  ;;  %v5737_v24 = vadd.f32 %v6425_v60, %v5736_v7 }
 0x893   :  { %v5774_v26 = vadd.f32 %v5773_v30, %v5772_v13  ;;  %v5779_v49 = vsel %vm1587_vm1, %v5745_v0, 0.0 }
 0x894   :  { %v5775_v52 = vsel %vm1587_vm1, %v5737_v24, 0.0 }
 0x895   :  { %v5776_v3 = vadd.f32 %v5775_v52, %v5774_v26 }
 0x897   :  { %v5778_v36 = vadd.f32 %v5777_v9, %v5776_v3 }
 0x899   :  { %v5780_v39 = vadd.f32 %v5779_v49, %v5778_v36 }
 0x89b   :  { %v5781_v18 = vrot.slane %v5780_v39, 4 }
 0x89d   :  { %v5782_v44 = vadd.f32 %v5781_v18, %v5780_v39 }
 0x89f   :  { %v5783_v51 = vrot.slane %v5782_v44, 2 }
 0x8a1   :  { %v5784_v22 = vadd.f32 %v5783_v51, %v5782_v44 }
 0x8a3   :  { %v5785_v14 = vrot.slane %v5784_v22, 1 }
 0x8a5   :  { %v5786_v2 = vadd.f32 %v5785_v14, %v5784_v22 }
 0x8a7   :  { %v5787_v27 = vmul.f32 0.0078125, %v5786_v2 }
 0x8a9   :  { %v9881_v34 = vsub.f32 %v9852_v5, %v5787_v27  ;;  %v9884_v60 = vsub.f32 %v9856_v62, %v5787_v27  ;;  %v9887_v57 = vsub.f32 %v9854_v48, %v5787_v27  ;;  %v9890_v29 = vsub.f32 %v9860_v32, %v5787_v27 }
 0x8aa   :  { %v9892_v58 = vsub.f32 %v5702_v46, %v5787_v27  ;;  %v9894_v1 = vsub.f32 %v5705_v50, %v5787_v27  ;;  %v9896_v28 = vsub.f32 %v5710_v4, %v5787_v27  ;;  %v9898_v63 = vsub.f32 %v5713_v25, %v5787_v27 }
 0x8ab   :  { %v9900_v19 = vsub.f32 %v5718_v53, %v5787_v27  ;;  %v9902_v5 = vsub.f32 %v5721_v37, %v5787_v27  ;;  %v9904_v62 = vsub.f32 %v5726_v31, %v5787_v27  ;;  %v9906_v40 = vsub.f32 %v5729_v56, %v5787_v27 }
 0x8ac   :  { %v9908_v48 = vsub.f32 %v5734_v33, %v5787_v27  ;;  %v9910_v32 = vsub.f32 %v5737_v24, %v5787_v27  ;;  %v9912_v46 = vsub.f32 %v5742_v41, %v5787_v27  ;;  %v9914_v50 = vsub.f32 %v5745_v0, %v5787_v27 }
 0x8ad   :  { %v5804_v4 = vmul.f32 %v9881_v34, %v9881_v34  ;;  %v5805_v38 = vmul.f32 %v9884_v60, %v9884_v60  ;;  %v5806_v25 = vmul.f32 %v9887_v57, %v9887_v57  ;;  %v5807_v59 = vmul.f32 %v9890_v29, %v9890_v29 }
 0x8ae   :  { %v5808_v17 = vmul.f32 %v9892_v58, %v9892_v58  ;;  %v5809_v53 = vmul.f32 %v9894_v1, %v9894_v1  ;;  %v5810_v12 = vmul.f32 %v9896_v28, %v9896_v28  ;;  %v5811_v37 = vmul.f32 %v9898_v63, %v9898_v63 }
 0x8af   :  { %v5820_v45 = vsel %vm1587_vm1, %v5804_v4, 0.0  ;;  %v5821_v55 = vsel %vm1587_vm1, %v5805_v38, 0.0  ;;  %v5823_v16 = vsel %vm1587_vm1, %v5806_v25, 0.0  ;;  %v5825_v20 = vsel %vm1587_vm1, %v5807_v59, 0.0 }
 0x8b0   :  { %v5822_v43 = vadd.f32 %v5821_v55, %v5820_v45  ;;  %v5827_v31 = vsel %vm1587_vm1, %v5808_v17, 0.0  ;;  %v5829_v21 = vsel %vm1587_vm1, %v5809_v53, 0.0  ;;  %v5812_v8 = vmul.f32 %v9900_v19, %v9900_v19 }
 0x8b1   :  { %v5831_v42 = vsel %vm1587_vm1, %v5810_v12, 0.0  ;;  %v5813_v6 = vmul.f32 %v9902_v5, %v9902_v5  ;;  %v5833_v23 = vsel %vm1587_vm1, %v5811_v37, 0.0  ;;  %v5814_v15 = vmul.f32 %v9904_v62, %v9904_v62 }
 0x8b2   :  { %v5824_v47 = vadd.f32 %v5823_v16, %v5822_v43  ;;  %v5835_v33 = vsel %vm1587_vm1, %v5812_v8, 0.0  ;;  %v5815_v13 = vmul.f32 %v9906_v40, %v9906_v40  ;;  %v5816_v30 = vmul.f32 %v9908_v48, %v9908_v48 }
 0x8b3   :  { %v5837_v7 = vsel %vm1587_vm1, %v5813_v6, 0.0  ;;  %v5839_v24 = vsel %vm1587_vm1, %v5814_v15, 0.0  ;;  %v5817_v0 = vmul.f32 %v9910_v32, %v9910_v32  ;;  %v5818_v9 = vmul.f32 %v9912_v46, %v9912_v46 }
 0x8b4   :  { %v5826_v11 = vadd.f32 %v5825_v20, %v5824_v47  ;;  %v5841_v52 = vsel %vm1587_vm1, %v5815_v13, 0.0  ;;  %v5843_v36 = vsel %vm1587_vm1, %v5816_v30, 0.0  ;;  %v5819_v39 = vmul.f32 %v9914_v50, %v9914_v50 }
 0x8b5   :  { %v5845_v18 = vsel %vm1587_vm1, %v5817_v0, 0.0  ;;  %v5847_v51 = vsel %vm1587_vm1, %v5818_v9, 0.0 }
 0x8b6   :  { %v5828_v35 = vadd.f32 %v5827_v31, %v5826_v11  ;;  %v5849_v14 = vsel %vm1587_vm1, %v5819_v39, 0.0  ;;  %v6436_v11 = vld [vmem:[%s10054_s17] ss:$0 sm:$0xff] }
 0x8b8   :  { %v5830_v56 = vadd.f32 %v5829_v21, %v5828_v35 }
 0x8ba   :  { %v5832_v54 = vadd.f32 %v5831_v42, %v5830_v56 }
 0x8bc   :  { %v5834_v61 = vadd.f32 %v5833_v23, %v5832_v54 }
 0x8be   :  { %v5836_v10 = vadd.f32 %v5835_v33, %v5834_v61 }
 0x8c0   :  { %v5838_v41 = vadd.f32 %v5837_v7, %v5836_v10 }
 0x8c2   :  { %v5840_v26 = vadd.f32 %v5839_v24, %v5838_v41 }
 0x8c4   :  { %v5842_v3 = vadd.f32 %v5841_v52, %v5840_v26 }
 0x8c6   :  { %v5844_v49 = vadd.f32 %v5843_v36, %v5842_v3 }
 0x8c8   :  { %v5846_v44 = vadd.f32 %v5845_v18, %v5844_v49 }
 0x8ca   :  { %v5848_v22 = vadd.f32 %v5847_v51, %v5846_v44  ;;  %v10132_v44 = vld [vmem:[#allocation6_spill] sm:$0xff] }
 0x8cc   :  { %v5850_v2 = vadd.f32 %v5849_v14, %v5848_v22  ;;  %v10133_v22 = vld [vmem:[#allocation7_spill] sm:$0xff] }
 0x8ce   :  { %v5851_v27 = vrot.slane %v5850_v2, 4 }
 0x8d0   :  { %v5852_v4 = vadd.f32 %v5851_v27, %v5850_v2  ;;  %v10134_v2 = vld [vmem:[#allocation8_spill] sm:$0xff] }
 0x8d2   :  { %v5853_v38 = vrot.slane %v5852_v4, 2 }
 0x8d4   :  { %v5854_v25 = vadd.f32 %v5853_v38, %v5852_v4  ;;  %v10135_v4 = vld [vmem:[#allocation9_spill] sm:$0xff] }
 0x8d6   :  { %v5855_v59 = vrot.slane %v5854_v25, 1 }
 0x8d8   :  { %v5856_v45 = vadd.f32 %v5855_v59, %v5854_v25  ;;  %v10136_v25 = vld [vmem:[#allocation10_spill] sm:$0xff] }
 0x8da   :  { %v5857_v55 = vmul.f32 0.0078125, %v5856_v45  ;;  %v10137_v45 = vld [vmem:[#allocation11_spill] sm:$0xff] }
 0x8dc   :  { %v5858_v43 = vadd.f32 1e-06, %v5857_v55 }
 0x8de   :  { %7728 = vrsqrt.f32 %v5858_v43  ;;  %v10138_v43 = vld [vmem:[#allocation12_spill] sm:$0xff] }
 0x8e8   :  { %v7729_v17 = vpop.eup %7728 }
 0x8e9   :  { %v5860_v16 = vmul.f32 %v7729_v17, %v9881_v34  ;;  %v5861_v47 = vmul.f32 %v7729_v17, %v9884_v60  ;;  %v5862_v53 = vmul.f32 %v7729_v17, %v9887_v57  ;;  %v5863_v20 = vmul.f32 %v7729_v17, %v9890_v29 }
 0x8ea   :  { %v5864_v12 = vmul.f32 %v7729_v17, %v9892_v58  ;;  %v5865_v31 = vmul.f32 %v7729_v17, %v9894_v1  ;;  %v5866_v35 = vmul.f32 %v7729_v17, %v9896_v28  ;;  %v5867_v37 = vmul.f32 %v7729_v17, %v9898_v63 }
 0x8eb   :  { %v5868_v34 = vmul.f32 %v7729_v17, %v9900_v19  ;;  %v5869_v60 = vmul.f32 %v7729_v17, %v9902_v5  ;;  %v5870_v57 = vmul.f32 %v7729_v17, %v9904_v62  ;;  %v5871_v29 = vmul.f32 %v7729_v17, %v9906_v40  ;;  %v6437_v19 = vld [vmem:[%s10055_s18] ss:$0 sm:$0xff]  ;;  %s7755_s18 = smov [#allocation3]  }
 0x8ec   :  { %v5872_v21 = vmul.f32 %v7729_v17, %v9908_v48  ;;  %v5873_v56 = vmul.f32 %v7729_v17, %v9910_v32  ;;  %v5874_v58 = vmul.f32 %v7729_v17, %v9912_v46  ;;  %v5875_v1 = vmul.f32 %v7729_v17, %v9914_v50  ;;  %s5957_s20 = sshll.u32 %s7755_s18, 4  ;;  %s10002_s20 = int_to_ptr.vmem [resolvable:$true] %s5957_s20 }
 0x8ed   :  { %v5882_v8 = vmul.f32 %v6436_v11, %v5860_v16  ;;  %v5883_v28 = vmul.f32 %v6436_v11, %v5861_v47  ;;  %v5884_v42 = vmul.f32 %v6436_v11, %v5862_v53  ;;  %v5885_v63 = vmul.f32 %v6436_v11, %v5863_v20  ;;  %v10139_v16 = vld [vmem:[#allocation13_spill] sm:$0xff]  ;;  %v10140_v53 = vld [vmem:[#allocation14_spill] sm:$0xff]  ;;  %s7730_s21 = scalar_lea.vmem %s10002_s20, 2048  ;;  %p7735_p1 = scmp.lt.s32.totalorder %s10002_s20, %s10002_s20 }
 0x8ee   :  { %v5886_v5 = vmul.f32 %v6436_v11, %v5864_v12  ;;  %v5887_v62 = vmul.f32 %v6436_v11, %v5865_v31  ;;  %v5888_v54 = vmul.f32 %v6436_v11, %v5866_v35  ;;  %v5889_v40 = vmul.f32 %v6436_v11, %v5867_v37  ;;  %v10142_v31 = vld [vmem:[#allocation16_spill] sm:$0xff]  ;;  %v10143_v37 = vld [vmem:[#allocation17_spill] sm:$0xff]  ;;  %p7731_p0 = scmp.ne.s32.totalorder %s10002_s20, %s7730_s21  ;;  %p7736_p2 = scmp.lt.s32.totalorder %s7730_s21, %s7730_s21 }
 0x8ef   :  { %v5890_v6 = vmul.f32 %v6436_v11, %v5868_v34  ;;  %v5891_v48 = vmul.f32 %v6436_v11, %v5869_v60  ;;  %v5892_v23 = vmul.f32 %v6436_v11, %v5870_v57  ;;  %v5893_v32 = vmul.f32 %v6436_v11, %v5871_v29  ;;  %v10144_v60 = vld [vmem:[#allocation18_spill] sm:$0xff]  ;;  %v10145_v29 = vld [vmem:[#allocation19_spill] sm:$0xff] }
 0x8f0   :  { %v5894_v61 = vmul.f32 %v6436_v11, %v5872_v21  ;;  %v5895_v46 = vmul.f32 %v6436_v11, %v5873_v56  ;;  %v5896_v15 = vmul.f32 %v6436_v11, %v5874_v58  ;;  %v5897_v50 = vmul.f32 %v6436_v11, %v5875_v1  ;;  %v10141_v11 = vld [vmem:[#allocation15_spill] sm:$0xff]  ;;  %v10146_v56 = vld [vmem:[#allocation20_spill] sm:$0xff]  ;;  %v10147_v1 = vld [vmem:[#allocation21_spill] sm:$0xff]  ;;  %p7737_p3 = por %p7736_p2, %p7735_p1 }
 0x8f1   :  { %v5904_v33 = vadd.f32 %v6437_v19, %v5882_v8  ;;  %v5905_v10 = vadd.f32 %v6437_v19, %v5883_v28  ;;  %v5906_v13 = vadd.f32 %v6437_v19, %v5884_v42  ;;  %v5907_v7 = vadd.f32 %v6437_v19, %v5885_v63 }
 0x8f2   :  { %v5908_v41 = vadd.f32 %v6437_v19, %v5886_v5  ;;  %v5909_v30 = vadd.f32 %v6437_v19, %v5887_v62  ;;  %v5910_v24 = vadd.f32 %v6437_v19, %v5888_v54  ;;  %v5911_v26 = vadd.f32 %v6437_v19, %v5889_v40  ;;  %p7738_p4 = pnand %p7737_p3, %p7731_p0 }
 0x8f3   :  { %v5912_v0 = vadd.f32 %v6437_v19, %v5890_v6  ;;  %v5913_v52 = vadd.f32 %v6437_v19, %v5891_v48  ;;  %v5914_v3 = vadd.f32 %v6437_v19, %v5892_v23  ;;  %v5915_v9 = vadd.f32 %v6437_v19, %v5893_v32 }
 0x8f4   :  { %v5916_v36 = vadd.f32 %v6437_v19, %v5894_v61  ;;  %v5917_v49 = vadd.f32 %v6437_v19, %v5895_v46  ;;  %v5918_v39 = vadd.f32 %v6437_v19, %v5896_v15  ;;  %v5919_v18 = vadd.f32 %v6437_v19, %v5897_v50 }
 0x8f5   :  { %v5920_v51 = vadd.f32 %v5904_v33, %v10132_v44  ;;  %v5921_v14 = vadd.f32 %v5905_v10, %v10133_v22  ;;  %v5922_v27 = vadd.f32 %v5906_v13, %v10134_v2  ;;  %v5923_v38 = vadd.f32 %v5907_v7, %v10135_v4 }
 0x8f6   :  { %v5924_v59 = vadd.f32 %v5908_v41, %v10136_v25  ;;  %v5925_v55 = vadd.f32 %v5909_v30, %v10137_v45  ;;  %v5926_v17 = vadd.f32 %v5910_v24, %v10138_v43  ;;  %v5927_v47 = vadd.f32 %v5911_v26, %v10139_v16 }
 0x8f7   :  { %v5928_v20 = vadd.f32 %v5912_v0, %v10140_v53  ;;  %v5929_v12 = vadd.f32 %v5913_v52, %v10141_v11  ;;  %v5930_v35 = vadd.f32 %v5914_v3, %v10142_v31  ;;  %v5931_v34 = vadd.f32 %v5915_v9, %v10143_v37  ;;  %5936 = vst.msk [vmem:[#allocation3] sm:$0xff] %vm1587_vm1, %v5920_v51 }
 0x8f8   :  { %5937 = vst.msk [vmem:[#allocation3 + $0x8] sm:$0xff] %vm1587_vm1, %v5921_v14  ;;  %5938 = vst.msk [vmem:[#allocation3 + $0x10] sm:$0xff] %vm1587_vm1, %v5922_v27  ;;  %v5932_v57 = vadd.f32 %v5916_v36, %v10144_v60  ;;  %v5933_v21 = vadd.f32 %v5917_v49, %v10145_v29  ;;  %v5934_v58 = vadd.f32 %v5918_v39, %v10146_v56 }
 0x8f9   :  { %5939 = vst.msk [vmem:[#allocation3 + $0x18] sm:$0xff] %vm1587_vm1, %v5923_v38  ;;  %v5935_v8 = vadd.f32 %v5919_v18, %v10147_v1  ;;  %5940 = vst.msk [vmem:[#allocation3 + $0x20] sm:$0xff] %vm1587_vm1, %v5924_v59 }
 0x8fa   :  { %5941 = vst.msk [vmem:[#allocation3 + $0x28] sm:$0xff] %vm1587_vm1, %v5925_v55  ;;  %5942 = vst.msk [vmem:[#allocation3 + $0x30] sm:$0xff] %vm1587_vm1, %v5926_v17 }
 0x8fb   :  { %5943 = vst.msk [vmem:[#allocation3 + $0x38] sm:$0xff] %vm1587_vm1, %v5927_v47  ;;  %5944 = vst.msk [vmem:[#allocation3 + $0x40] sm:$0xff] %vm1587_vm1, %v5928_v20 }
 0x8fc   :  { %5945 = vst.msk [vmem:[#allocation3 + $0x48] sm:$0xff] %vm1587_vm1, %v5929_v12  ;;  %5946 = vst.msk [vmem:[#allocation3 + $0x50] sm:$0xff] %vm1587_vm1, %v5930_v35 }
 0x8fd   :  { %5947 = vst.msk [vmem:[#allocation3 + $0x58] sm:$0xff] %vm1587_vm1, %v5931_v34  ;;  %5948 = vst.msk [vmem:[#allocation3 + $0x60] sm:$0xff] %vm1587_vm1, %v5932_v57 }
 0x8fe   :  { %5949 = vst.msk [vmem:[#allocation3 + $0x68] sm:$0xff] %vm1587_vm1, %v5933_v21  ;;  %5950 = vst.msk [vmem:[#allocation3 + $0x70] sm:$0xff] %vm1587_vm1, %v5934_v58 }
 0x8ff   :  { %5951 = vst.msk [vmem:[#allocation3 + $0x78] sm:$0xff] %vm1587_vm1, %v5935_v8 }
 0x900   :  { %7741 = shalt.err (!%p7738_p4)
}
 0x901   :  { %s7742_s22 = scalar_lea.hbm %s10056_s19, 2048 }
 0x902   :  { %p7743_p5 = scmp.ne.s32.totalorder %s10056_s19, %s7742_s22  ;;  %p7746_p6 = scmp.lt.u32.totalorder %s7742_s22, %s10056_s19 }
 0x904   :  { %p7748_p7 = pnand %p7746_p6, %p7743_p5 }
 0x906   :  { %7751 = shalt.err (!%p7748_p7)
}
 0x907   :  { %s7756_s24 = smov 128   ;;  %s7757_s25 = smov 8  }
 0x908   :  { %5963 = dma.vmem_to_hbm [thread:$0]  %s10002_s20, 2048, %s10056_s19, [#allocation4], %s7756_s24, %s7756_s24, %s7757_s25  }
 0x909   :  { %7752 = dma.done.wait [#allocation4], 2048  }
 0x90a   :  { %7753 = vsyncadd [#allocation4], 4294965248 }
 0x90b   :  { %5967 = vsyncpa [#allocation4], 1 }

</bundles_post_ra>
